<compile_context>
chip_gen: v7x
topology: tpu7x:2x2x1
jax: 0.10.0
libtpu: 0.0.40
codegen_flags: <defaults>
</compile_context>

<pallas_src>
import functools

import jax
import jax.numpy as jnp
from jax.experimental import pallas as pl
from jax.experimental.pallas import tpu as pltpu

C_IN = 3
C_IN_PAD = 8
C1_PAD = 128                      # conv1 output channels padded 64 -> 128
CONV_DIMS = [(C_IN, 64), (64, 128), (128, 256), (256, 256), (256, 512)]
FEAT_DIM = 512
FC_HID = 256
BN_EPS = 1e-5
_VMEM_LIMIT = 48 * 1024 * 1024    # cap, not reservation; < v7x physical 64 MiB


def _round_up(x, m):
    return (x + m - 1) // m * m


# ----------------------------------------------------------------------------
# Kernel helpers
# ----------------------------------------------------------------------------
def _point_stack(x_tile, w_refs, b_refs):
    """Per-point MLP: 5x (bf16 MXU matmul, f32 acc, +bias, ReLU). BN1..4 folded."""
    h = x_tile                                              # (TP, C_IN_PAD) bf16
    r = None
    n = len(w_refs)
    for i, (w, b) in enumerate(zip(w_refs, b_refs)):
        a = jnp.dot(h, w[...], preferred_element_type=jnp.float32) + b[...]
        if i + 1 < n:
            # bf16 ReLU (cast-then-ReLU == ReLU-then-cast): halves the VPU pass
            h = jnp.maximum(a.astype(jnp.bfloat16), 0)
        else:
            r = jnp.maximum(a, 0.0)                         # layer 5 kept f32
    return r                                                # (TP, FEAT_DIM) f32


def _tile_minmax(r):
    """Reduce (TP,512) -> (8,512) max & min with pure vreg-wise maxima (no XLU)."""
    tp = r.shape[0]
    r3 = r.reshape(tp // 8, 8, r.shape[1])
    return jnp.max(r3, axis=0), jnp.min(r3, axis=0)


def _head(maxr, minr, s5, t5, wfc, bfc, whead, bhead):
    """Deferred BN5 (select on sign(s5)) + FC head (bf16 matmuls, f32 acc)."""
    hb = jnp.where(s5 >= 0, s5 * maxr, s5 * minr) + t5      # BatchNorm1d(512), eval
    hh = jnp.dot(hb.astype(jnp.bfloat16), wfc,
                 preferred_element_type=jnp.float32) + bfc
    hh = jnp.maximum(hh, 0.0)
    out = jnp.dot(hh.astype(jnp.bfloat16), whead,
                  preferred_element_type=jnp.float32) + bhead
    return out                                              # (1, 2*ZP) f32


# ----------------------------------------------------------------------------
# Fused kernel (default): conv stack + running max/min + BN5 + head, one kernel
# ----------------------------------------------------------------------------
def encoder_fused_kernel(x_ref,
                         w1, w2, w3, w4, w5,
                         b1, b2, b3, b4, b5,
                         s5, t5, wfc, bfc, whead, bhead,
                         out_ref,
                         max_acc, min_acc):
    t = pl.program_id(1)
    nt = pl.num_programs(1)

    r = _point_stack(x_ref[0], (w1, w2, w3, w4, w5), (b1, b2, b3, b4, b5))
    tmax, tmin = _tile_minmax(r)

    @pl.when(t == 0)
    def _():
        max_acc[...] = tmax
        min_acc[...] = tmin

    @pl.when(t > 0)
    def _():
        max_acc[...] = jnp.maximum(max_acc[...], tmax)
        min_acc[...] = jnp.minimum(min_acc[...], tmin)

    # Tiny FC head, fused on the last point tile of each batch row.
    @pl.when(t == nt - 1)
    def _():
        maxr = jnp.max(max_acc[...], axis=0, keepdims=True)   # (1, FEAT_DIM)
        minr = jnp.min(min_acc[...], axis=0, keepdims=True)
        out = _head(maxr, minr, s5[...], t5[...], wfc[...], bfc[...],
                    whead[...], bhead[...])
        out_ref[...] = out[None]                               # (1, 1, 2*ZP)


# ----------------------------------------------------------------------------
# Split-mode kernels (num_splits>=2, v7x dual-TensorCore): partial reduce + head
# ----------------------------------------------------------------------------
def encoder_partial_kernel(x_ref,
                           w1, w2, w3, w4, w5,
                           b1, b2, b3, b4, b5,
                           max_ref, min_ref):
    t = pl.program_id(2)
    r = _point_stack(x_ref[0], (w1, w2, w3, w4, w5), (b1, b2, b3, b4, b5))
    tmax, tmin = _tile_minmax(r)

    @pl.when(t == 0)
    def _():
        max_ref[...] = tmax[None, None]
        min_ref[...] = tmin[None, None]

    @pl.when(t > 0)
    def _():
        max_ref[...] = jnp.maximum(max_ref[...], tmax[None, None])
        min_ref[...] = jnp.minimum(min_ref[...], tmin[None, None])


def encoder_head_kernel(pmax_ref, pmin_ref,
                        s5, t5, wfc, bfc, whead, bhead,
                        out_ref):
    ns, sub, feat = pmax_ref.shape[1:]
    pm = pmax_ref[0].reshape(ns * sub, feat)
    pn = pmin_ref[0].reshape(ns * sub, feat)
    maxr = jnp.max(pm, axis=0, keepdims=True)                  # (1, FEAT_DIM)
    minr = jnp.min(pn, axis=0, keepdims=True)
    out = _head(maxr, minr, s5[...], t5[...], wfc[...], bfc[...],
                whead[...], bhead[...])
    out_ref[...] = out[None]                                   # (1, 1, 2*ZP)


# ----------------------------------------------------------------------------
# Parameter preparation: fold BN1..4 into the next conv, pad conv1 out to 128,
# cast matmul weights to bf16, build the concatenated head.
# ----------------------------------------------------------------------------
def _prepare_params(params, z_size):
    zp = _round_up(z_size, 64)            # 2*zp multiple of 128 -> lane-dense head out

    # Layer-1 weight: input channels padded 3 -> 8; padded rows forced to zero so
    # the edge-replicated channel padding of the input contributes nothing.
    w1 = params["w1"].astype(jnp.float32)
    if w1.shape[0] == C_IN:
        w1 = jnp.pad(w1, ((0, C_IN_PAD - C_IN), (0, 0)))
    else:
        w1 = jnp.where((jnp.arange(C_IN_PAD) < C_IN)[:, None], w1, 0.0)
    raw_ws = [w1] + [params[f"w{i}"].astype(jnp.float32) for i in range(2, 6)]

    ws, bs = [], []
    prev_s = prev_t = None
    for i, wi in enumerate(raw_ws, start=1):
        if prev_s is None:
            wf = wi
            bf = jnp.zeros((1, wi.shape[1]), jnp.float32)
        else:
            wf = wi * prev_s.reshape(-1, 1)                 # diag(s_{i-1}) @ W_i
            bf = prev_t @ wi                                # t_{i-1} @ W_i
        if i == 1:                                          # conv1 out: 64 -> 128
            wf = jnp.pad(wf, ((0, 0), (0, C1_PAD - wf.shape[1])))
            bf = jnp.pad(bf, ((0, 0), (0, C1_PAD - bf.shape[1])))
        elif i == 2:                                        # matching zero rows
            wf = jnp.pad(wf, ((0, C1_PAD - wf.shape[0]), (0, 0)))
        ws.append(wf.astype(jnp.bfloat16))
        bs.append(bf)
        prev_s = params[f"s{i}"].astype(jnp.float32)
        prev_t = params[f"t{i}"].astype(jnp.float32)

    pad = zp - z_size
    whead = jnp.concatenate(
        [jnp.pad(params["wmu"], ((0, 0), (0, pad))),
         jnp.pad(params["wsd"], ((0, 0), (0, pad)))], axis=1).astype(jnp.bfloat16)
    bhead = jnp.concatenate(
        [jnp.pad(params["bmu"], ((0, 0), (0, pad))),
         jnp.pad(params["bsd"], ((0, 0), (0, pad)))], axis=1).astype(jnp.float32)
    head_consts = [params["s5"].astype(jnp.float32),
                   params["t5"].astype(jnp.float32),
                   params["wfc"].astype(jnp.bfloat16),
                   params["bfc"].astype(jnp.float32),
                   whead, bhead]
    return ws, bs, head_consts, zp


def _const_spec(a, n_grid_axes):
    zero = (0,) * a.ndim
    if n_grid_axes == 1:
        return pl.BlockSpec(a.shape, lambda b: zero)
    if n_grid_axes == 2:
        return pl.BlockSpec(a.shape, lambda b, t: zero)
    return pl.BlockSpec(a.shape, lambda b, s, t: zero)


# ----------------------------------------------------------------------------
# Wrapper
# ----------------------------------------------------------------------------
@functools.partial(jax.jit, static_argnames=("tile_points", "num_splits", "channels_last"))
def encoder_forward(x, params, *, tile_points=2048, num_splits=1, channels_last=False):
    """x: (B, 3, N) PyTorch NCW layout, or (B, N, 3) if channels_last=True.

    num_splits=2 splits the point-tile range across TensorCores (useful on v7x at
    small batch); num_splits=1 keeps the fully fused single-kernel path.
    """
    if channels_last:
        B, N, cin = x.shape
    else:
        B, cin, N = x.shape
    assert cin == C_IN
    z_size = params["wmu"].shape[1]

    tile_points = max(8, _round_up(tile_points, 8))
    tp = min(tile_points, _round_up(N, 8))
    n_pad = _round_up(N, tp * num_splits)
    n_tiles = n_pad // tp
    tiles_per_split = n_tiles // num_splits

    # Minimal preprocessing: (optional transpose) + bf16 cast + ONE edge-pad that
    # covers both the ragged point padding (max/min-invariant: replicates the last
    # real point) and the 3->8 channel padding (harmless: w1's padded rows are 0).
    x_cl = x if channels_last else jnp.transpose(x, (0, 2, 1))
    x_bf = jnp.pad(x_cl.astype(jnp.bfloat16),
                   ((0, 0), (0, n_pad - N), (0, C_IN_PAD - C_IN)), mode="edge")

    ws, bs, head_consts, zp = _prepare_params(params, z_size)

    if num_splits == 1:
        # Fully fused: conv stack + running max/min + BN5 + FC head in one kernel.
        comb = pl.pallas_call(
            encoder_fused_kernel,
            out_shape=jax.ShapeDtypeStruct((B, 1, 2 * zp), jnp.float32),
            grid_spec=pltpu.PrefetchScalarGridSpec(
                num_scalar_prefetch=0,
                grid=(B, n_tiles),
                in_specs=[pl.BlockSpec((1, tp, C_IN_PAD), lambda b, t: (b, t, 0))]
                         + [_const_spec(a, 2) for a in ws + bs + head_consts],
                out_specs=pl.BlockSpec((1, 1, 2 * zp), lambda b, t: (b, 0, 0)),
                scratch_shapes=[pltpu.VMEM((8, FEAT_DIM), jnp.float32),
                                pltpu.VMEM((8, FEAT_DIM), jnp.float32)]),
            compiler_params=pltpu.CompilerParams(
                dimension_semantics=("parallel", "arbitrary"),
                vmem_limit_bytes=_VMEM_LIMIT),
        )(x_bf, *ws, *bs, *head_consts)
    else:
        # Split mode: partial (8,512) max/min per (batch, split) on a "parallel"
        # axis (uses both v7x TensorCores even at B=1), then a tiny head kernel.
        tps = tiles_per_split

        def x_map(b, s, t):
            return (b, s * tps + t, 0)

        pmax, pmin = pl.pallas_call(
            encoder_partial_kernel,
            out_shape=(jax.ShapeDtypeStruct((B, num_splits, 8, FEAT_DIM), jnp.float32),
                       jax.ShapeDtypeStruct((B, num_splits, 8, FEAT_DIM), jnp.float32)),
            grid_spec=pltpu.PrefetchScalarGridSpec(
                num_scalar_prefetch=0,
                grid=(B, num_splits, tiles_per_split),
                in_specs=[pl.BlockSpec((1, tp, C_IN_PAD), x_map)]
                         + [_const_spec(a, 3) for a in ws + bs],
                out_specs=(pl.BlockSpec((1, 1, 8, FEAT_DIM), lambda b, s, t: (b, s, 0, 0)),
                           pl.BlockSpec((1, 1, 8, FEAT_DIM), lambda b, s, t: (b, s, 0, 0)))),
            compiler_params=pltpu.CompilerParams(
                dimension_semantics=("parallel", "parallel", "arbitrary"),
                vmem_limit_bytes=_VMEM_LIMIT),
        )(x_bf, *ws, *bs)

        comb = pl.pallas_call(
            encoder_head_kernel,
            out_shape=jax.ShapeDtypeStruct((B, 1, 2 * zp), jnp.float32),
            grid_spec=pltpu.PrefetchScalarGridSpec(
                num_scalar_prefetch=0,
                grid=(B,),
                in_specs=[pl.BlockSpec((1, num_splits, 8, FEAT_DIM), lambda b: (b, 0, 0, 0)),
                          pl.BlockSpec((1, num_splits, 8, FEAT_DIM), lambda b: (b, 0, 0, 0))]
                         + [_const_spec(a, 1) for a in head_consts],
                out_specs=pl.BlockSpec((1, 1, 2 * zp), lambda b: (b, 0, 0))),
            compiler_params=pltpu.CompilerParams(
                dimension_semantics=("parallel",)),
        )(pmax, pmin, *head_consts)

    comb = comb.reshape(B, 2 * zp)
    mu = comb[:, :z_size]
    logvar = comb[:, zp:zp + z_size]
    return mu, logvar


# ----------------------------------------------------------------------------
# Deterministic parameter init (synthetic, shapes from the PyTorch module)
# ----------------------------------------------------------------------------
def init_params(key, z_size):
    keys = iter(jax.random.split(key, 32))
    p = {}
    for i, (cin, cout) in enumerate(CONV_DIMS, start=1):
        w = jax.random.normal(next(keys), (cin, cout), jnp.float32) / jnp.sqrt(cin)
        if i == 1:
            w = jnp.pad(w, ((0, C_IN_PAD - cin), (0, 0)))   # zero rows: no-op
        p[f"w{i}"] = w
        gamma = 1.0 + 0.1 * jax.random.normal(next(keys), (1, cout), jnp.float32)
        beta = 0.1 * jax.random.normal(next(keys), (1, cout), jnp.float32)
        mean = 0.1 * jax.random.normal(next(keys), (1, cout), jnp.float32)
        var = jnp.abs(jax.random.normal(next(keys), (1, cout), jnp.float32)) + 0.5
        s = gamma / jnp.sqrt(var + BN_EPS)
        p[f"s{i}"] = s
        p[f"t{i}"] = beta - mean * s
    p["wfc"] = jax.random.normal(next(keys), (FEAT_DIM, FC_HID), jnp.float32) / jnp.sqrt(FEAT_DIM)
    p["bfc"] = 0.1 * jax.random.normal(next(keys), (1, FC_HID), jnp.float32)
    p["wmu"] = jax.random.normal(next(keys), (FC_HID, z_size), jnp.float32) / jnp.sqrt(FC_HID)
    p["bmu"] = 0.1 * jax.random.normal(next(keys), (1, z_size), jnp.float32)
    p["wsd"] = jax.random.normal(next(keys), (FC_HID, z_size), jnp.float32) / jnp.sqrt(FC_HID)
    p["bsd"] = 0.1 * jax.random.normal(next(keys), (1, z_size), jnp.float32)
    return p


# ----------------------------------------------------------------------------
# References
# ----------------------------------------------------------------------------
def ref_forward_f32(x, params):
    """Pure-f32 reference with the original module semantics (eval-mode BN)."""
    cpad = params["w1"].shape[0]
    h = jnp.pad(jnp.transpose(x, (0, 2, 1)), ((0, 0), (0, 0), (0, cpad - C_IN)))
    for i in range(1, 6):
        h = jnp.maximum(jnp.einsum("bnc,cd->bnd", h, params[f"w{i}"]), 0.0)  # conv(k=1)+ReLU
        h = h * params[f"s{i}"][None] + params[f"t{i}"][None]                # BN (eval)
    feat = jnp.max(h, axis=1)
    hh = jnp.maximum(feat @ params["wfc"] + params["bfc"], 0.0)
    return hh @ params["wmu"] + params["bmu"], hh @ params["wsd"] + params["bsd"]


def ref_forward_matched(x, params):
    """Reference replicating the kernel's bf16/f32 numerics and deferred BN5."""
    z_size = params["wmu"].shape[1]
    ws, bs, head_consts, zp = _prepare_params(params, z_size)
    s5, t5, wfc, bfc, whead, bhead = head_consts
    h = jnp.pad(jnp.transpose(x, (0, 2, 1)),
                ((0, 0), (0, 0), (0, C_IN_PAD - C_IN))).astype(jnp.bfloat16)
    r = None
    for i, (w, b) in enumerate(zip(ws, bs)):
        a = jnp.einsum("bnc,cd->bnd", h, w, preferred_element_type=jnp.float32) + b[None]
        if i + 1 < len(ws):
            h = jnp.maximum(a.astype(jnp.bfloat16), 0)
        else:
            r = jnp.maximum(a, 0.0)
    rmax = jnp.max(r, axis=1)
    rmin = jnp.min(r, axis=1)
    feat = jnp.where(s5 >= 0, s5 * rmax, s5 * rmin) + t5        # BN5 after the max
    hh = jnp.maximum(jnp.dot(feat.astype(jnp.bfloat16), wfc,
                             preferred_element_type=jnp.float32) + bfc, 0.0)
    out = jnp.dot(hh.astype(jnp.bfloat16), whead,
                  preferred_element_type=jnp.float32) + bhead
    return out[:, :z_size], out[:, zp:zp + z_size]


if __name__ == "__main__":
    key = jax.random.PRNGKey(0)
    z_size = 32
    B, N = 2, 500                       # N not a tile multiple -> exercises ragged padding
    pkey, xkey = jax.random.split(key)
    params = init_params(pkey, z_size)
    x = jax.random.normal(xkey, (B, C_IN, N), jnp.float32)   # PyTorch NCW input

    mu_m, lv_m = ref_forward_matched(x, params)
    mu_f, lv_f = ref_forward_f32(x, params)

    # 1) Default fused path (large point tile, single kernel).
    mu, logvar = encoder_forward(x, params)
    jax.block_until_ready((mu, logvar))
    assert mu.shape == (B, z_size) and logvar.shape == (B, z_size)
    assert jnp.allclose(mu, mu_m, atol=5e-3, rtol=5e-3)
    assert jnp.allclose(logvar, lv_m, atol=5e-3, rtol=5e-3)
    assert jnp.allclose(mu, mu_f, atol=2e-1, rtol=1e-1)          # bf16 MXU tolerance
    assert jnp.allclose(logvar, lv_f, atol=2e-1, rtol=1e-1)

    # 2) Multi-tile fused path (exercises the running max/min accumulator).
    mu2, lv2 = encoder_forward(x, params, tile_points=64)
    assert jnp.allclose(mu2, mu_m, atol=5e-3, rtol=5e-3)
    assert jnp.allclose(lv2, lv_m, atol=5e-3, rtol=5e-3)

    # 3) Dual-TensorCore split path (v7x; also valid/correct on single-TC chips).
    mu3, lv3 = encoder_forward(x, params, tile_points=64, num_splits=2)
    assert jnp.allclose(mu3, mu_m, atol=5e-3, rtol=5e-3)
    assert jnp.allclose(lv3, lv_m, atol=5e-3, rtol=5e-3)

    # 4) Channels-last input (skips the wrapper transpose).
    mu4, lv4 = encoder_forward(jnp.transpose(x, (0, 2, 1)), params, channels_last=True)
    assert jnp.allclose(mu4, mu_m, atol=5e-3, rtol=5e-3)
    assert jnp.allclose(lv4, lv_m, atol=5e-3, rtol=5e-3)

    print("KERNEL_OK")
</pallas_src>

<mosaic_0001>
module attributes {stable_mosaic.version = 11 : i64} {
  func.func @encoder_fused_kernel(%arg0: i32, %arg1: i32, %arg2: memref<1x504x8xbf16, #tpu.memory_space<vmem>>, %arg3: memref<8x128xbf16, #tpu.memory_space<vmem>>, %arg4: memref<128x128xbf16, #tpu.memory_space<vmem>>, %arg5: memref<128x256xbf16, #tpu.memory_space<vmem>>, %arg6: memref<256x256xbf16, #tpu.memory_space<vmem>>, %arg7: memref<256x512xbf16, #tpu.memory_space<vmem>>, %arg8: memref<1x128xf32, #tpu.memory_space<vmem>>, %arg9: memref<1x128xf32, #tpu.memory_space<vmem>>, %arg10: memref<1x256xf32, #tpu.memory_space<vmem>>, %arg11: memref<1x256xf32, #tpu.memory_space<vmem>>, %arg12: memref<1x512xf32, #tpu.memory_space<vmem>>, %arg13: memref<1x512xf32, #tpu.memory_space<vmem>>, %arg14: memref<1x512xf32, #tpu.memory_space<vmem>>, %arg15: memref<512x256xbf16, #tpu.memory_space<vmem>>, %arg16: memref<1x256xf32, #tpu.memory_space<vmem>>, %arg17: memref<256x128xbf16, #tpu.memory_space<vmem>>, %arg18: memref<1x128xf32, #tpu.memory_space<vmem>>, %arg19: memref<1x1x128xf32, #tpu.memory_space<vmem>>, %arg20: memref<8x512xf32, #tpu.memory_space<vmem>>, %arg21: memref<8x512xf32, #tpu.memory_space<vmem>>) attributes {dimension_semantics = [#tpu.dimension_semantics<parallel>, #tpu.dimension_semantics<arbitrary>], iteration_bounds = array<i64: 2, 1>, scalar_prefetch = 0 : i64, scratch_operands = 2 : i64, tpu.core_type = #tpu.core_type<tc>, window_params = [{transform_indices = @transform_0, window_bounds = array<i64: 1, 504, 8>}, {pipeline_mode = #tpu.pipeline_mode<synchronous>, transform_indices = @transform_1, window_bounds = array<i64: 8, 128>}, {pipeline_mode = #tpu.pipeline_mode<synchronous>, transform_indices = @transform_2, window_bounds = array<i64: 128, 128>}, {pipeline_mode = #tpu.pipeline_mode<synchronous>, transform_indices = @transform_3, window_bounds = array<i64: 128, 256>}, {pipeline_mode = #tpu.pipeline_mode<synchronous>, transform_indices = @transform_4, window_bounds = array<i64: 256, 256>}, {pipeline_mode = #tpu.pipeline_mode<synchronous>, transform_indices = @transform_5, window_bounds = array<i64: 256, 512>}, {pipeline_mode = #tpu.pipeline_mode<synchronous>, transform_indices = @transform_6, window_bounds = array<i64: 1, 128>}, {pipeline_mode = #tpu.pipeline_mode<synchronous>, transform_indices = @transform_7, window_bounds = array<i64: 1, 128>}, {pipeline_mode = #tpu.pipeline_mode<synchronous>, transform_indices = @transform_8, window_bounds = array<i64: 1, 256>}, {pipeline_mode = #tpu.pipeline_mode<synchronous>, transform_indices = @transform_9, window_bounds = array<i64: 1, 256>}, {pipeline_mode = #tpu.pipeline_mode<synchronous>, transform_indices = @transform_10, window_bounds = array<i64: 1, 512>}, {pipeline_mode = #tpu.pipeline_mode<synchronous>, transform_indices = @transform_11, window_bounds = array<i64: 1, 512>}, {pipeline_mode = #tpu.pipeline_mode<synchronous>, transform_indices = @transform_12, window_bounds = array<i64: 1, 512>}, {pipeline_mode = #tpu.pipeline_mode<synchronous>, transform_indices = @transform_13, window_bounds = array<i64: 512, 256>}, {pipeline_mode = #tpu.pipeline_mode<synchronous>, transform_indices = @transform_14, window_bounds = array<i64: 1, 256>}, {pipeline_mode = #tpu.pipeline_mode<synchronous>, transform_indices = @transform_15, window_bounds = array<i64: 256, 128>}, {pipeline_mode = #tpu.pipeline_mode<synchronous>, transform_indices = @transform_16, window_bounds = array<i64: 1, 128>}, {transform_indices = @transform_17, window_bounds = array<i64: 1, 1, 128>}]} {
    %c0 = arith.constant 0 : index
    %c0_0 = arith.constant 0 : index
    %c0_1 = arith.constant 0 : index
    %0 = vector.load %arg2[%c0, %c0_0, %c0_1] : memref<1x504x8xbf16, #tpu.memory_space<vmem>>, vector<1x504x8xbf16>
    %1 = vector.shape_cast %0 : vector<1x504x8xbf16> to vector<504x8xbf16>
    %c0_2 = arith.constant 0 : index
    %c0_3 = arith.constant 0 : index
    %2 = vector.load %arg3[%c0_2, %c0_3] : memref<8x128xbf16, #tpu.memory_space<vmem>>, vector<8x128xbf16>
    %cst = arith.constant dense<0.000000e+00> : vector<504x128xf32>
    %3 = tpu.matmul %1, %2, %cst {dimension_numbers = #tpu.dot_dimension_numbers<[1], [0], [0], [1], [0, 0, 1, 1], [], []>} : vector<504x8xbf16>, vector<8x128xbf16>, vector<504x128xf32> -> vector<504x128xf32>
    %c0_4 = arith.constant 0 : index
    %c0_5 = arith.constant 0 : index
    %4 = vector.load %arg8[%c0_4, %c0_5] : memref<1x128xf32, #tpu.memory_space<vmem>>, vector<1x128xf32>
    %5 = vector.broadcast %4 : vector<1x128xf32> to vector<504x128xf32>
    %6 = arith.addf %3, %5 : vector<504x128xf32>
    %7 = arith.truncf %6 : vector<504x128xf32> to vector<504x128xbf16>
    %cst_6 = arith.constant 0.000000e+00 : bf16
    %8 = vector.broadcast %cst_6 : bf16 to vector<504x128xbf16>
    %9 = arith.maximumf %7, %8 : vector<504x128xbf16>
    %c0_7 = arith.constant 0 : index
    %c0_8 = arith.constant 0 : index
    %10 = vector.load %arg4[%c0_7, %c0_8] : memref<128x128xbf16, #tpu.memory_space<vmem>>, vector<128x128xbf16>
    %cst_9 = arith.constant dense<0.000000e+00> : vector<504x128xf32>
    %11 = tpu.matmul %9, %10, %cst_9 {dimension_numbers = #tpu.dot_dimension_numbers<[1], [0], [0], [1], [0, 0, 1, 1], [], []>} : vector<504x128xbf16>, vector<128x128xbf16>, vector<504x128xf32> -> vector<504x128xf32>
    %c0_10 = arith.constant 0 : index
    %c0_11 = arith.constant 0 : index
    %12 = vector.load %arg9[%c0_10, %c0_11] : memref<1x128xf32, #tpu.memory_space<vmem>>, vector<1x128xf32>
    %13 = vector.broadcast %12 : vector<1x128xf32> to vector<504x128xf32>
    %14 = arith.addf %11, %13 : vector<504x128xf32>
    %15 = arith.truncf %14 : vector<504x128xf32> to vector<504x128xbf16>
    %cst_12 = arith.constant 0.000000e+00 : bf16
    %16 = vector.broadcast %cst_12 : bf16 to vector<504x128xbf16>
    %17 = arith.maximumf %15, %16 : vector<504x128xbf16>
    %c0_13 = arith.constant 0 : index
    %c0_14 = arith.constant 0 : index
    %18 = vector.load %arg5[%c0_13, %c0_14] : memref<128x256xbf16, #tpu.memory_space<vmem>>, vector<128x256xbf16>
    %cst_15 = arith.constant dense<0.000000e+00> : vector<504x256xf32>
    %19 = tpu.matmul %17, %18, %cst_15 {dimension_numbers = #tpu.dot_dimension_numbers<[1], [0], [0], [1], [0, 0, 1, 1], [], []>} : vector<504x128xbf16>, vector<128x256xbf16>, vector<504x256xf32> -> vector<504x256xf32>
    %c0_16 = arith.constant 0 : index
    %c0_17 = arith.constant 0 : index
    %20 = vector.load %arg10[%c0_16, %c0_17] : memref<1x256xf32, #tpu.memory_space<vmem>>, vector<1x256xf32>
    %21 = vector.broadcast %20 : vector<1x256xf32> to vector<504x256xf32>
    %22 = arith.addf %19, %21 : vector<504x256xf32>
    %23 = arith.truncf %22 : vector<504x256xf32> to vector<504x256xbf16>
    %cst_18 = arith.constant 0.000000e+00 : bf16
    %24 = vector.broadcast %cst_18 : bf16 to vector<504x256xbf16>
    %25 = arith.maximumf %23, %24 : vector<504x256xbf16>
    %c0_19 = arith.constant 0 : index
    %c0_20 = arith.constant 0 : index
    %26 = vector.load %arg6[%c0_19, %c0_20] : memref<256x256xbf16, #tpu.memory_space<vmem>>, vector<256x256xbf16>
    %cst_21 = arith.constant dense<0.000000e+00> : vector<504x256xf32>
    %27 = tpu.matmul %25, %26, %cst_21 {dimension_numbers = #tpu.dot_dimension_numbers<[1], [0], [0], [1], [0, 0, 1, 1], [], []>} : vector<504x256xbf16>, vector<256x256xbf16>, vector<504x256xf32> -> vector<504x256xf32>
    %c0_22 = arith.constant 0 : index
    %c0_23 = arith.constant 0 : index
    %28 = vector.load %arg11[%c0_22, %c0_23] : memref<1x256xf32, #tpu.memory_space<vmem>>, vector<1x256xf32>
    %29 = vector.broadcast %28 : vector<1x256xf32> to vector<504x256xf32>
    %30 = arith.addf %27, %29 : vector<504x256xf32>
    %31 = arith.truncf %30 : vector<504x256xf32> to vector<504x256xbf16>
    %cst_24 = arith.constant 0.000000e+00 : bf16
    %32 = vector.broadcast %cst_24 : bf16 to vector<504x256xbf16>
    %33 = arith.maximumf %31, %32 : vector<504x256xbf16>
    %c0_25 = arith.constant 0 : index
    %c0_26 = arith.constant 0 : index
    %34 = vector.load %arg7[%c0_25, %c0_26] : memref<256x512xbf16, #tpu.memory_space<vmem>>, vector<256x512xbf16>
    %cst_27 = arith.constant dense<0.000000e+00> : vector<504x512xf32>
    %35 = tpu.matmul %33, %34, %cst_27 {dimension_numbers = #tpu.dot_dimension_numbers<[1], [0], [0], [1], [0, 0, 1, 1], [], []>} : vector<504x256xbf16>, vector<256x512xbf16>, vector<504x512xf32> -> vector<504x512xf32>
    %c0_28 = arith.constant 0 : index
    %c0_29 = arith.constant 0 : index
    %36 = vector.load %arg12[%c0_28, %c0_29] : memref<1x512xf32, #tpu.memory_space<vmem>>, vector<1x512xf32>
    %37 = vector.broadcast %36 : vector<1x512xf32> to vector<504x512xf32>
    %38 = arith.addf %35, %37 : vector<504x512xf32>
    %cst_30 = arith.constant 0.000000e+00 : f32
    %39 = vector.broadcast %cst_30 : f32 to vector<504x512xf32>
    %40 = arith.maximumf %38, %39 : vector<504x512xf32>
    %41 = vector.shape_cast %40 : vector<504x512xf32> to vector<63x8x512xf32>
    %cst_31 = arith.constant dense<0xFF800000> : vector<8x512xf32>
    %42 = vector.multi_reduction <maximumf>, %41, %cst_31 [0] : vector<63x8x512xf32> to vector<8x512xf32>
    %cst_32 = arith.constant dense<0x7F800000> : vector<8x512xf32>
    %43 = vector.multi_reduction <minimumf>, %41, %cst_32 [0] : vector<63x8x512xf32> to vector<8x512xf32>
    %c0_i32 = arith.constant 0 : i32
    %44 = arith.cmpi eq, %arg1, %c0_i32 : i32
    %45 = arith.extui %44 : i1 to i32
    %c0_i32_33 = arith.constant 0 : i32
    %46 = arith.cmpi ne, %45, %c0_i32_33 : i32
    scf.if %46 {
      %c0_38 = arith.constant 0 : index
      %c0_39 = arith.constant 0 : index
      %53 = vector.load %arg20[%c0_38, %c0_39] : memref<8x512xf32, #tpu.memory_space<vmem>>, vector<8x512xf32>
      tpu.vector_store %arg20[%c0_38, %c0_39], %42 {strides = array<i32>} : memref<8x512xf32, #tpu.memory_space<vmem>>, vector<8x512xf32>,
      %c0_40 = arith.constant 0 : index
      %c0_41 = arith.constant 0 : index
      %54 = vector.load %arg21[%c0_40, %c0_41] : memref<8x512xf32, #tpu.memory_space<vmem>>, vector<8x512xf32>
      tpu.vector_store %arg21[%c0_40, %c0_41], %43 {strides = array<i32>} : memref<8x512xf32, #tpu.memory_space<vmem>>, vector<8x512xf32>,
    } else {
    }
    %c0_i32_34 = arith.constant 0 : i32
    %47 = arith.cmpi sgt, %arg1, %c0_i32_34 : i32
    %48 = arith.extui %47 : i1 to i32
    %c0_i32_35 = arith.constant 0 : i32
    %49 = arith.cmpi ne, %48, %c0_i32_35 : i32
    scf.if %49 {
      %c0_38 = arith.constant 0 : index
      %c0_39 = arith.constant 0 : index
      %53 = vector.load %arg20[%c0_38, %c0_39] : memref<8x512xf32, #tpu.memory_space<vmem>>, vector<8x512xf32>
      %54 = arith.maximumf %53, %42 : vector<8x512xf32>
      %c0_40 = arith.constant 0 : index
      %c0_41 = arith.constant 0 : index
      %55 = vector.load %arg20[%c0_40, %c0_41] : memref<8x512xf32, #tpu.memory_space<vmem>>, vector<8x512xf32>
      tpu.vector_store %arg20[%c0_40, %c0_41], %54 {strides = array<i32>} : memref<8x512xf32, #tpu.memory_space<vmem>>, vector<8x512xf32>,
      %c0_42 = arith.constant 0 : index
      %c0_43 = arith.constant 0 : index
      %56 = vector.load %arg21[%c0_42, %c0_43] : memref<8x512xf32, #tpu.memory_space<vmem>>, vector<8x512xf32>
      %57 = arith.minimumf %56, %43 : vector<8x512xf32>
      %c0_44 = arith.constant 0 : index
      %c0_45 = arith.constant 0 : index
      %58 = vector.load %arg21[%c0_44, %c0_45] : memref<8x512xf32, #tpu.memory_space<vmem>>, vector<8x512xf32>
      tpu.vector_store %arg21[%c0_44, %c0_45], %57 {strides = array<i32>} : memref<8x512xf32, #tpu.memory_space<vmem>>, vector<8x512xf32>,
    } else {
    }
    %c0_i32_36 = arith.constant 0 : i32
    %50 = arith.cmpi eq, %arg1, %c0_i32_36 : i32
    %51 = arith.extui %50 : i1 to i32
    %c0_i32_37 = arith.constant 0 : i32
    %52 = arith.cmpi ne, %51, %c0_i32_37 : i32
    scf.if %52 {
      %c0_38 = arith.constant 0 : index
      %c0_39 = arith.constant 0 : index
      %53 = vector.load %arg20[%c0_38, %c0_39] : memref<8x512xf32, #tpu.memory_space<vmem>>, vector<8x512xf32>
      %cst_40 = arith.constant dense<0xFF800000> : vector<512xf32>
      %54 = vector.multi_reduction <maximumf>, %53, %cst_40 [0] : vector<8x512xf32> to vector<512xf32>
      %55 = vector.shape_cast %54 : vector<512xf32> to vector<1x512xf32>
      %c0_41 = arith.constant 0 : index
      %c0_42 = arith.constant 0 : index
      %56 = vector.load %arg21[%c0_41, %c0_42] : memref<8x512xf32, #tpu.memory_space<vmem>>, vector<8x512xf32>
      %cst_43 = arith.constant dense<0x7F800000> : vector<512xf32>
      %57 = vector.multi_reduction <minimumf>, %56, %cst_43 [0] : vector<8x512xf32> to vector<512xf32>
      %58 = vector.shape_cast %57 : vector<512xf32> to vector<1x512xf32>
      %c0_44 = arith.constant 0 : index
      %c0_45 = arith.constant 0 : index
      %59 = vector.load %arg13[%c0_44, %c0_45] : memref<1x512xf32, #tpu.memory_space<vmem>>, vector<1x512xf32>
      %c0_46 = arith.constant 0 : index
      %c0_47 = arith.constant 0 : index
      %60 = vector.load %arg14[%c0_46, %c0_47] : memref<1x512xf32, #tpu.memory_space<vmem>>, vector<1x512xf32>
      %c0_48 = arith.constant 0 : index
      %c0_49 = arith.constant 0 : index
      %61 = vector.load %arg15[%c0_48, %c0_49] : memref<512x256xbf16, #tpu.memory_space<vmem>>, vector<512x256xbf16>
      %c0_50 = arith.constant 0 : index
      %c0_51 = arith.constant 0 : index
      %62 = vector.load %arg16[%c0_50, %c0_51] : memref<1x256xf32, #tpu.memory_space<vmem>>, vector<1x256xf32>
      %c0_52 = arith.constant 0 : index
      %c0_53 = arith.constant 0 : index
      %63 = vector.load %arg17[%c0_52, %c0_53] : memref<256x128xbf16, #tpu.memory_space<vmem>>, vector<256x128xbf16>
      %c0_54 = arith.constant 0 : index
      %c0_55 = arith.constant 0 : index
      %64 = vector.load %arg18[%c0_54, %c0_55] : memref<1x128xf32, #tpu.memory_space<vmem>>, vector<1x128xf32>
      %cst_56 = arith.constant 0.000000e+00 : f32
      %65 = vector.broadcast %cst_56 : f32 to vector<1x512xf32>
      %66 = arith.cmpf oge, %59, %65 : vector<1x512xf32>
      %67 = arith.mulf %59, %55 : vector<1x512xf32>
      %68 = arith.mulf %59, %58 : vector<1x512xf32>
      %69 = arith.select %66, %67, %68 : vector<1x512xi1>, vector<1x512xf32>
      %70 = arith.addf %69, %60 : vector<1x512xf32>
      %71 = arith.truncf %70 : vector<1x512xf32> to vector<1x512xbf16>
      %cst_57 = arith.constant dense<0.000000e+00> : vector<1x256xf32>
      %72 = tpu.matmul %71, %61, %cst_57 {dimension_numbers = #tpu.dot_dimension_numbers<[1], [0], [0], [1], [0, 0, 1, 1], [], []>} : vector<1x512xbf16>, vector<512x256xbf16>, vector<1x256xf32> -> vector<1x256xf32>
      %73 = arith.addf %72, %62 : vector<1x256xf32>
      %cst_58 = arith.constant 0.000000e+00 : f32
      %74 = vector.broadcast %cst_58 : f32 to vector<1x256xf32>
      %75 = arith.maximumf %73, %74 : vector<1x256xf32>
      %76 = arith.truncf %75 : vector<1x256xf32> to vector<1x256xbf16>
      %cst_59 = arith.constant dense<0.000000e+00> : vector<1x128xf32>
      %77 = tpu.matmul %76, %63, %cst_59 {dimension_numbers = #tpu.dot_dimension_numbers<[1], [0], [0], [1], [0, 0, 1, 1], [], []>} : vector<1x256xbf16>, vector<256x128xbf16>, vector<1x128xf32> -> vector<1x128xf32>
      %78 = arith.addf %77, %64 : vector<1x128xf32>
      %79 = vector.shape_cast %78 : vector<1x128xf32> to vector<1x1x128xf32>
      %c0_60 = arith.constant 0 : index
      %c0_61 = arith.constant 0 : index
      %c0_62 = arith.constant 0 : index
      %80 = vector.load %arg19[%c0_60, %c0_61, %c0_62] : memref<1x1x128xf32, #tpu.memory_space<vmem>>, vector<1x1x128xf32>
      tpu.vector_store %arg19[%c0_60, %c0_61, %c0_62], %79 {strides = array<i32>} : memref<1x1x128xf32, #tpu.memory_space<vmem>>, vector<1x1x128xf32>,
    } else {
    }
    return
  }
  func.func @transform_0(%arg0: i32, %arg1: i32) -> (i32, i32, i32) {
    %c0_i32 = arith.constant 0 : i32
    %c0_i32_0 = arith.constant 0 : i32
    return %arg0, %arg1, %c0_i32 : i32, i32, i32
  }
  func.func @transform_1(%arg0: i32, %arg1: i32) -> (i32, i32) {
    %c0_i32 = arith.constant 0 : i32
    %c0_i32_0 = arith.constant 0 : i32
    %c0_i32_1 = arith.constant 0 : i32
    return %c0_i32, %c0_i32_0 : i32, i32
  }
  func.func @transform_2(%arg0: i32, %arg1: i32) -> (i32, i32) {
    %c0_i32 = arith.constant 0 : i32
    %c0_i32_0 = arith.constant 0 : i32
    %c0_i32_1 = arith.constant 0 : i32
    return %c0_i32, %c0_i32_0 : i32, i32
  }
  func.func @transform_3(%arg0: i32, %arg1: i32) -> (i32, i32) {
    %c0_i32 = arith.constant 0 : i32
    %c0_i32_0 = arith.constant 0 : i32
    %c0_i32_1 = arith.constant 0 : i32
    return %c0_i32, %c0_i32_0 : i32, i32
  }
  func.func @transform_4(%arg0: i32, %arg1: i32) -> (i32, i32) {
    %c0_i32 = arith.constant 0 : i32
    %c0_i32_0 = arith.constant 0 : i32
    %c0_i32_1 = arith.constant 0 : i32
    return %c0_i32, %c0_i32_0 : i32, i32
  }
  func.func @transform_5(%arg0: i32, %arg1: i32) -> (i32, i32) {
    %c0_i32 = arith.constant 0 : i32
    %c0_i32_0 = arith.constant 0 : i32
    %c0_i32_1 = arith.constant 0 : i32
    return %c0_i32, %c0_i32_0 : i32, i32
  }
  func.func @transform_6(%arg0: i32, %arg1: i32) -> (i32, i32) {
    %c0_i32 = arith.constant 0 : i32
    %c0_i32_0 = arith.constant 0 : i32
    %c0_i32_1 = arith.constant 0 : i32
    return %c0_i32, %c0_i32_0 : i32, i32
  }
  func.func @transform_7(%arg0: i32, %arg1: i32) -> (i32, i32) {
    %c0_i32 = arith.constant 0 : i32
    %c0_i32_0 = arith.constant 0 : i32
    %c0_i32_1 = arith.constant 0 : i32
    return %c0_i32, %c0_i32_0 : i32, i32
  }
  func.func @transform_8(%arg0: i32, %arg1: i32) -> (i32, i32) {
    %c0_i32 = arith.constant 0 : i32
    %c0_i32_0 = arith.constant 0 : i32
    %c0_i32_1 = arith.constant 0 : i32
    return %c0_i32, %c0_i32_0 : i32, i32
  }
  func.func @transform_9(%arg0: i32, %arg1: i32) -> (i32, i32) {
    %c0_i32 = arith.constant 0 : i32
    %c0_i32_0 = arith.constant 0 : i32
    %c0_i32_1 = arith.constant 0 : i32
    return %c0_i32, %c0_i32_0 : i32, i32
  }
  func.func @transform_10(%arg0: i32, %arg1: i32) -> (i32, i32) {
    %c0_i32 = arith.constant 0 : i32
    %c0_i32_0 = arith.constant 0 : i32
    %c0_i32_1 = arith.constant 0 : i32
    return %c0_i32, %c0_i32_0 : i32, i32
  }
  func.func @transform_11(%arg0: i32, %arg1: i32) -> (i32, i32) {
    %c0_i32 = arith.constant 0 : i32
    %c0_i32_0 = arith.constant 0 : i32
    %c0_i32_1 = arith.constant 0 : i32
    return %c0_i32, %c0_i32_0 : i32, i32
  }
  func.func @transform_12(%arg0: i32, %arg1: i32) -> (i32, i32) {
    %c0_i32 = arith.constant 0 : i32
    %c0_i32_0 = arith.constant 0 : i32
    %c0_i32_1 = arith.constant 0 : i32
    return %c0_i32, %c0_i32_0 : i32, i32
  }
  func.func @transform_13(%arg0: i32, %arg1: i32) -> (i32, i32) {
    %c0_i32 = arith.constant 0 : i32
    %c0_i32_0 = arith.constant 0 : i32
    %c0_i32_1 = arith.constant 0 : i32
    return %c0_i32, %c0_i32_0 : i32, i32
  }
  func.func @transform_14(%arg0: i32, %arg1: i32) -> (i32, i32) {
    %c0_i32 = arith.constant 0 : i32
    %c0_i32_0 = arith.constant 0 : i32
    %c0_i32_1 = arith.constant 0 : i32
    return %c0_i32, %c0_i32_0 : i32, i32
  }
  func.func @transform_15(%arg0: i32, %arg1: i32) -> (i32, i32) {
    %c0_i32 = arith.constant 0 : i32
    %c0_i32_0 = arith.constant 0 : i32
    %c0_i32_1 = arith.constant 0 : i32
    return %c0_i32, %c0_i32_0 : i32, i32
  }
  func.func @transform_16(%arg0: i32, %arg1: i32) -> (i32, i32) {
    %c0_i32 = arith.constant 0 : i32
    %c0_i32_0 = arith.constant 0 : i32
    %c0_i32_1 = arith.constant 0 : i32
    return %c0_i32, %c0_i32_0 : i32, i32
  }
  func.func @transform_17(%arg0: i32, %arg1: i32) -> (i32, i32, i32) {
    %c0_i32 = arith.constant 0 : i32
    %c0_i32_0 = arith.constant 0 : i32
    %c0_i32_1 = arith.constant 0 : i32
    return %arg0, %c0_i32, %c0_i32_0 : i32, i32, i32
  }
}

</mosaic_0001>

<bundles_post_ra>
// kernel: encoder_forward.1
= control target key start
LH: loop header
LB: loop body
LE: loop exit
PB: predicated region body
PF: predicated region fallthrough
CT: control target
= control target key end

     0   :  { %s6695_s24 = smov 0   ;;  %s6697_s25 = smov 0   ;;  %s8860_s0 = inlined_call_operand.vmem [shape: bf16[2,504,8], index: 0, kind: input, shape index: {}]   ;;  %s8861_s1 = inlined_call_operand.vmem [shape: bf16[8,128], index: 1, kind: input, shape index: {}]   ;;  %s8862_s2 = inlined_call_operand.vmem [shape: bf16[128,128], index: 2, kind: input, shape index: {}]   ;;  %s8863_s3 = inlined_call_operand.vmem [shape: bf16[128,256], index: 3, kind: input, shape index: {}]   ;;  %s8864_s4 = inlined_call_operand.vmem [shape: bf16[256,256], index: 4, kind: input, shape index: {}]   ;;  %s8865_s5 = inlined_call_operand.vmem [shape: bf16[256,512], index: 5, kind: input, shape index: {}]   ;;  %s8866_s6 = inlined_call_operand.vmem [shape: f32[1,128], index: 6, kind: input, shape index: {}]   ;;  %s8867_s7 = inlined_call_operand.vmem [shape: f32[1,128], index: 7, kind: input, shape index: {}]   ;;  %s8868_s8 = inlined_call_operand.vmem [shape: f32[1,256], index: 8, kind: input, shape index: {}]   ;;  %s8869_s9 = inlined_call_operand.vmem [shape: f32[1,256], index: 9, kind: input, shape index: {}]   ;;  %s8870_s10 = inlined_call_operand.vmem [shape: f32[1,512], index: 10, kind: input, shape index: {}]   ;;  %s8871_s11 = inlined_call_operand.vmem [shape: f32[1,512], index: 11, kind: input, shape index: {}]   ;;  %s8872_s12 = inlined_call_operand.vmem [shape: f32[1,512], index: 12, kind: input, shape index: {}]   ;;  %s8873_s13 = inlined_call_operand.vmem [shape: bf16[512,256], index: 13, kind: input, shape index: {}]   ;;  %s8874_s14 = inlined_call_operand.vmem [shape: f32[1,256], index: 14, kind: input, shape index: {}]   ;;  %s8875_s15 = inlined_call_operand.vmem [shape: bf16[256,128], index: 15, kind: input, shape index: {}]   ;;  %s8876_s16 = inlined_call_operand.vmem [shape: f32[1,128], index: 16, kind: input, shape index: {}]   ;;  %s8877_s17 = inlined_call_operand.vmem [shape: f32[2,1,128], index: 17, kind: output, shape index: {}]  }
   0x1   :  { %8878 = sst [smem:[#allocation4_spill]] %s8860_s0  ;;  %s6699_s26 = smov 0  }
   0x2   :  { %8879 = sst [smem:[#allocation5_spill]] %s8861_s1 }
   0x3 LB: > { %s39_s27 = sadd.s32 1, %s6597_s25  ;;  %p5711_p0 = scmp.ge.s32.totalorder %s6601_s26, 1  ;;  %s6601_s26 = sphi %s6699_s26, %s27_s26   ;;  %s6597_s25 = sphi %s6697_s25, %s8883_s25   ;;  %s6593_s24 = sphi %s6695_s24, %s8882_s24  }
   0x4   : > { %p41_p1 = scmp.ge.s32.totalorder %s39_s27, 2  ;;  %p506_p2 = scmp.lt.s32.totalorder %s6601_s26, 3 }
   0x6   : > { %s8885_s27 = smov (%p41_p1, %s39_s27), 0  ;;  %p507_p3 = pnand %p5711_p0, %p506_p2 }
   0x7   : > { %s8880_s0 = sld [smem:[#allocation5_spill]] (!%p507_p3)  ;;  %vm900_vm0 = vcmask (!%p507_p3), 1043456   ;;  %p561_p4 = scmp.lt.s32.totalorder (!%p507_p3), %s6593_s24, 1  ;;  %v6285_v1 = vld [vmem:[%s8862_s2] sm:$0xff] (!%p507_p3)   ;;  %vm803_vm1 = vcmask (!%p507_p3), 64512   ;;  %v6288_v13 = vld [vmem:[%s8862_s2 + $0x8] sm:$0xff] (!%p507_p3)  }
   0x8   : > { %510 = sbr.rel (%p507_p3) target bundleno = 1941 (0x795), region = 88  ;;  %s8881_s21 = sld [smem:[#allocation4_spill]] (!%p507_p3)  ;;  %v6289_v16 = vld [vmem:[%s8862_s2 + $0x10] sm:$0xff] (!%p507_p3)   ;;  %v6292_v21 = vld [vmem:[%s8862_s2 + $0x18] sm:$0xff] (!%p507_p3)   ;;  %v6293_v22 = vld [vmem:[%s8862_s2 + $0x20] sm:$0xff] (!%p507_p3)   ;;  %v6603_v42 = vmov (!%p507_p3), 0  }
   0x9   : > { %v6296_v27 = vld [vmem:[%s8862_s2 + $0x28] sm:$0xff] (!%p507_p3)   ;;  %v6297_v40 = vld [vmem:[%s8862_s2 + $0x30] sm:$0xff] (!%p507_p3)   ;;  %v6298_v41 = vld [vmem:[%s8862_s2 + $0x38] sm:$0xff] (!%p507_p3)  }
   0xa   : > { %v6299_v43 = vld [vmem:[%s8863_s3] ss:$8 sps:$4 sm:$0xff] (!%p507_p3)   ;;  %v6301_v44 = vld [vmem:[%s8863_s3 + $0x4] ss:$8 sps:$4 sm:$0xff] (!%p507_p3)   ;;  %v6302_v45 = vld [vmem:[%s8863_s3 + $0x10] ss:$8 sps:$4 sm:$0xff] (!%p507_p3)  }
   0xb   : > { %v6304_v46 = vld [vmem:[%s8863_s3 + $0x14] ss:$8 sps:$4 sm:$0xff] (!%p507_p3)   ;;  %v6305_v47 = vld [vmem:[%s8863_s3 + $0x20] ss:$8 sps:$4 sm:$0xff] (!%p507_p3)   ;;  %v6307_v48 = vld [vmem:[%s8863_s3 + $0x24] ss:$8 sps:$4 sm:$0xff] (!%p507_p3)  }
   0xc   : > { %v6308_v49 = vld [vmem:[%s8863_s3 + $0x30] ss:$8 sps:$4 sm:$0xff] (!%p507_p3)   ;;  %v6310_v50 = vld [vmem:[%s8863_s3 + $0x34] ss:$8 sps:$4 sm:$0xff] (!%p507_p3)   ;;  %v6311_v51 = vld [vmem:[%s8863_s3 + $0x40] ss:$8 sps:$4 sm:$0xff] (!%p507_p3)  }
   0xd   : > { %v637_v0 = vld [vmem:[%s8880_s0] sm:$0xf] (!%p507_p3)  ;;  %v6313_v52 = vld [vmem:[%s8863_s3 + $0x44] ss:$8 sps:$4 sm:$0xff] (!%p507_p3)   ;;  %v6314_v53 = vld [vmem:[%s8863_s3 + $0x50] ss:$8 sps:$4 sm:$0xff] (!%p507_p3)  }
   0xe   : > { %6230 = vmatprep.subr.msk.bf16.mxu0 (!%p507_p3), %vm900_vm0, %v637_v0  ;;  %v902_v2 = vsel (!%p507_p3), %vm900_vm0, %v637_v0, 0  ;;  %6231 = vmatprep.subr.msk.bf16.mxu1 (!%p507_p3), %vm900_vm0, %v637_v0  ;;  %v6316_v54 = vld [vmem:[%s8863_s3 + $0x54] ss:$8 sps:$4 sm:$0xff] (!%p507_p3)   ;;  %v6317_v55 = vld [vmem:[%s8863_s3 + $0x60] ss:$8 sps:$4 sm:$0xff] (!%p507_p3)  }
   0xf   : > { %6077 = vmatpush3.bf16.msra.mxu0 %v902_v2  ;;  %s8887_s24 = smov (!%p561_p4, %s6593_s24), 1  ;;  %6223 = vmatpush3.bf16.msra.mxu1 %v902_v2  ;;  %v6319_v56 = vld [vmem:[%s8863_s3 + $0x64] ss:$8 sps:$4 sm:$0xff]   ;;  %v6858_v58 = vld [vmem:[%s8866_s6] ss:$0 sm:$0xff] }
  0x10   : > { %6142 = vmatprep.subr.bf16.mxu1 %v6285_v1  ;;  %s6232_s19 = smul.u32 252, %s8887_s24  ;;  %1787 = vmatprep.subr.bf16.mxu0 %v6301_v44  ;;  %v6320_v0 = vld [vmem:[%s8863_s3 + $0x70] ss:$8 sps:$4 sm:$0xff]   ;;  %s572_s28 = scalar_lea.vmem %s8877_s17, %s8887_s24 }
  0x12   : > { %s6725_s22 = scalar_lea.vmem %s8881_s21, %s6232_s19 }
  0x13   : > { %v6259_v3 = vld [vmem:[%s6725_s22] sm:$0xff]   ;;  %v6260_v4 = vld [vmem:[%s6725_s22 + $0x8] sm:$0xff]   ;;  %v6261_v5 = vld [vmem:[%s6725_s22 + $0x10] sm:$0xff]  }
  0x14   : > { %6078 = vmatprep.mubr.msk.bf16.mxu0 %vm803_vm1, %v6259_v3  ;;  %v6262_v6 = vld [vmem:[%s6725_s22 + $0x18] sm:$0xff]   ;;  %v6263_v7 = vld [vmem:[%s6725_s22 + $0x20] sm:$0xff]   ;;  %v6264_v8 = vld [vmem:[%s6725_s22 + $0x28] sm:$0xff]  }
  0x15   : > { %6079 = vmatmul.mubr.msk.bf16.vlgmr.msra.gmra.mrb[0].mxu0 %vm803_vm1, %v6260_v4  ;;  %v6265_v9 = vld [vmem:[%s6725_s22 + $0x30] sm:$0xff]   ;;  %v6266_v10 = vld [vmem:[%s6725_s22 + $0x38] sm:$0xff]   ;;  %v6267_v11 = vld [vmem:[%s6725_s22 + $0x40] sm:$0xff]  }
  0x16   : > { %6082 = vmatprep.mubr.msk.bf16.mxu0 %vm803_vm1, %v6261_v5  ;;  %v6283_v12 = vld [vmem:[%s6725_s22 + $0xc0] sm:$0xff]   ;;  %v6284_v14 = vld [vmem:[%s6725_s22 + $0xc8] sm:$0xff]   ;;  %v6286_v15 = vld [vmem:[%s6725_s22 + $0xd0] sm:$0xff]   ;;  %1788 = vmatpush1.bf16.msra.mxu0 %v6299_v43 }
  0x17   : > { %6126 = vmatprep.mubr.msk.bf16.mxu1 %vm803_vm1, %v6283_v12  ;;  %v6268_v17 = vld [vmem:[%s6725_s22 + $0x48] sm:$0xff]   ;;  %v6269_v18 = vld [vmem:[%s6725_s22 + $0x50] sm:$0xff]   ;;  %v6287_v19 = vld [vmem:[%s6725_s22 + $0xd8] sm:$0xff]   ;;  %1789 = vmatprep.subr.bf16.mxu0 %v6304_v46 }
  0x18   : > { %6127 = vmatmul.mubr.msk.bf16.vlgmr.msra.gmra.mrb[0].mxu1 %vm803_vm1, %v6284_v14  ;;  %v6290_v20 = vld [vmem:[%s6725_s22 + $0xe0] sm:$0xff]   ;;  %v6270_v23 = vld [vmem:[%s6725_s22 + $0x58] sm:$0xff]   ;;  %v6291_v24 = vld [vmem:[%s6725_s22 + $0xe8] sm:$0xff]  }
  0x19   : > { %6130 = vmatprep.mubr.msk.bf16.mxu1 %vm803_vm1, %v6286_v15  ;;  %6143 = vmatpush3.bf16.msra.mxu1 %v6285_v1  ;;  %v6271_v25 = vld [vmem:[%s6725_s22 + $0x60] sm:$0xff]   ;;  %v6294_v26 = vld [vmem:[%s6725_s22 + $0xf0] sm:$0xff]   ;;  %v6272_v28 = vld [vmem:[%s6725_s22 + $0x68] sm:$0xff]  }
  0x1a   : > { %6144 = vmatprep.subr.bf16.mxu1 %v6288_v13  ;;  %v6295_v29 = vld [vmem:[%s6725_s22 + $0xf8] ss:$0 sps:$4 sm:$0xff]   ;;  %v6273_v30 = vld [vmem:[%s6725_s22 + $0x70] sm:$0xff]   ;;  %v6275_v32 = vld [vmem:[%s6725_s22 + $0x80] sm:$0xff]   ;;  %1790 = vmatpush1.bf16.msra.mxu0 %v6302_v45 }
  0x1b   : > { %v6274_v31 = vld [vmem:[%s6725_s22 + $0x78] sm:$0xff]   ;;  %v6276_v33 = vld [vmem:[%s6725_s22 + $0x88] sm:$0xff]   ;;  %v6277_v34 = vld [vmem:[%s6725_s22 + $0x90] sm:$0xff]   ;;  %1791 = vmatprep.subr.bf16.mxu0 %v6307_v48 }
  0x1c   : > { %v6278_v35 = vld [vmem:[%s6725_s22 + $0x98] sm:$0xff]   ;;  %v6279_v36 = vld [vmem:[%s6725_s22 + $0xa0] sm:$0xff]   ;;  %v6280_v37 = vld [vmem:[%s6725_s22 + $0xa8] sm:$0xff]  }
  0x1d   : > { %6083 = vmatmul.mubr.msk.bf16.gmra.mrb[4].mxu0 %vm803_vm1, %v6262_v6  ;;  %6145 = vmatpush3.bf16.msra.mxu1 %v6288_v13  ;;  %v6281_v38 = vld [vmem:[%s6725_s22 + $0xb0] sm:$0xff]   ;;  %v6282_v39 = vld [vmem:[%s6725_s22 + $0xb8] sm:$0xff]  }
  0x1e   : > { %6086 = vmatprep.mubr.msk.bf16.mxu0 %vm803_vm1, %v6263_v7  ;;  %6146 = vmatprep.subr.bf16.mxu1 %v6289_v16  ;;  %v6322_v1 = vld [vmem:[%s8863_s3 + $0x74] ss:$8 sps:$4 sm:$0xff]  }
  0x1f   : > { %1792 = vmatpush1.bf16.msra.mxu0 %v6305_v47 }
  0x20   : > { %6131 = vmatmul.mubr.msk.bf16.gmra.mrb[4].mxu1 %vm803_vm1, %v6287_v19  ;;  %1793 = vmatprep.subr.bf16.mxu0 %v6310_v50 }
  0x21   : > { %6134 = vmatprep.mubr.msk.bf16.mxu1 %vm803_vm1, %v6290_v20  ;;  %6147 = vmatpush3.bf16.msra.mxu1 %v6289_v16 }
  0x22   : > { %6148 = vmatprep.subr.bf16.mxu1 %v6292_v21 }
  0x23   : > { %1794 = vmatpush1.bf16.msra.mxu0 %v6308_v49 }
  0x24   : > { %1795 = vmatprep.subr.bf16.mxu0 %v6313_v52 }
  0x25   : > { %6087 = vmatmul.mubr.msk.bf16.gmra.mrb[8].mxu0 %vm803_vm1, %v6264_v8  ;;  %6149 = vmatpush3.bf16.msra.mxu1 %v6292_v21 }
  0x26   : > { %6090 = vmatprep.mubr.msk.bf16.mxu0 %vm803_vm1, %v6265_v9  ;;  %6150 = vmatprep.subr.bf16.mxu1 %v6293_v22 }
  0x27   : > { %1796 = vmatpush1.bf16.msra.mxu0 %v6311_v51 }
  0x28   : > { %6135 = vmatmul.mubr.msk.bf16.gmra.mrb[8].mxu1 %vm803_vm1, %v6291_v24  ;;  %1797 = vmatprep.subr.bf16.mxu0 %v6316_v54 }
  0x29   : > { %6138 = vmatprep.mubr.msk.bf16.mxu1 %vm803_vm1, %v6294_v26  ;;  %6151 = vmatpush3.bf16.msra.mxu1 %v6293_v22 }
  0x2a   : > { %6152 = vmatprep.subr.bf16.mxu1 %v6296_v27 }
  0x2b   : > { %1798 = vmatpush1.bf16.msra.mxu0 %v6314_v53 }
  0x2c   : > { %1799 = vmatprep.subr.bf16.mxu0 %v6319_v56 }
  0x2d   : > { %6091 = vmatmul.mubr.msk.bf16.gmra.mrb[12].mxu0 %vm803_vm1, %v6266_v10  ;;  %6153 = vmatpush3.bf16.msra.mxu1 %v6296_v27 }
  0x2e   : > { %6094 = vmatprep.mubr.msk.bf16.mxu0 %vm803_vm1, %v6267_v11  ;;  %6154 = vmatprep.subr.bf16.mxu1 %v6297_v40 }
  0x2f   : > { %1800 = vmatpush1.bf16.msra.mxu0 %v6317_v55 }
  0x30   : > { %6139 = vmatmul.mubr.msk.bf16.gmra.mrb[12].mxu1 %vm803_vm1, %v6295_v29  ;;  %1801 = vmatprep.subr.bf16.mxu0 %v6322_v1 }
  0x31   : > { %6155 = vmatpush3.bf16.msra.mxu1 %v6297_v40 }
  0x32   : > { %6156 = vmatprep.subr.bf16.mxu1 %v6298_v41 }
  0x33   : > { %1802 = vmatpush1.bf16.msra.mxu0 %v6320_v0 }
  0x35   : > { %6095 = vmatmul.mubr.msk.bf16.gmra.mrb[16].mxu0 %vm803_vm1, %v6268_v17  ;;  %6157 = vmatpush3.bf16.msra.mxu1 %v6298_v41 }
  0x36   : > { %6098 = vmatprep.mubr.msk.bf16.mxu0 %vm803_vm1, %v6269_v18 }
  0x3d   : > { %6099 = vmatmul.mubr.msk.bf16.gmra.mrb[20].mxu0 %vm803_vm1, %v6270_v23 }
  0x3e   : > { %6102 = vmatprep.mubr.msk.bf16.mxu0 %vm803_vm1, %v6271_v25 }
  0x45   : > { %6103 = vmatmul.mubr.msk.bf16.gmra.mrb[24].mxu0 %vm803_vm1, %v6272_v28 }
  0x46   : > { %6106 = vmatprep.mubr.msk.bf16.mxu0 %vm803_vm1, %v6273_v30 }
  0x4d   : > { %6107 = vmatmul.mubr.msk.bf16.gmra.mrb[28].mxu0 %vm803_vm1, %v6274_v31 }
  0x4e   : > { %6110 = vmatprep.mubr.msk.bf16.mxu0 %vm803_vm1, %v6275_v32 }
  0x55   : > { %6111 = vmatmul.mubr.msk.bf16.gmra.mrb[32].mxu0 %vm803_vm1, %v6276_v33 }
  0x56   : > { %6114 = vmatprep.mubr.msk.bf16.mxu0 %vm803_vm1, %v6277_v34 }
  0x5d   : > { %6115 = vmatmul.mubr.msk.bf16.gmra.mrb[36].mxu0 %vm803_vm1, %v6278_v35 }
  0x5e   : > { %6118 = vmatprep.mubr.msk.bf16.mxu0 %vm803_vm1, %v6279_v36 }
  0x65   : > { %6119 = vmatmul.mubr.msk.bf16.gmra.mrb[40].mxu0 %vm803_vm1, %v6280_v37 }
  0x66   : > { %6122 = vmatprep.mubr.msk.bf16.mxu0 %vm803_vm1, %v6281_v38 }
  0x6d   : > { %6123 = vmatmul.mubr.msk.bf16.gmra.mrb[44].mxu0 %vm803_vm1, %v6282_v39 }
  0x6e   : > { %1819 = vmatprep.mubr.bf16.mxu0 %v6603_v42 }
  0xe8   : > { %v6080_v57 = vpop.f32.mrb[0].mxu0 }
  0xe9   : > { %v938_v59 = vpop.f32.mrb[1].mxu0  ;;  %v947_v61 = vadd.f32 %v6080_v57, %v6858_v58 }
  0xea   : > { %v6081_v60 = vpop.f32.mrb[2].mxu0  ;;  %v939_v2 = vadd.f32 %v6858_v58, %v938_v59 }
  0xeb   : > { %v950_v62 = vadd.f32 %v6081_v60, %v6858_v58  ;;  %v941_v63 = vpop.f32.mrb[3].mxu0  ;;  %v6128_v33 = vpop.f32.mrb[0].mxu1 }
  0xec   : > { %v942_v3 = vadd.f32 %v6858_v58, %v941_v63  ;;  %v6886_v36 = vadd.f32 %v6128_v33, %v6858_v58  ;;  %v1130_v37 = vpop.f32.mrb[1].mxu1 }
  0xed   : > { %v1193_v4 = vpack.c.bf16 %v950_v62, %v947_v61  ;;  %v6890_v40 = vadd.f32 %v6858_v58, %v1130_v37  ;;  %v6129_v41 = vpop.f32.mrb[2].mxu1 }
  0xee   : > { %v1192_v5 = vpack.c.bf16 %v942_v3, %v939_v2  ;;  %v6894_v45 = vadd.f32 %v6129_v41, %v6858_v58  ;;  %v1133_v46 = vpop.f32.mrb[3].mxu1 }
  0xef   : > { %v1225_v8 = vmax.bf16 %v6603_v42, %v1193_v4  ;;  %v6898_v48 = vadd.f32 %v6858_v58, %v1133_v46 }
  0xf0   : > { %v6084_v6 = vpop.f32.mrb[4].mxu0  ;;  %v1224_v7 = vmax.bf16 %v6603_v42, %v1192_v5  ;;  %v1217_v50 = vpack.c.bf16 %v6894_v45, %v6886_v36 }
  0xf1   : > { %v963_v9 = vadd.f32 %v6084_v6, %v6858_v58  ;;  %v954_v10 = vpop.f32.mrb[5].mxu0  ;;  %v1216_v52 = vpack.c.bf16 %v6898_v48, %v6890_v40 }
  0xf2   : > { %v955_v11 = vadd.f32 %v6858_v58, %v954_v10  ;;  %6158 = vmatprep.mubr.bf16.mxu1 %v1224_v7  ;;  %v6085_v12 = vpop.f32.mrb[6].mxu0 }
  0xf3   : > { %v966_v13 = vadd.f32 %v6085_v12, %v6858_v58  ;;  %6159 = vmatmul.mubr.bf16.vlgmr.msra.gmra.mrb[16].mxu1 %v1225_v8  ;;  %v957_v14 = vpop.f32.mrb[7].mxu0  ;;  %v6132_v56 = vpop.f32.mrb[4].mxu1 }
  0xf4   : > { %v958_v15 = vadd.f32 %v6858_v58, %v957_v14  ;;  %v6908_v60 = vadd.f32 %v6132_v56, %v6858_v58  ;;  %v1146_v61 = vpop.f32.mrb[5].mxu1 }
  0xf5   : > { %v1195_v16 = vpack.c.bf16 %v966_v13, %v963_v9  ;;  %v6912_v0 = vadd.f32 %v6858_v58, %v1146_v61  ;;  %v6133_v1 = vpop.f32.mrb[6].mxu1 }
  0xf6   : > { %v1194_v17 = vpack.c.bf16 %v958_v15, %v955_v11  ;;  %v6916_v4 = vadd.f32 %v6133_v1, %v6858_v58  ;;  %v1149_v5 = vpop.f32.mrb[7].mxu1 }
  0xf7   : > { %v1227_v18 = vmax.bf16 %v6603_v42, %v1195_v16  ;;  %v6920_v7 = vadd.f32 %v6858_v58, %v1149_v5 }
  0xf8   : > { %v1226_v19 = vmax.bf16 %v6603_v42, %v1194_v17  ;;  %v6088_v20 = vpop.f32.mrb[8].mxu0  ;;  %v1219_v9 = vpack.c.bf16 %v6916_v4, %v6908_v60  ;;  %v6326_v4 = vld [vmem:[%s8864_s4 + $0x10] ss:$8 sps:$4 sm:$0xff]  }
  0xf9   : > { %v979_v21 = vadd.f32 %v6088_v20, %v6858_v58  ;;  %v970_v22 = vpop.f32.mrb[9].mxu0  ;;  %v1218_v11 = vpack.c.bf16 %v6920_v7, %v6912_v0  ;;  %v6325_v0 = vld [vmem:[%s8864_s4 + $0x4] ss:$8 sps:$4 sm:$0xff]   ;;  %v6328_v7 = vld [vmem:[%s8864_s4 + $0x14] ss:$8 sps:$4 sm:$0xff]  }
  0xfa   : > { %6162 = vmatprep.mubr.bf16.mxu1 %v1226_v19  ;;  %v971_v23 = vadd.f32 %v6858_v58, %v970_v22  ;;  %v6089_v24 = vpop.f32.mrb[10].mxu0  ;;  %v1251_v40 = vmax.bf16 %v6603_v42, %v1219_v9  ;;  %2470 = vmatprep.subr.bf16.mxu1 %v6325_v0  ;;  %v6329_v9 = vld [vmem:[%s8864_s4 + $0x20] ss:$8 sps:$4 sm:$0xff]  }
  0xfb   : > { %6163 = vmatmul.mubr.bf16.gmra.mrb[20].mxu1 %v1227_v18  ;;  %v982_v25 = vadd.f32 %v6089_v24, %v6858_v58  ;;  %v973_v26 = vpop.f32.mrb[11].mxu0  ;;  %v6136_v15 = vpop.f32.mrb[8].mxu1 }
  0xfc   : > { %v974_v27 = vadd.f32 %v6858_v58, %v973_v26  ;;  %v6930_v18 = vadd.f32 %v6136_v15, %v6858_v58  ;;  %v1162_v19 = vpop.f32.mrb[9].mxu1 }
  0xfd   : > { %v1197_v28 = vpack.c.bf16 %v982_v25, %v979_v21  ;;  %v6934_v22 = vadd.f32 %v6858_v58, %v1162_v19 }
  0xfe   : > { %v1196_v29 = vpack.c.bf16 %v974_v27, %v971_v23  ;;  %v6137_v23 = vpop.f32.mrb[10].mxu1 }
  0xff   : > { %v1229_v30 = vmax.bf16 %v6603_v42, %v1197_v28  ;;  %v6938_v26 = vadd.f32 %v6137_v23, %v6858_v58  ;;  %v1165_v27 = vpop.f32.mrb[11].mxu1 }
 0x100   : > { %v1228_v31 = vmax.bf16 %v6603_v42, %v1196_v29  ;;  %v6092_v32 = vpop.f32.mrb[12].mxu0  ;;  %v6942_v29 = vadd.f32 %v6858_v58, %v1165_v27 }
 0x101   : > { %v995_v34 = vadd.f32 %v6092_v32, %v6858_v58  ;;  %v986_v35 = vpop.f32.mrb[13].mxu0 }
 0x102   : > { %6166 = vmatprep.mubr.bf16.mxu1 %v1228_v31  ;;  %v987_v38 = vadd.f32 %v6858_v58, %v986_v35  ;;  %v6093_v39 = vpop.f32.mrb[14].mxu0  ;;  %v1221_v31 = vpack.c.bf16 %v6938_v26, %v6930_v18  ;;  %v1220_v33 = vpack.c.bf16 %v6942_v29, %v6934_v22  ;;  %v6332_v18 = vld [vmem:[%s8864_s4 + $0x30] ss:$8 sps:$4 sm:$0xff]   ;;  %v6334_v22 = vld [vmem:[%s8864_s4 + $0x34] ss:$8 sps:$4 sm:$0xff]  }
 0x103   : > { %6167 = vmatmul.mubr.bf16.gmra.mrb[24].mxu1 %v1229_v30  ;;  %v998_v43 = vadd.f32 %v6093_v39, %v6858_v58  ;;  %v989_v44 = vpop.f32.mrb[15].mxu0  ;;  %v7054_v29 = vld [vmem:[%s8867_s7] ss:$0 sm:$0xff] }
 0x104   : > { %v990_v47 = vadd.f32 %v6858_v58, %v989_v44  ;;  %v1252_v48 = vmax.bf16 %v6603_v42, %v1220_v33  ;;  %v1253_v45 = vmax.bf16 %v6603_v42, %v1221_v31 }
 0x105   : > { %v1199_v49 = vpack.c.bf16 %v998_v43, %v995_v34 }
 0x106   : > { %v1198_v51 = vpack.c.bf16 %v990_v47, %v987_v38  ;;  %v6950_v38 = vpop.f32.mrb[12].mxu1 }
 0x107   : > { %v1231_v53 = vmax.bf16 %v6603_v42, %v1199_v49  ;;  %v1178_v43 = vpop.f32.mrb[13].mxu1  ;;  %v1187_v36 = vadd.f32 %v6950_v38, %v6858_v58  ;;  %v6335_v38 = vld [vmem:[%s8864_s4 + $0x40] ss:$8 sps:$4 sm:$0xff]  }
 0x108   : > { %v1230_v54 = vmax.bf16 %v6603_v42, %v1198_v51  ;;  %v6096_v55 = vpop.f32.mrb[16].mxu0  ;;  %v6955_v47 = vadd.f32 %v6858_v58, %v1178_v43  ;;  %v6141_v49 = vpop.f32.mrb[14].mxu1 }
 0x109   : > { %v1011_v57 = vadd.f32 %v6096_v55, %v6858_v58  ;;  %v1002_v59 = vpop.f32.mrb[17].mxu0 }
 0x10a   : > { %6170 = vmatprep.mubr.bf16.mxu1 %v1230_v54  ;;  %v1003_v62 = vadd.f32 %v6858_v58, %v1002_v59  ;;  %v6097_v63 = vpop.f32.mrb[18].mxu0  ;;  %v1181_v54 = vpop.f32.mrb[15].mxu1 }
 0x10b   : > { %6171 = vmatmul.mubr.bf16.gmra.mrb[28].mxu1 %v1231_v53  ;;  %v1014_v2 = vadd.f32 %v6097_v63, %v6858_v58  ;;  %v1005_v3 = vpop.f32.mrb[19].mxu0  ;;  %v6960_v56 = vadd.f32 %v6858_v58, %v1181_v54 }
 0x10c   : > { %v1006_v6 = vadd.f32 %v6858_v58, %v1005_v3 }
 0x10d   : > { %v1201_v8 = vpack.c.bf16 %v1014_v2, %v1011_v57  ;;  %v1222_v61 = vpack.c.bf16 %v6960_v56, %v6955_v47  ;;  %v6337_v47 = vld [vmem:[%s8864_s4 + $0x44] ss:$8 sps:$4 sm:$0xff]  }
 0x10e   : > { %v1200_v10 = vpack.c.bf16 %v1006_v6, %v1003_v62 }
 0x10f   : > { %v1233_v12 = vmax.bf16 %v6603_v42, %v1201_v8 }
 0x110   : > { %v1232_v13 = vmax.bf16 %v6603_v42, %v1200_v10  ;;  %v6100_v14 = vpop.f32.mrb[20].mxu0 }
 0x111   : > { %v1027_v16 = vadd.f32 %v6100_v14, %v6858_v58  ;;  %v1018_v17 = vpop.f32.mrb[21].mxu0 }
 0x112   : > { %6174 = vmatprep.mubr.bf16.mxu1 %v1232_v13  ;;  %v1019_v20 = vadd.f32 %v6858_v58, %v1018_v17  ;;  %v6101_v21 = vpop.f32.mrb[22].mxu0 }
 0x113   : > { %6175 = vmatmul.mubr.bf16.gmra.mrb[32].mxu1 %v1233_v12  ;;  %v1030_v24 = vadd.f32 %v6101_v21, %v6858_v58  ;;  %v1021_v25 = vpop.f32.mrb[23].mxu0 }
 0x114   : > { %v1022_v28 = vadd.f32 %v6858_v58, %v1021_v25 }
 0x115   : > { %v1203_v30 = vpack.c.bf16 %v1030_v24, %v1027_v16 }
 0x116   : > { %v1202_v32 = vpack.c.bf16 %v1022_v28, %v1019_v20 }
 0x117   : > { %v1235_v34 = vmax.bf16 %v6603_v42, %v1203_v30 }
 0x118   : > { %v1234_v35 = vmax.bf16 %v6603_v42, %v1202_v32  ;;  %v6104_v37 = vpop.f32.mrb[24].mxu0 }
 0x119   : > { %v1043_v39 = vadd.f32 %v6104_v37, %v6858_v58  ;;  %v1034_v41 = vpop.f32.mrb[25].mxu0 }
 0x11a   : > { %6178 = vmatprep.mubr.bf16.mxu1 %v1234_v35  ;;  %v1035_v44 = vadd.f32 %v6858_v58, %v1034_v41  ;;  %v6105_v46 = vpop.f32.mrb[26].mxu0 }
 0x11b   : > { %6179 = vmatmul.mubr.bf16.gmra.mrb[36].mxu1 %v1235_v34  ;;  %v1046_v51 = vadd.f32 %v6105_v46, %v6858_v58  ;;  %v1037_v53 = vpop.f32.mrb[27].mxu0 }
 0x11c   : > { %v1038_v55 = vadd.f32 %v6858_v58, %v1037_v53 }
 0x11d   : > { %v1205_v57 = vpack.c.bf16 %v1046_v51, %v1043_v39 }
 0x11e   : > { %v1204_v59 = vpack.c.bf16 %v1038_v55, %v1035_v44 }
 0x11f   : > { %v1237_v62 = vmax.bf16 %v6603_v42, %v1205_v57 }
 0x120   : > { %v1236_v63 = vmax.bf16 %v6603_v42, %v1204_v59  ;;  %v6108_v1 = vpop.f32.mrb[28].mxu0 }
 0x121   : > { %v1059_v2 = vadd.f32 %v6108_v1, %v6858_v58  ;;  %v1050_v3 = vpop.f32.mrb[29].mxu0 }
 0x122   : > { %6182 = vmatprep.mubr.bf16.mxu1 %v1236_v63  ;;  %v1051_v5 = vadd.f32 %v6858_v58, %v1050_v3  ;;  %v6109_v6 = vpop.f32.mrb[30].mxu0 }
 0x123   : > { %6183 = vmatmul.mubr.bf16.gmra.mrb[40].mxu1 %v1237_v62  ;;  %v1062_v8 = vadd.f32 %v6109_v6, %v6858_v58  ;;  %v1053_v10 = vpop.f32.mrb[31].mxu0 }
 0x124   : > { %v1054_v12 = vadd.f32 %v6858_v58, %v1053_v10 }
 0x125   : > { %v1207_v13 = vpack.c.bf16 %v1062_v8, %v1059_v2 }
 0x126   : > { %v1206_v14 = vpack.c.bf16 %v1054_v12, %v1051_v5 }
 0x127   : > { %v1239_v15 = vmax.bf16 %v6603_v42, %v1207_v13 }
 0x128   : > { %v1238_v16 = vmax.bf16 %v6603_v42, %v1206_v14  ;;  %v6112_v17 = vpop.f32.mrb[32].mxu0 }
 0x129   : > { %v1075_v19 = vadd.f32 %v6112_v17, %v6858_v58  ;;  %v1066_v20 = vpop.f32.mrb[33].mxu0 }
 0x12a   : > { %6186 = vmatprep.mubr.bf16.mxu1 %v1238_v16  ;;  %v1067_v21 = vadd.f32 %v6858_v58, %v1066_v20  ;;  %v6113_v23 = vpop.f32.mrb[34].mxu0 }
 0x12b   : > { %6187 = vmatmul.mubr.bf16.gmra.mrb[44].mxu1 %v1239_v15  ;;  %v1078_v24 = vadd.f32 %v6113_v23, %v6858_v58  ;;  %v1069_v25 = vpop.f32.mrb[35].mxu0 }
 0x12c   : > { %v1070_v27 = vadd.f32 %v6858_v58, %v1069_v25 }
 0x12d   : > { %v1209_v28 = vpack.c.bf16 %v1078_v24, %v1075_v19 }
 0x12e   : > { %v1208_v30 = vpack.c.bf16 %v1070_v27, %v1067_v21 }
 0x12f   : > { %v1241_v32 = vmax.bf16 %v6603_v42, %v1209_v28  ;;  %v1248_v28 = vmax.bf16 %v6603_v42, %v1216_v52  ;;  %v1223_v52 = vpack.c.bf16 %v1187_v36, %v1187_v36 }
 0x130   : > { %v1240_v34 = vmax.bf16 %v6603_v42, %v1208_v30  ;;  %v6116_v35 = vpop.f32.mrb[36].mxu0  ;;  %v1249_v30 = vmax.bf16 %v6603_v42, %v1217_v50  ;;  %v1254_v50 = vmax.bf16 %v6603_v42, %v1222_v61 }
 0x131   : > { %v1091_v37 = vadd.f32 %v6116_v35, %v6858_v58  ;;  %v1082_v39 = vpop.f32.mrb[37].mxu0  ;;  %v1255_v60 = vmax.bf16 %v6603_v42, %v1223_v52 }
 0x132   : > { %6190 = vmatprep.mubr.bf16.mxu1 %v1240_v34  ;;  %v1083_v41 = vadd.f32 %v6858_v58, %v1082_v39  ;;  %v6117_v43 = vpop.f32.mrb[38].mxu0 }
 0x133   : > { %6191 = vmatmul.mubr.bf16.gmra.mrb[48].mxu1 %v1241_v32  ;;  %v1094_v44 = vadd.f32 %v6117_v43, %v6858_v58  ;;  %v1085_v46 = vpop.f32.mrb[39].mxu0  ;;  %v1250_v32 = vmax.bf16 %v6603_v42, %v1218_v11  ;;  %v6331_v11 = vld [vmem:[%s8864_s4 + $0x24] ss:$8 sps:$4 sm:$0xff]  }
 0x134   : > { %v1086_v49 = vadd.f32 %v6858_v58, %v1085_v46 }
 0x135   : > { %v1211_v51 = vpack.c.bf16 %v1094_v44, %v1091_v37 }
 0x136   : > { %v1210_v53 = vpack.c.bf16 %v1086_v49, %v1083_v41 }
 0x137   : > { %v1243_v54 = vmax.bf16 %v6603_v42, %v1211_v51 }
 0x138   : > { %v1242_v55 = vmax.bf16 %v6603_v42, %v1210_v53  ;;  %v6120_v57 = vpop.f32.mrb[40].mxu0 }
 0x139   : > { %v1107_v59 = vadd.f32 %v6120_v57, %v6858_v58  ;;  %v1098_v62 = vpop.f32.mrb[41].mxu0 }
 0x13a   : > { %6194 = vmatprep.mubr.bf16.mxu1 %v1242_v55  ;;  %v1099_v63 = vadd.f32 %v6858_v58, %v1098_v62  ;;  %v6121_v1 = vpop.f32.mrb[42].mxu0  ;;  %v6340_v55 = vld [vmem:[%s8864_s4 + $0x54] ss:$8 sps:$4 sm:$0xff]  }
 0x13b   : > { %6195 = vmatmul.mubr.bf16.gmra.mrb[52].mxu1 %v1243_v54  ;;  %v1110_v2 = vadd.f32 %v6121_v1, %v6858_v58  ;;  %v1101_v3 = vpop.f32.mrb[43].mxu0  ;;  %v6338_v54 = vld [vmem:[%s8864_s4 + $0x50] ss:$8 sps:$4 sm:$0xff]  }
 0x13c   : > { %v1102_v5 = vadd.f32 %v6858_v58, %v1101_v3 }
 0x13d   : > { %v1213_v6 = vpack.c.bf16 %v1110_v2, %v1107_v59 }
 0x13e   : > { %v1212_v8 = vpack.c.bf16 %v1102_v5, %v1099_v63 }
 0x13f   : > { %v1245_v10 = vmax.bf16 %v6603_v42, %v1213_v6 }
 0x140   : > { %v1244_v12 = vmax.bf16 %v6603_v42, %v1212_v8  ;;  %v6124_v13 = vpop.f32.mrb[44].mxu0 }
 0x141   : > { %v1123_v14 = vadd.f32 %v6124_v13, %v6858_v58  ;;  %v1114_v15 = vpop.f32.mrb[45].mxu0  ;;  %v6343_v13 = vld [vmem:[%s8864_s4 + $0x64] ss:$8 sps:$4 sm:$0xff]  }
 0x142   : > { %6198 = vmatprep.mubr.bf16.mxu1 %v1244_v12  ;;  %v1115_v16 = vadd.f32 %v6858_v58, %v1114_v15  ;;  %v6125_v17 = vpop.f32.mrb[46].mxu0  ;;  %v6341_v12 = vld [vmem:[%s8864_s4 + $0x60] ss:$8 sps:$4 sm:$0xff]  }
 0x143   : > { %6199 = vmatmul.mubr.bf16.gmra.mrb[56].mxu1 %v1245_v10  ;;  %v1126_v19 = vadd.f32 %v6125_v17, %v6858_v58  ;;  %v1117_v20 = vpop.f32.mrb[47].mxu0 }
 0x144   : > { %v1118_v21 = vadd.f32 %v6858_v58, %v1117_v20  ;;  %v6323_v58 = vld [vmem:[%s8864_s4] ss:$8 sps:$4 sm:$0xff]  }
 0x145   : > { %v1215_v23 = vpack.c.bf16 %v1126_v19, %v1123_v14  ;;  %2471 = vmatpush1.bf16.msra.mxu1 %v6323_v58 }
 0x146   : > { %v1214_v24 = vpack.c.bf16 %v1118_v21, %v1115_v16  ;;  %2472 = vmatprep.subr.bf16.mxu1 %v6328_v7  ;;  %v6347_v7 = vld [vmem:[%s8864_s4 + $0x80] ss:$8 sps:$4 sm:$0xff]  }
 0x147   : > { %v1247_v25 = vmax.bf16 %v6603_v42, %v1215_v23 }
 0x148   : > { %v1246_v27 = vmax.bf16 %v6603_v42, %v1214_v24 }
 0x149   : > { %2473 = vmatpush1.bf16.msra.mxu1 %v6326_v4 }
 0x14a   : > { %6202 = vmatprep.mubr.bf16.mxu1 %v1246_v27  ;;  %2474 = vmatprep.subr.bf16.mxu1 %v6331_v11 }
 0x14b   : > { %6203 = vmatmul.mubr.bf16.gmra.mrb[60].mxu1 %v1247_v25 }
 0x14c   : > { %6206 = vmatprep.mubr.bf16.mxu1 %v1248_v28  ;;  %v6344_v28 = vld [vmem:[%s8864_s4 + $0x70] ss:$8 sps:$4 sm:$0xff]  }
 0x14d   : > { %2475 = vmatpush1.bf16.msra.mxu1 %v6329_v9  ;;  %v6349_v9 = vld [vmem:[%s8864_s4 + $0x84] ss:$8 sps:$4 sm:$0xff]  }
 0x14e   : > { %2476 = vmatprep.subr.bf16.mxu1 %v6334_v22 }
 0x151   : > { %2477 = vmatpush1.bf16.msra.mxu1 %v6332_v18 }
 0x152   : > { %2478 = vmatprep.subr.bf16.mxu1 %v6337_v47 }
 0x153   : > { %6207 = vmatmul.mubr.bf16.gmra.mrb[64].mxu1 %v1249_v30  ;;  %v6346_v30 = vld [vmem:[%s8864_s4 + $0x74] ss:$8 sps:$4 sm:$0xff]  }
 0x154   : > { %6210 = vmatprep.mubr.bf16.mxu1 %v1250_v32 }
 0x155   : > { %2479 = vmatpush1.bf16.msra.mxu1 %v6335_v38 }
 0x156   : > { %2480 = vmatprep.subr.bf16.mxu1 %v6340_v55 }
 0x159   : > { %2481 = vmatpush1.bf16.msra.mxu1 %v6338_v54 }
 0x15a   : > { %2482 = vmatprep.subr.bf16.mxu1 %v6343_v13 }
 0x15b   : > { %6211 = vmatmul.mubr.bf16.gmra.mrb[68].mxu1 %v1251_v40 }
 0x15c   : > { %6214 = vmatprep.mubr.bf16.mxu1 %v1252_v48 }
 0x15d   : > { %2483 = vmatpush1.bf16.msra.mxu1 %v6341_v12 }
 0x15e   : > { %2484 = vmatprep.subr.bf16.mxu1 %v6346_v30 }
 0x161   : > { %2485 = vmatpush1.bf16.msra.mxu1 %v6344_v28 }
 0x162   : > { %2486 = vmatprep.subr.bf16.mxu1 %v6349_v9 }
 0x163   : > { %6215 = vmatmul.mubr.bf16.gmra.mrb[72].mxu1 %v1253_v45 }
 0x164   : > { %6218 = vmatprep.mubr.bf16.mxu1 %v1254_v50 }
 0x165   : > { %2487 = vmatpush1.bf16.msra.mxu1 %v6347_v7 }
 0x16b   : > { %6219 = vmatmul.mubr.bf16.gmra.mrb[76].mxu1 %v1255_v60 }
 0x1c6   : > { %v6160_v26 = vpop.f32.mrb[16].mxu1 }
 0x1c7   : > { %v1361_v31 = vpop.f32.mrb[17].mxu1  ;;  %v1370_v56 = vadd.f32 %v6160_v26, %v7054_v29 }
 0x1c8   : > { %v6161_v33 = vpop.f32.mrb[18].mxu1  ;;  %v1362_v35 = vadd.f32 %v7054_v29, %v1361_v31 }
 0x1c9   : > { %v1373_v61 = vadd.f32 %v6161_v33, %v7054_v29  ;;  %v1364_v34 = vpop.f32.mrb[19].mxu1 }
 0x1ca   : > { %v1365_v37 = vadd.f32 %v7054_v29, %v1364_v34 }
 0x1cb   : > { %v1616_v39 = vpack.c.bf16 %v1373_v61, %v1370_v56 }
 0x1cc   : > { %v1615_v41 = vpack.c.bf16 %v1365_v37, %v1362_v35  ;;  %v6350_v35 = vld [vmem:[%s8864_s4 + $0x90] ss:$8 sps:$4 sm:$0xff]   ;;  %v6352_v37 = vld [vmem:[%s8864_s4 + $0x94] ss:$8 sps:$4 sm:$0xff]  }
 0x1cd   : > { %v1648_v2 = vmax.bf16 %v6603_v42, %v1616_v39  ;;  %2488 = vmatprep.subr.bf16.mxu1 %v6352_v37 }
 0x1ce   : > { %v1647_v43 = vmax.bf16 %v6603_v42, %v1615_v41  ;;  %v6164_v44 = vpop.f32.mrb[20].mxu1  ;;  %2489 = vmatpush1.bf16.msra.mxu1 %v6350_v35 }
 0x1cf   : > { %v1386_v46 = vadd.f32 %v6164_v44, %v7054_v29  ;;  %v1377_v49 = vpop.f32.mrb[21].mxu1 }
 0x1d0   : > { %v1378_v51 = vadd.f32 %v7054_v29, %v1377_v49  ;;  %1820 = vmatmul.mubr.bf16.vlgmr.msra.gmra.mrb[48].mxu0 %v1647_v43  ;;  %v6165_v53 = vpop.f32.mrb[22].mxu1 }
 0x1d1   : > { %v1389_v57 = vadd.f32 %v6165_v53, %v7054_v29  ;;  %v1380_v59 = vpop.f32.mrb[23].mxu1  ;;  %1829 = vmatprep.mubr.bf16.mxu0 %v6603_v42 }
 0x1d2   : > { %v1381_v62 = vadd.f32 %v7054_v29, %v1380_v59  ;;  %v6353_v59 = vld [vmem:[%s8864_s4 + $0xa0] ss:$8 sps:$4 sm:$0xff]  }
 0x1d3   : > { %v1618_v63 = vpack.c.bf16 %v1389_v57, %v1386_v46 }
 0x1d4   : > { %v1617_v1 = vpack.c.bf16 %v1381_v62, %v1378_v51  ;;  %v6355_v62 = vld [vmem:[%s8864_s4 + $0xa4] ss:$8 sps:$4 sm:$0xff]  }
 0x1d5   : > { %v1650_v50 = vmax.bf16 %v6603_v42, %v1618_v63  ;;  %2490 = vmatprep.subr.bf16.mxu1 %v6355_v62  ;;  %v6365_v62 = vld [vmem:[%s8864_s4 + $0xe0] ss:$8 sps:$4 sm:$0xff]  }
 0x1d6   : > { %v6168_v3 = vpop.f32.mrb[24].mxu1  ;;  %v1649_v20 = vmax.bf16 %v6603_v42, %v1617_v1  ;;  %2491 = vmatpush1.bf16.msra.mxu1 %v6353_v59 }
 0x1d7   : > { %v7080_v5 = vadd.f32 %v6168_v3, %v7054_v29  ;;  %v1393_v6 = vpop.f32.mrb[25].mxu1 }
 0x1d8   : > { %1830 = vmatmul.mubr.bf16.gmra.mrb[52].mxu0 %v1648_v2  ;;  %v1394_v8 = vadd.f32 %v7054_v29, %v1393_v6  ;;  %v6169_v10 = vpop.f32.mrb[26].mxu1 }
 0x1d9   : > { %1839 = vmatprep.mubr.bf16.mxu0 %v6603_v42  ;;  %v1405_v14 = vadd.f32 %v6169_v10, %v7054_v29  ;;  %v1396_v15 = vpop.f32.mrb[27].mxu1 }
 0x1da   : > { %v1397_v16 = vadd.f32 %v7054_v29, %v1396_v15  ;;  %v6356_v15 = vld [vmem:[%s8864_s4 + $0xb0] ss:$8 sps:$4 sm:$0xff]  }
 0x1db   : > { %v1620_v17 = vpack.c.bf16 %v1405_v14, %v7080_v5 }
 0x1dc   : > { %v1619_v19 = vpack.c.bf16 %v1397_v16, %v1394_v8  ;;  %v6358_v16 = vld [vmem:[%s8864_s4 + $0xb4] ss:$8 sps:$4 sm:$0xff]  }
 0x1dd   : > { %v1652_v49 = vmax.bf16 %v6603_v42, %v1620_v17  ;;  %2492 = vmatprep.subr.bf16.mxu1 %v6358_v16 }
 0x1de   : > { %v6172_v21 = vpop.f32.mrb[28].mxu1  ;;  %v1651_v33 = vmax.bf16 %v6603_v42, %v1619_v19  ;;  %2493 = vmatpush1.bf16.msra.mxu1 %v6356_v15 }
 0x1df   : > { %v7095_v23 = vadd.f32 %v6172_v21, %v7054_v29  ;;  %v1409_v24 = vpop.f32.mrb[29].mxu1 }
 0x1e0   : > { %1840 = vmatmul.mubr.bf16.gmra.mrb[56].mxu0 %v1649_v20  ;;  %v7098_v25 = vadd.f32 %v7054_v29, %v1409_v24  ;;  %v6173_v27 = vpop.f32.mrb[30].mxu1 }
 0x1e1   : > { %1849 = vmatprep.mubr.bf16.mxu0 %v6603_v42  ;;  %v7108_v32 = vadd.f32 %v6173_v27, %v7054_v29  ;;  %v1412_v40 = vpop.f32.mrb[31].mxu1 }
 0x1e2   : > { %v1413_v48 = vadd.f32 %v7054_v29, %v1412_v40 }
 0x1e3   : > { %v1622_v36 = vpack.c.bf16 %v7108_v32, %v7095_v23  ;;  %v6361_v23 = vld [vmem:[%s8864_s4 + $0xc4] ss:$8 sps:$4 sm:$0xff]  }
 0x1e4   : > { %v1621_v45 = vpack.c.bf16 %v1413_v48, %v7098_v25  ;;  %2494 = vmatprep.subr.bf16.mxu1 %v6361_v23 }
 0x1e5   : > { %v1654_v25 = vmax.bf16 %v6603_v42, %v1622_v36 }
 0x1e6   : > { %v6176_v52 = vpop.f32.mrb[32].mxu1  ;;  %v1653_v6 = vmax.bf16 %v6603_v42, %v1621_v45  ;;  %v6359_v45 = vld [vmem:[%s8864_s4 + $0xc0] ss:$8 sps:$4 sm:$0xff]  }
 0x1e7   : > { %v7116_v60 = vadd.f32 %v6176_v52, %v7054_v29  ;;  %v1425_v58 = vpop.f32.mrb[33].mxu1  ;;  %2495 = vmatpush1.bf16.msra.mxu1 %v6359_v45 }
 0x1e8   : > { %1850 = vmatmul.mubr.bf16.gmra.mrb[60].mxu0 %v1650_v50  ;;  %v7119_v0 = vadd.f32 %v7054_v29, %v1425_v58  ;;  %v6177_v4 = vpop.f32.mrb[34].mxu1 }
 0x1e9   : > { %1859 = vmatprep.mubr.bf16.mxu0 %v6603_v42  ;;  %v7129_v11 = vadd.f32 %v6177_v4, %v7054_v29  ;;  %v1428_v18 = vpop.f32.mrb[35].mxu1 }
 0x1ea   : > { %v7132_v22 = vadd.f32 %v7054_v29, %v1428_v18 }
 0x1eb   : > { %v1624_v26 = vpack.c.bf16 %v7129_v11, %v7116_v60  ;;  %v6367_v60 = vld [vmem:[%s8864_s4 + $0xe4] ss:$8 sps:$4 sm:$0xff]  }
 0x1ec   : > { %v1623_v31 = vpack.c.bf16 %v7132_v22, %v7119_v0  ;;  %v6364_v0 = vld [vmem:[%s8864_s4 + $0xd4] ss:$8 sps:$4 sm:$0xff]  }
 0x1ed   : > { %2496 = vmatprep.subr.bf16.mxu1 %v6364_v0 }
 0x1ee   : > { %v6180_v38 = vpop.f32.mrb[36].mxu1  ;;  %v1655_v4 = vmax.bf16 %v6603_v42, %v1623_v31 }
 0x1ef   : > { %v7140_v47 = vadd.f32 %v6180_v38, %v7054_v29  ;;  %v1441_v56 = vpop.f32.mrb[37].mxu1 }
 0x1f0   : > { %1860 = vmatmul.mubr.bf16.gmra.mrb[64].mxu0 %v1651_v33  ;;  %v7143_v61 = vadd.f32 %v7054_v29, %v1441_v56  ;;  %v6181_v34 = vpop.f32.mrb[38].mxu1  ;;  %v6362_v56 = vld [vmem:[%s8864_s4 + $0xd0] ss:$8 sps:$4 sm:$0xff]  }
 0x1f1   : > { %1869 = vmatprep.mubr.bf16.mxu0 %v6603_v42  ;;  %v7153_v39 = vadd.f32 %v6181_v34, %v7054_v29  ;;  %v1444_v41 = vpop.f32.mrb[39].mxu1  ;;  %2497 = vmatpush1.bf16.msra.mxu1 %v6362_v56 }
 0x1f2   : > { %v7156_v43 = vadd.f32 %v7054_v29, %v1444_v41  ;;  %v1656_v41 = vmax.bf16 %v6603_v42, %v1624_v26  ;;  %2498 = vmatprep.subr.bf16.mxu1 %v6367_v60  ;;  %v6371_v60 = vld [vmem:[%s8865_s5] ss:$16 sps:$4 sm:$0xff]  }
 0x1f3   : > { %v1626_v44 = vpack.c.bf16 %v7153_v39, %v7140_v47 }
 0x1f4   : > { %v1625_v46 = vpack.c.bf16 %v7156_v43, %v7143_v61 }
 0x1f5   : > { %2499 = vmatpush1.bf16.msra.mxu1 %v6365_v62 }
 0x1f6   : > { %v6184_v51 = vpop.f32.mrb[40].mxu1 }
 0x1f7   : > { %v7164_v53 = vadd.f32 %v6184_v51, %v7054_v29  ;;  %v1457_v54 = vpop.f32.mrb[41].mxu1 }
 0x1f8   : > { %1870 = vmatmul.mubr.bf16.gmra.mrb[68].mxu0 %v1652_v49  ;;  %v7167_v55 = vadd.f32 %v7054_v29, %v1457_v54  ;;  %v6185_v57 = vpop.f32.mrb[42].mxu1 }
 0x1f9   : > { %1879 = vmatprep.mubr.bf16.mxu0 %v6603_v42  ;;  %v7177_v63 = vadd.f32 %v6185_v57, %v7054_v29  ;;  %v1460_v1 = vpop.f32.mrb[43].mxu1 }
 0x1fa   : > { %v7180_v2 = vadd.f32 %v7054_v29, %v1460_v1 }
 0x1fb   : > { %v1628_v3 = vpack.c.bf16 %v7177_v63, %v7164_v53 }
 0x1fc   : > { %v1627_v5 = vpack.c.bf16 %v7180_v2, %v7167_v55  ;;  %v6373_v55 = vld [vmem:[%s8865_s5 + $0x4] ss:$16 sps:$4 sm:$0xff]  }
 0x1fd   : > { %3355 = vmatprep.subr.bf16.mxu0 %v6373_v55  ;;  %v6379_v55 = vld [vmem:[%s8865_s5 + $0x24] ss:$16 sps:$4 sm:$0xff]  }
 0x1fe   : > { %v6188_v8 = vpop.f32.mrb[44].mxu1  ;;  %3356 = vmatpush1.bf16.msra.mxu0 %v6371_v60  ;;  %v6377_v60 = vld [vmem:[%s8865_s5 + $0x20] ss:$16 sps:$4 sm:$0xff]  }
 0x1ff   : > { %v7188_v10 = vadd.f32 %v6188_v8, %v7054_v29  ;;  %v1473_v12 = vpop.f32.mrb[45].mxu1  ;;  %3357 = vmatprep.subr.bf16.mxu0 %v6379_v55 }
 0x200   : > { %1880 = vmatmul.mubr.bf16.gmra.mrb[72].mxu0 %v1653_v6  ;;  %v7191_v13 = vadd.f32 %v7054_v29, %v1473_v12  ;;  %v6189_v14 = vpop.f32.mrb[46].mxu1  ;;  %v1657_v12 = vmax.bf16 %v6603_v42, %v1625_v46 }
 0x201   : > { %1889 = vmatprep.mubr.bf16.mxu0 %v6603_v42  ;;  %v7201_v17 = vadd.f32 %v6189_v14, %v7054_v29  ;;  %v1476_v19 = vpop.f32.mrb[47].mxu1 }
 0x202   : > { %v7204_v20 = vadd.f32 %v7054_v29, %v1476_v19  ;;  %3358 = vmatpush1.bf16.msra.mxu0 %v6377_v60 }
 0x203   : > { %v1630_v21 = vpack.c.bf16 %v7201_v17, %v7188_v10 }
 0x204   : > { %v1629_v24 = vpack.c.bf16 %v7204_v20, %v7191_v13 }
 0x206   : > { %v6192_v27 = vpop.f32.mrb[48].mxu1 }
 0x207   : > { %v7215_v28 = vadd.f32 %v6192_v27, %v7054_v29  ;;  %v1489_v30 = vpop.f32.mrb[49].mxu1 }
 0x208   : > { %1890 = vmatmul.mubr.bf16.gmra.mrb[76].mxu0 %v1654_v25  ;;  %v7218_v40 = vadd.f32 %v7054_v29, %v1489_v30  ;;  %v6193_v48 = vpop.f32.mrb[50].mxu1 }
 0x209   : > { %1899 = vmatprep.mubr.bf16.mxu0 %v6603_v42  ;;  %v7228_v32 = vadd.f32 %v6193_v48, %v7054_v29  ;;  %v1492_v36 = vpop.f32.mrb[51].mxu1  ;;  %v1658_v48 = vmax.bf16 %v6603_v42, %v1626_v44  ;;  %v6368_v44 = vld [vmem:[%s8864_s4 + $0xf0] ss:$8 sps:$4 sm:$0xff]  }
 0x20a   : > { %v7231_v50 = vadd.f32 %v7054_v29, %v1492_v36 }
 0x20b   : > { %v1632_v52 = vpack.c.bf16 %v7228_v32, %v7215_v28 }
 0x20c   : > { %v1631_v58 = vpack.c.bf16 %v7231_v50, %v7218_v40  ;;  %v6391_v40 = vld [vmem:[%s8865_s5 + $0x64] ss:$16 sps:$4 sm:$0xff]   ;;  %v6395_v50 = vld [vmem:[%s8865_s5 + $0x80] ss:$16 sps:$4 sm:$0xff]  }
 0x20d   : > { %v1664_v10 = vmax.bf16 %v6603_v42, %v1632_v52  ;;  %v6397_v52 = vld [vmem:[%s8865_s5 + $0x84] ss:$16 sps:$4 sm:$0xff]  }
 0x20e   : > { %v6196_v7 = vpop.f32.mrb[52].mxu1 }
 0x20f   : > { %v7242_v9 = vadd.f32 %v6196_v7, %v7054_v29  ;;  %v1505_v18 = vpop.f32.mrb[53].mxu1 }
 0x210   : > { %1900 = vmatmul.mubr.bf16.gmra.mrb[80].mxu0 %v1655_v4  ;;  %v7245_v33 = vadd.f32 %v7054_v29, %v1505_v18  ;;  %v6197_v38 = vpop.f32.mrb[54].mxu1  ;;  %v6370_v18 = vld [vmem:[%s8864_s4 + $0xf4] ss:$8 sps:$4 sm:$0xff]  }
 0x211   : > { %1909 = vmatprep.mubr.bf16.mxu0 %v6603_v42  ;;  %v7255_v22 = vadd.f32 %v6197_v38, %v7054_v29  ;;  %v1508_v31 = vpop.f32.mrb[55].mxu1  ;;  %2500 = vmatprep.subr.bf16.mxu1 %v6370_v18 }
 0x212   : > { %v7258_v34 = vadd.f32 %v7054_v29, %v1508_v31  ;;  %2501 = vmatpush1.bf16.msra.mxu1 %v6368_v44  ;;  %v1659_v31 = vmax.bf16 %v6603_v42, %v1627_v5  ;;  %v1661_v44 = vmax.bf16 %v6603_v42, %v1629_v24 }
 0x213   : > { %v1634_v35 = vpack.c.bf16 %v7255_v22, %v7242_v9  ;;  %v6403_v22 = vld [vmem:[%s8865_s5 + $0xa4] ss:$16 sps:$4 sm:$0xff]  }
 0x214   : > { %v1633_v37 = vpack.c.bf16 %v7258_v34, %v7245_v33  ;;  %v6401_v33 = vld [vmem:[%s8865_s5 + $0xa0] ss:$16 sps:$4 sm:$0xff]  }
 0x215   : > { %v1666_v28 = vmax.bf16 %v6603_v42, %v1634_v35 }
 0x216   : > { %v6200_v49 = vpop.f32.mrb[56].mxu1  ;;  %v1665_v17 = vmax.bf16 %v6603_v42, %v1633_v37  ;;  %v6407_v37 = vld [vmem:[%s8865_s5 + $0xc0] ss:$16 sps:$4 sm:$0xff]  }
 0x217   : > { %v7269_v51 = vadd.f32 %v6200_v49, %v7054_v29  ;;  %v1521_v54 = vpop.f32.mrb[57].mxu1 }
 0x218   : > { %1910 = vmatmul.mubr.bf16.gmra.mrb[84].mxu0 %v1656_v41  ;;  %v7272_v57 = vadd.f32 %v7054_v29, %v1521_v54  ;;  %v6201_v59 = vpop.f32.mrb[58].mxu1 }
 0x219   : > { %1919 = vmatprep.mubr.bf16.mxu0 %v6603_v42  ;;  %v7282_v11 = vadd.f32 %v6201_v59, %v7054_v29  ;;  %v1524_v26 = vpop.f32.mrb[59].mxu1 }
 0x21a   : > { %v7285_v1 = vadd.f32 %v7054_v29, %v1524_v26  ;;  %v6376_v26 = vld [vmem:[%s8865_s5 + $0xc] ss:$16 sps:$4 sm:$0xff]  }
 0x21b   : > { %v1636_v6 = vpack.c.bf16 %v7282_v11, %v7269_v51  ;;  %3706 = vmatprep.subr.bf16.mxu1 %v6376_v26  ;;  %v1663_v26 = vmax.bf16 %v6603_v42, %v1631_v58  ;;  %v6409_v51 = vld [vmem:[%s8865_s5 + $0xc4] ss:$16 sps:$4 sm:$0xff]   ;;  %v1697_v11 = vlaneseq }
 0x21c   : > { %v1635_v8 = vpack.c.bf16 %v7285_v1, %v7272_v57 }
 0x21d   : > { %v1668_v58 = vmax.bf16 %v6603_v42, %v1636_v6  ;;  %v7496_v1 = vshrl.u32 %v1697_v11, 7  ;;  %v6400_v11 = vld [vmem:[%s8865_s5 + $0x8c] ss:$16 sps:$4 sm:$0xff]  }
 0x21e   : > { %v6204_v14 = vpop.f32.mrb[60].mxu1  ;;  %v1667_v32 = vmax.bf16 %v6603_v42, %v1635_v8 }
 0x21f   : > { %v7296_v15 = vadd.f32 %v6204_v14, %v7054_v29  ;;  %v1537_v16 = vpop.f32.mrb[61].mxu1  ;;  %v7503_v8 = vsub.s32 0, %v7496_v1 }
 0x220   : > { %1920 = vmatmul.mubr.bf16.gmra.mrb[88].mxu0 %v1657_v12  ;;  %v7299_v19 = vadd.f32 %v7054_v29, %v1537_v16  ;;  %v6205_v25 = vpop.f32.mrb[62].mxu1 }
 0x221   : > { %1929 = vmatprep.mubr.bf16.mxu0 %v6603_v42  ;;  %v7303_v27 = vadd.f32 %v6205_v25, %v7054_v29  ;;  %v1540_v30 = vpop.f32.mrb[63].mxu1  ;;  %v1660_v25 = vmax.bf16 %v6603_v42, %v1628_v3 }
 0x222   : > { %v7306_v61 = vadd.f32 %v7054_v29, %v1540_v30 }
 0x223   : > { %v1638_v43 = vpack.c.bf16 %v7303_v27, %v7296_v15  ;;  %v1695_v15 = vld [vmem:[%s8868_s8] sm:$0x3] }
 0x224   : > { %v1637_v46 = vpack.c.bf16 %v7306_v61, %v7299_v19  ;;  %v7509_v19 = vsub.s32 1, %v7496_v1  ;;  %v6413_v27 = vld [vmem:[%s8865_s5 + $0xe0] ss:$16 sps:$4 sm:$0xff]   ;;  %v6415_v61 = vld [vmem:[%s8865_s5 + $0xe4] ss:$16 sps:$4 sm:$0xff]  }
 0x225   : > { %v1670_v34 = vmax.bf16 %v6603_v42, %v1638_v43  ;;  %v7519_v43 = vrot.slane %v1695_v15, %v7503_v8 }
 0x226   : > { %v6208_v45 = vpop.f32.mrb[64].mxu1  ;;  %v1669_v9 = vmax.bf16 %v6603_v42, %v1637_v46 }
 0x227   : > { %v7317_v23 = vadd.f32 %v6208_v45, %v7054_v29  ;;  %v1553_v36 = vpop.f32.mrb[65].mxu1 }
 0x228   : > { %1930 = vmatmul.mubr.bf16.gmra.mrb[92].mxu0 %v1658_v48  ;;  %v7320_v4 = vadd.f32 %v7054_v29, %v1553_v36  ;;  %v6209_v7 = vpop.f32.mrb[66].mxu1 }
 0x229   : > { %1939 = vmatprep.mubr.bf16.mxu0 %v6603_v42  ;;  %v7327_v47 = vadd.f32 %v6209_v7, %v7054_v29  ;;  %v1556_v39 = vpop.f32.mrb[67].mxu1 }
 0x22a   : > { %v7333_v38 = vadd.f32 %v7054_v29, %v1556_v39 }
 0x22b   : > { %v1640_v56 = vpack.c.bf16 %v7327_v47, %v7317_v23  ;;  %v7522_v23 = vrot.slane %v1695_v15, %v7509_v19 }
 0x22c   : > { %v1639_v0 = vpack.c.bf16 %v7333_v38, %v7320_v4 }
 0x22d   : > { %v1672_v57 = vmax.bf16 %v6603_v42, %v1640_v56 }
 0x22e   : > { %v6212_v41 = vpop.f32.mrb[68].mxu1  ;;  %v1671_v35 = vmax.bf16 %v6603_v42, %v1639_v0 }
 0x22f   : > { %v7344_v49 = vadd.f32 %v6212_v41, %v7054_v29  ;;  %v1569_v54 = vpop.f32.mrb[69].mxu1 }
 0x230   : > { %1940 = vmatmul.mubr.bf16.gmra.mrb[96].mxu0 %v1659_v31  ;;  %v7347_v59 = vadd.f32 %v7054_v29, %v1569_v54  ;;  %v6213_v62 = vpop.f32.mrb[70].mxu1 }
 0x231   : > { %1949 = vmatprep.mubr.bf16.mxu0 %v6603_v42  ;;  %v7357_v2 = vadd.f32 %v6213_v62, %v7054_v29  ;;  %v1572_v5 = vpop.f32.mrb[71].mxu1 }
 0x232   : > { %v7363_v12 = vadd.f32 %v7054_v29, %v1572_v5  ;;  %v1662_v5 = vmax.bf16 %v6603_v42, %v1630_v21  ;;  %v6389_v21 = vld [vmem:[%s8865_s5 + $0x60] ss:$16 sps:$4 sm:$0xff]  }
 0x233   : > { %v1642_v14 = vpack.c.bf16 %v7357_v2, %v7344_v49 }
 0x234   : > { %v1641_v16 = vpack.c.bf16 %v7363_v12, %v7347_v59 }
 0x235   : > { %v1674_v59 = vmax.bf16 %v6603_v42, %v1642_v14  ;;  %v6382_v14 = vld [vmem:[%s8865_s5 + $0x2c] ss:$16 sps:$4 sm:$0xff]  }
 0x236   : > { %v6216_v30 = vpop.f32.mrb[72].mxu1  ;;  %v1673_v6 = vmax.bf16 %v6603_v42, %v1641_v16 }
 0x237   : > { %v7374_v48 = vadd.f32 %v6216_v30, %v7054_v29  ;;  %v1585_v45 = vpop.f32.mrb[73].mxu1  ;;  %v6385_v30 = vld [vmem:[%s8865_s5 + $0x44] ss:$16 sps:$4 sm:$0xff]  }
 0x238   : > { %1950 = vmatmul.mubr.bf16.gmra.mrb[100].mxu0 %v1660_v25  ;;  %v7377_v36 = vadd.f32 %v7054_v29, %v1585_v45  ;;  %v6217_v7 = vpop.f32.mrb[74].mxu1  ;;  %v6383_v25 = vld [vmem:[%s8865_s5 + $0x40] ss:$16 sps:$4 sm:$0xff]   ;;  %3359 = vmatprep.subr.bf16.mxu0 %v6385_v30  ;;  %v6380_v30 = vld [vmem:[%s8865_s5 + $0x28] ss:$16 sps:$4 sm:$0xff]  }
 0x239   : > { %1959 = vmatprep.mubr.bf16.mxu0 %v6603_v42  ;;  %v7381_v18 = vadd.f32 %v6217_v7, %v7054_v29  ;;  %v1588_v39 = vpop.f32.mrb[75].mxu1  ;;  %3360 = vmatpush1.bf16.msra.mxu0 %v6383_v25 }
 0x23a   : > { %v7384_v53 = vadd.f32 %v7054_v29, %v1588_v39  ;;  %3361 = vmatprep.subr.bf16.mxu0 %v6391_v40 }
 0x23b   : > { %v1644_v63 = vpack.c.bf16 %v7381_v18, %v7374_v48 }
 0x23c   : > { %v1643_v3 = vpack.c.bf16 %v7384_v53, %v7377_v36  ;;  %v6419_v36 = vld [vmem:[%s8865_s5 + $0x100] ss:$16 sps:$4 sm:$0xff]   ;;  %v6421_v53 = vld [vmem:[%s8865_s5 + $0x104] ss:$16 sps:$4 sm:$0xff]  }
 0x23d   : > { %3362 = vmatpush1.bf16.msra.mxu0 %v6389_v21 }
 0x23e   : > { %v7394_v31 = vpop.f32.mrb[76].mxu1  ;;  %3363 = vmatprep.subr.bf16.mxu0 %v6397_v52  ;;  %v6394_v52 = vld [vmem:[%s8865_s5 + $0x6c] ss:$16 sps:$4 sm:$0xff]  }
 0x23f   : > { %v1601_v41 = vpop.f32.mrb[77].mxu1 }
 0x240   : > { %1960 = vmatmul.mubr.bf16.gmra.mrb[104].mxu0 %v1661_v44  ;;  %v7397_v54 = vadd.f32 %v7054_v29, %v1601_v41  ;;  %v6221_v62 = vpop.f32.mrb[78].mxu1  ;;  %v6374_v41 = vld [vmem:[%s8865_s5 + $0x8] ss:$16 sps:$4 sm:$0xff]  }
 0x241   : > { %1969 = vmatprep.mubr.bf16.mxu0 %v6603_v42  ;;  %v1604_v13 = vpop.f32.mrb[79].mxu1  ;;  %3364 = vmatpush1.bf16.msra.mxu0 %v6395_v50 }
 0x242   : > { %v7407_v20 = vadd.f32 %v7054_v29, %v1604_v13  ;;  %3365 = vmatprep.subr.bf16.mxu0 %v6403_v22 }
 0x244   : > { %v1645_v24 = vpack.c.bf16 %v7407_v20, %v7397_v54  ;;  %v6425_v54 = vld [vmem:[%s8865_s5 + $0x120] ss:$16 sps:$4 sm:$0xff]   ;;  %v6427_v20 = vld [vmem:[%s8865_s5 + $0x124] ss:$16 sps:$4 sm:$0xff]  }
 0x245   : > { %3366 = vmatpush1.bf16.msra.mxu0 %v6401_v33 }
 0x246   : > { %3367 = vmatprep.subr.bf16.mxu0 %v6409_v51  ;;  %v6392_v51 = vld [vmem:[%s8865_s5 + $0x68] ss:$16 sps:$4 sm:$0xff]  }
 0x248   : > { %1970 = vmatmul.mubr.bf16.gmra.mrb[108].mxu0 %v1662_v5  ;;  %v1675_v5 = vmax.bf16 %v6603_v42, %v1643_v3 }
 0x249   : > { %1979 = vmatprep.mubr.bf16.mxu0 %v6603_v42  ;;  %3368 = vmatpush1.bf16.msra.mxu0 %v6407_v37 }
 0x24a   : > { %3369 = vmatprep.subr.bf16.mxu0 %v6415_v61  ;;  %v6406_v61 = vld [vmem:[%s8865_s5 + $0xac] ss:$16 sps:$4 sm:$0xff]  }
 0x24d   : > { %3370 = vmatpush1.bf16.msra.mxu0 %v6413_v27 }
 0x24e   : > { %3371 = vmatprep.subr.bf16.mxu0 %v6421_v53 }
 0x250   : > { %1980 = vmatmul.mubr.bf16.gmra.mrb[112].mxu0 %v1663_v26 }
 0x251   : > { %1989 = vmatprep.mubr.bf16.mxu0 %v6603_v42  ;;  %3372 = vmatpush1.bf16.msra.mxu0 %v6419_v36 }
 0x252   : > { %3373 = vmatprep.subr.bf16.mxu0 %v6427_v20 }
 0x255   : > { %3374 = vmatpush1.bf16.msra.mxu0 %v6425_v54 }
 0x258   : > { %1990 = vmatmul.mubr.bf16.gmra.mrb[116].mxu0 %v1664_v10 }
 0x259   : > { %1999 = vmatprep.mubr.bf16.mxu0 %v6603_v42 }
 0x260   : > { %2000 = vmatmul.mubr.bf16.gmra.mrb[120].mxu0 %v1665_v17  ;;  %v6388_v17 = vld [vmem:[%s8865_s5 + $0x4c] ss:$16 sps:$4 sm:$0xff]  }
 0x261   : > { %2009 = vmatprep.mubr.bf16.mxu0 %v6603_v42 }
 0x268   : > { %2010 = vmatmul.mubr.bf16.gmra.mrb[124].mxu0 %v1666_v28  ;;  %v6386_v28 = vld [vmem:[%s8865_s5 + $0x48] ss:$16 sps:$4 sm:$0xff]  }
 0x269   : > { %2019 = vmatprep.mubr.bf16.mxu0 %v6603_v42 }
 0x270   : > { %2020 = vmatmul.mubr.bf16.gmra.mrb[128].mxu0 %v1667_v32 }
 0x271   : > { %2029 = vmatprep.mubr.bf16.mxu0 %v6603_v42 }
 0x278   : > { %2030 = vmatmul.mubr.bf16.gmra.mrb[132].mxu0 %v1668_v58 }
 0x279   : > { %2039 = vmatprep.mubr.bf16.mxu0 %v6603_v42 }
 0x280   : > { %2040 = vmatmul.mubr.bf16.gmra.mrb[136].mxu0 %v1669_v9 }
 0x281   : > { %2049 = vmatprep.mubr.bf16.mxu0 %v6603_v42 }
 0x288   : > { %2050 = vmatmul.mubr.bf16.gmra.mrb[140].mxu0 %v1670_v34  ;;  %v1676_v34 = vmax.bf16 %v6603_v42, %v1644_v63  ;;  %v6398_v63 = vld [vmem:[%s8865_s5 + $0x88] ss:$16 sps:$4 sm:$0xff]  }
 0x289   : > { %2059 = vmatprep.mubr.bf16.mxu0 %v6603_v42 }
 0x290   : > { %2060 = vmatmul.mubr.bf16.gmra.mrb[144].mxu0 %v1671_v35 }
 0x291   : > { %2069 = vmatprep.mubr.bf16.mxu0 %v6603_v42 }
 0x298   : > { %2070 = vmatmul.mubr.bf16.gmra.mrb[148].mxu0 %v1672_v57 }
 0x299   : > { %2079 = vmatprep.mubr.bf16.mxu0 %v6603_v42 }
 0x2a0   : > { %2080 = vmatmul.mubr.bf16.gmra.mrb[152].mxu0 %v1673_v6 }
 0x2a1   : > { %2089 = vmatprep.mubr.bf16.mxu0 %v6603_v42 }
 0x2a3   : > { %v1821_v46 = vpop.f32.mrb[48].mxu0 }
 0x2a4   : > { %v1823_v4 = vpop.f32.mrb[49].mxu0  ;;  %v1822_v38 = vadd.f32 %v1821_v46, %v7519_v43 }
 0x2a5   : > { %v1825_v47 = vpop.f32.mrb[50].mxu0  ;;  %v1824_v12 = vadd.f32 %v1823_v4, %v7522_v23  ;;  %v1610_v4 = vadd.f32 %v7394_v31, %v7054_v29  ;;  %v6404_v29 = vld [vmem:[%s8865_s5 + $0xa8] ss:$16 sps:$4 sm:$0xff]  }
 0x2a6   : > { %v1826_v56 = vadd.f32 %v1825_v47, %v7519_v43  ;;  %v1827_v0 = vpop.f32.mrb[51].mxu0 }
 0x2a7   : > { %v1828_v16 = vadd.f32 %v1827_v0, %v7522_v23  ;;  %v1677_v0 = vmax.bf16 %v6603_v42, %v1645_v24 }
 0x2a8   : > { %v2138_v45 = vpack.c.bf16 %v1826_v56, %v1822_v38  ;;  %2090 = vmatmul.mubr.bf16.gmra.mrb[156].mxu0 %v1674_v59 }
 0x2a9   : > { %v2139_v7 = vpack.c.bf16 %v1828_v16, %v1824_v12  ;;  %2099 = vmatprep.mubr.bf16.mxu0 %v6603_v42  ;;  %v6412_v16 = vld [vmem:[%s8865_s5 + $0xcc] ss:$16 sps:$4 sm:$0xff]  }
 0x2aa   : > { %v2202_v49 = vmax.bf16 %v6603_v42, %v2138_v45  ;;  %v1646_v45 = vpack.c.bf16 %v1610_v4, %v1610_v4 }
 0x2ab   : > { %v1831_v39 = vpop.f32.mrb[52].mxu0  ;;  %v2203_v44 = vmax.bf16 %v6603_v42, %v2139_v7 }
 0x2ac   : > { %v1833_v2 = vpop.f32.mrb[53].mxu0  ;;  %v1832_v60 = vadd.f32 %v1831_v39, %v7519_v43 }
 0x2ad   : > { %v1835_v62 = vpop.f32.mrb[54].mxu0  ;;  %2502 = vmatprep.mubr.bf16.mxu1 %v2203_v44  ;;  %v1834_v26 = vadd.f32 %v1833_v2, %v7522_v23  ;;  %v6410_v44 = vld [vmem:[%s8865_s5 + $0xc8] ss:$16 sps:$4 sm:$0xff]   ;;  %v6418_v2 = vld [vmem:[%s8865_s5 + $0xec] ss:$16 sps:$4 sm:$0xff]  }
 0x2ae   : > { %v1836_v55 = vadd.f32 %v1835_v62, %v7519_v43  ;;  %v1837_v13 = vpop.f32.mrb[55].mxu0  ;;  %2503 = vmatmul.mubr.bf16.vlgmr.msra.gmra.mrb[80].mxu1 %v2202_v49 }
 0x2af   : > { %v1838_v25 = vadd.f32 %v1837_v13, %v7522_v23  ;;  %3707 = vmatpush1.bf16.msra.mxu1 %v6374_v41  ;;  %v1678_v13 = vmax.bf16 %v6603_v42, %v1646_v45 }
 0x2b0   : > { %v2140_v10 = vpack.c.bf16 %v1836_v55, %v1832_v60  ;;  %2100 = vmatmul.mubr.bf16.gmra.mrb[160].mxu0 %v1675_v5  ;;  %3708 = vmatprep.subr.bf16.mxu1 %v6382_v14 }
 0x2b1   : > { %v2141_v3 = vpack.c.bf16 %v1838_v25, %v1834_v26  ;;  %2109 = vmatprep.mubr.bf16.mxu0 %v6603_v42  ;;  %v6416_v25 = vld [vmem:[%s8865_s5 + $0xe8] ss:$16 sps:$4 sm:$0xff]  }
 0x2b2   : > { %v2204_v50 = vmax.bf16 %v6603_v42, %v2140_v10  ;;  %v6424_v10 = vld [vmem:[%s8865_s5 + $0x10c] ss:$16 sps:$4 sm:$0xff]  }
 0x2b3   : > { %v1841_v21 = vpop.f32.mrb[56].mxu0  ;;  %v2205_v40 = vmax.bf16 %v6603_v42, %v2141_v3  ;;  %3709 = vmatpush1.bf16.msra.mxu1 %v6380_v30  ;;  %v6422_v3 = vld [vmem:[%s8865_s5 + $0x108] ss:$16 sps:$4 sm:$0xff]  }
 0x2b4   : > { %v1843_v32 = vpop.f32.mrb[57].mxu0  ;;  %3710 = vmatprep.subr.bf16.mxu1 %v6388_v17  ;;  %v1842_v9 = vadd.f32 %v1841_v21, %v7519_v43 }
 0x2b5   : > { %v1845_v58 = vpop.f32.mrb[58].mxu0  ;;  %2512 = vmatprep.mubr.bf16.mxu1 %v2205_v40  ;;  %v1844_v35 = vadd.f32 %v1843_v32, %v7522_v23 }
 0x2b6   : > { %v1846_v33 = vadd.f32 %v1845_v58, %v7519_v43  ;;  %v1847_v22 = vpop.f32.mrb[59].mxu0  ;;  %2513 = vmatmul.mubr.bf16.gmra.mrb[84].mxu1 %v2204_v50 }
 0x2b7   : > { %v1848_v37 = vadd.f32 %v1847_v22, %v7522_v23  ;;  %3711 = vmatpush1.bf16.msra.mxu1 %v6386_v28  ;;  %v6430_v28 = vld [vmem:[%s8865_s5 + $0x12c] ss:$16 sps:$4 sm:$0xff]   ;;  %v6428_v22 = vld [vmem:[%s8865_s5 + $0x128] ss:$16 sps:$4 sm:$0xff]  }
 0x2b8   : > { %v2142_v57 = vpack.c.bf16 %v1846_v33, %v1842_v9  ;;  %2110 = vmatmul.mubr.bf16.gmra.mrb[164].mxu0 %v1676_v34  ;;  %3712 = vmatprep.subr.bf16.mxu1 %v6394_v52 }
 0x2b9   : > { %v2143_v6 = vpack.c.bf16 %v1848_v37, %v1844_v35  ;;  %2119 = vmatprep.mubr.bf16.mxu0 %v6603_v42  ;;  %v6431_v35 = vld [vmem:[%s8865_s5 + $0x140] ss:$16 sps:$4 sm:$0xff]   ;;  %v6433_v37 = vld [vmem:[%s8865_s5 + $0x144] ss:$16 sps:$4 sm:$0xff]  }
 0x2ba   : > { %v2206_v27 = vmax.bf16 %v6603_v42, %v2142_v57  ;;  %v6436_v57 = vld [vmem:[%s8865_s5 + $0x14c] ss:$16 sps:$4 sm:$0xff]   ;;  %3375 = vmatprep.subr.bf16.mxu0 %v6433_v37 }
 0x2bb   : > { %v1851_v48 = vpop.f32.mrb[60].mxu0  ;;  %v2207_v18 = vmax.bf16 %v6603_v42, %v2143_v6  ;;  %3713 = vmatpush1.bf16.msra.mxu1 %v6392_v51  ;;  %3376 = vmatpush1.bf16.msra.mxu0 %v6431_v35  ;;  %v6446_v35 = vld [vmem:[%s8865_s5 + $0x188] ss:$16 sps:$4 sm:$0xff]  }
 0x2bc   : > { %v1853_v15 = vpop.f32.mrb[61].mxu0  ;;  %3714 = vmatprep.subr.bf16.mxu1 %v6400_v11  ;;  %v1852_v47 = vadd.f32 %v1851_v48, %v7519_v43  ;;  %v6434_v48 = vld [vmem:[%s8865_s5 + $0x148] ss:$16 sps:$4 sm:$0xff]  }
 0x2bd   : > { %v1855_v46 = vpop.f32.mrb[62].mxu0  ;;  %2522 = vmatprep.mubr.bf16.mxu1 %v2207_v18  ;;  %v1854_v59 = vadd.f32 %v1853_v15, %v7522_v23 }
 0x2be   : > { %v1856_v38 = vadd.f32 %v1855_v46, %v7519_v43  ;;  %v1857_v56 = vpop.f32.mrb[63].mxu0  ;;  %2523 = vmatmul.mubr.bf16.gmra.mrb[88].mxu1 %v2206_v27 }
 0x2bf   : > { %v1858_v12 = vadd.f32 %v1857_v56, %v7522_v23  ;;  %3715 = vmatpush1.bf16.msra.mxu1 %v6398_v63 }
 0x2c0   : > { %v2144_v31 = vpack.c.bf16 %v1856_v38, %v1852_v47  ;;  %2120 = vmatmul.mubr.bf16.gmra.mrb[168].mxu0 %v1677_v0  ;;  %3716 = vmatprep.subr.bf16.mxu1 %v6406_v61 }
 0x2c1   : > { %v2145_v24 = vpack.c.bf16 %v1858_v12, %v1854_v59  ;;  %2129 = vmatprep.mubr.bf16.mxu0 %v6603_v42 }
 0x2c2   : > { %v2208_v49 = vmax.bf16 %v6603_v42, %v2144_v31 }
 0x2c3   : > { %v1861_v7 = vpop.f32.mrb[64].mxu0  ;;  %v2209_v39 = vmax.bf16 %v6603_v42, %v2145_v24  ;;  %3717 = vmatpush1.bf16.msra.mxu1 %v6404_v29 }
 0x2c4   : > { %v1863_v41 = vpop.f32.mrb[65].mxu0  ;;  %3718 = vmatprep.subr.bf16.mxu1 %v6412_v16  ;;  %v1862_v62 = vadd.f32 %v1861_v7, %v7519_v43 }
 0x2c5   : > { %v1865_v14 = vpop.f32.mrb[66].mxu0  ;;  %2532 = vmatprep.mubr.bf16.mxu1 %v2209_v39  ;;  %v1864_v5 = vadd.f32 %v1863_v41, %v7522_v23  ;;  %v6437_v39 = vld [vmem:[%s8865_s5 + $0x160] ss:$16 sps:$4 sm:$0xff]   ;;  %v6440_v41 = vld [vmem:[%s8865_s5 + $0x168] ss:$16 sps:$4 sm:$0xff]  }
 0x2c6   : > { %v1866_v60 = vadd.f32 %v1865_v14, %v7519_v43  ;;  %v1867_v55 = vpop.f32.mrb[67].mxu0  ;;  %2533 = vmatmul.mubr.bf16.gmra.mrb[92].mxu1 %v2208_v49 }
 0x2c7   : > { %v1868_v26 = vadd.f32 %v1867_v55, %v7522_v23  ;;  %3719 = vmatpush1.bf16.msra.mxu1 %v6410_v44  ;;  %v6439_v44 = vld [vmem:[%s8865_s5 + $0x164] ss:$16 sps:$4 sm:$0xff]  }
 0x2c8   : > { %v2146_v30 = vpack.c.bf16 %v1866_v60, %v1862_v62  ;;  %2130 = vmatmul.mubr.bf16.gmra.mrb[172].mxu0 %v1678_v13  ;;  %3720 = vmatprep.subr.bf16.mxu1 %v6418_v2  ;;  %v6442_v2 = vld [vmem:[%s8865_s5 + $0x16c] ss:$16 sps:$4 sm:$0xff]  }
 0x2c9   : > { %v2147_v17 = vpack.c.bf16 %v1868_v26, %v1864_v5  ;;  %3377 = vmatprep.subr.bf16.mxu0 %v6439_v44  ;;  %v6454_v44 = vld [vmem:[%s8865_s5 + $0x1ac] ss:$16 sps:$4 sm:$0xff]  }
 0x2ca   : > { %v2210_v40 = vmax.bf16 %v6603_v42, %v2146_v30  ;;  %3378 = vmatpush1.bf16.msra.mxu0 %v6437_v39  ;;  %v6452_v39 = vld [vmem:[%s8865_s5 + $0x1a8] ss:$16 sps:$4 sm:$0xff]  }
 0x2cb   : > { %v1871_v36 = vpop.f32.mrb[68].mxu0  ;;  %v2211_v53 = vmax.bf16 %v6603_v42, %v2147_v17  ;;  %3721 = vmatpush1.bf16.msra.mxu1 %v6416_v25 }
 0x2cc   : > { %v1873_v21 = vpop.f32.mrb[69].mxu0  ;;  %3722 = vmatprep.subr.bf16.mxu1 %v6424_v10  ;;  %v1872_v50 = vadd.f32 %v1871_v36, %v7519_v43 }
 0x2cd   : > { %v1875_v32 = vpop.f32.mrb[70].mxu0  ;;  %2542 = vmatprep.mubr.bf16.mxu1 %v2211_v53  ;;  %v1874_v9 = vadd.f32 %v1873_v21, %v7522_v23 }
 0x2ce   : > { %v1876_v52 = vadd.f32 %v1875_v32, %v7519_v43  ;;  %v1877_v58 = vpop.f32.mrb[71].mxu0  ;;  %2543 = vmatmul.mubr.bf16.gmra.mrb[96].mxu1 %v2210_v40 }
 0x2cf   : > { %v1878_v33 = vadd.f32 %v1877_v58, %v7522_v23  ;;  %3723 = vmatpush1.bf16.msra.mxu1 %v6422_v3 }
 0x2d0   : > { %v2148_v34 = vpack.c.bf16 %v1876_v52, %v1872_v50  ;;  %3724 = vmatprep.subr.bf16.mxu1 %v6430_v28 }
 0x2d1   : > { %v2149_v51 = vpack.c.bf16 %v1878_v33, %v1874_v9 }
 0x2d2   : > { %v2212_v63 = vmax.bf16 %v6603_v42, %v2148_v34  ;;  %v6445_v34 = vld [vmem:[%s8865_s5 + $0x184] ss:$16 sps:$4 sm:$0xff]  }
 0x2d3   : > { %v1881_v11 = vpop.f32.mrb[72].mxu0  ;;  %v2213_v6 = vmax.bf16 %v6603_v42, %v2149_v51  ;;  %3725 = vmatpush1.bf16.msra.mxu1 %v6428_v22  ;;  %v6443_v22 = vld [vmem:[%s8865_s5 + $0x180] ss:$16 sps:$4 sm:$0xff]   ;;  %v6448_v51 = vld [vmem:[%s8865_s5 + $0x18c] ss:$16 sps:$4 sm:$0xff]   ;;  %3379 = vmatprep.subr.bf16.mxu0 %v6445_v34 }
 0x2d4   : > { %v1883_v18 = vpop.f32.mrb[73].mxu0  ;;  %3726 = vmatprep.subr.bf16.mxu1 %v6436_v57  ;;  %v1882_v27 = vadd.f32 %v1881_v11, %v7519_v43  ;;  %3380 = vmatpush1.bf16.msra.mxu0 %v6443_v22 }
 0x2d5   : > { %v1885_v15 = vpop.f32.mrb[74].mxu0  ;;  %2552 = vmatprep.mubr.bf16.mxu1 %v2213_v6  ;;  %v1884_v4 = vadd.f32 %v1883_v18, %v7522_v23 }
 0x2d6   : > { %v1886_v61 = vadd.f32 %v1885_v15, %v7519_v43  ;;  %v1887_v46 = vpop.f32.mrb[75].mxu0  ;;  %2553 = vmatmul.mubr.bf16.gmra.mrb[100].mxu1 %v2212_v63 }
 0x2d7   : > { %v1888_v47 = vadd.f32 %v1887_v46, %v7522_v23  ;;  %3727 = vmatpush1.bf16.msra.mxu1 %v6434_v48 }
 0x2d8   : > { %v2150_v38 = vpack.c.bf16 %v1886_v61, %v1882_v27  ;;  %3728 = vmatprep.subr.bf16.mxu1 %v6442_v2 }
 0x2d9   : > { %v2151_v56 = vpack.c.bf16 %v1888_v47, %v1884_v4 }
 0x2da   : > { %v2214_v29 = vmax.bf16 %v6603_v42, %v2150_v38 }
 0x2db   : > { %v1891_v0 = vpop.f32.mrb[76].mxu0  ;;  %v2215_v59 = vmax.bf16 %v6603_v42, %v2151_v56  ;;  %3729 = vmatpush1.bf16.msra.mxu1 %v6440_v41 }
 0x2dc   : > { %v1893_v12 = vpop.f32.mrb[77].mxu0  ;;  %v1892_v16 = vadd.f32 %v1891_v0, %v7519_v43  ;;  %3730 = vmatprep.subr.bf16.mxu1 %v6448_v51 }
 0x2dd   : > { %v1895_v31 = vpop.f32.mrb[78].mxu0  ;;  %2562 = vmatprep.mubr.bf16.mxu1 %v2215_v59  ;;  %v1894_v24 = vadd.f32 %v1893_v12, %v7522_v23 }
 0x2de   : > { %v1896_v54 = vadd.f32 %v1895_v31, %v7519_v43  ;;  %v1897_v20 = vpop.f32.mrb[79].mxu0  ;;  %2563 = vmatmul.mubr.bf16.gmra.mrb[104].mxu1 %v2214_v29 }
 0x2df   : > { %v1898_v45 = vadd.f32 %v1897_v20, %v7522_v23  ;;  %3731 = vmatpush1.bf16.msra.mxu1 %v6446_v35  ;;  %v6461_v35 = vld [vmem:[%s8865_s5 + $0x1c8] ss:$16 sps:$4 sm:$0xff]  }
 0x2e0   : > { %v2152_v7 = vpack.c.bf16 %v1896_v54, %v1892_v16  ;;  %v6451_v54 = vld [vmem:[%s8865_s5 + $0x1a4] ss:$16 sps:$4 sm:$0xff]   ;;  %3732 = vmatprep.subr.bf16.mxu1 %v6454_v44 }
 0x2e1   : > { %v2153_v49 = vpack.c.bf16 %v1898_v45, %v1894_v24  ;;  %v6449_v45 = vld [vmem:[%s8865_s5 + $0x1a0] ss:$16 sps:$4 sm:$0xff]   ;;  %3381 = vmatprep.subr.bf16.mxu0 %v6451_v54 }
 0x2e2   : > { %v2216_v55 = vmax.bf16 %v6603_v42, %v2152_v7  ;;  %3382 = vmatpush1.bf16.msra.mxu0 %v6449_v45 }
 0x2e3   : > { %v1901_v14 = vpop.f32.mrb[80].mxu0  ;;  %v2217_v62 = vmax.bf16 %v6603_v42, %v2153_v49  ;;  %v6457_v49 = vld [vmem:[%s8865_s5 + $0x1c4] ss:$16 sps:$4 sm:$0xff]   ;;  %3733 = vmatpush1.bf16.msra.mxu1 %v6452_v39  ;;  %v6466_v39 = vld [vmem:[%s8865_s5 + $0x1ec] ss:$16 sps:$4 sm:$0xff]  }
 0x2e4   : > { %v1903_v60 = vpop.f32.mrb[81].mxu0  ;;  %v1902_v5 = vadd.f32 %v1901_v14, %v7519_v43  ;;  %3383 = vmatprep.subr.bf16.mxu0 %v6457_v49 }
 0x2e5   : > { %v1905_v13 = vpop.f32.mrb[82].mxu0  ;;  %2572 = vmatprep.mubr.bf16.mxu1 %v2217_v62  ;;  %v1904_v30 = vadd.f32 %v1903_v60, %v7522_v23  ;;  %v6455_v62 = vld [vmem:[%s8865_s5 + $0x1c0] ss:$16 sps:$4 sm:$0xff]  }
 0x2e6   : > { %v1906_v26 = vadd.f32 %v1905_v13, %v7519_v43  ;;  %v1907_v25 = vpop.f32.mrb[83].mxu0  ;;  %2573 = vmatmul.mubr.bf16.gmra.mrb[108].mxu1 %v2216_v55  ;;  %3384 = vmatpush1.bf16.msra.mxu0 %v6455_v62 }
 0x2e7   : > { %v1908_v10 = vadd.f32 %v1907_v25, %v7522_v23 }
 0x2e8   : > { %v2154_v17 = vpack.c.bf16 %v1906_v26, %v1902_v5 }
 0x2e9   : > { %v2155_v36 = vpack.c.bf16 %v1908_v10, %v1904_v30  ;;  %v6460_v30 = vld [vmem:[%s8865_s5 + $0x1e4] ss:$16 sps:$4 sm:$0xff]  }
 0x2ea   : > { %v2218_v40 = vmax.bf16 %v6603_v42, %v2154_v17  ;;  %3385 = vmatprep.subr.bf16.mxu0 %v6460_v30 }
 0x2eb   : > { %v1911_v53 = vpop.f32.mrb[84].mxu0  ;;  %v2219_v3 = vmax.bf16 %v6603_v42, %v2155_v36  ;;  %v6458_v36 = vld [vmem:[%s8865_s5 + $0x1e0] ss:$16 sps:$4 sm:$0xff]  }
 0x2ec   : > { %v1913_v21 = vpop.f32.mrb[85].mxu0  ;;  %v1912_v32 = vadd.f32 %v1911_v53, %v7519_v43  ;;  %3386 = vmatpush1.bf16.msra.mxu0 %v6458_v36 }
 0x2ed   : > { %v1915_v28 = vpop.f32.mrb[86].mxu0  ;;  %2582 = vmatprep.mubr.bf16.mxu1 %v2219_v3  ;;  %v1914_v58 = vadd.f32 %v1913_v21, %v7522_v23 }
 0x2ee   : > { %v1916_v50 = vadd.f32 %v1915_v28, %v7519_v43  ;;  %v1917_v52 = vpop.f32.mrb[87].mxu0  ;;  %2583 = vmatmul.mubr.bf16.gmra.mrb[112].mxu1 %v2218_v40 }
 0x2ef   : > { %v1918_v9 = vadd.f32 %v1917_v52, %v7522_v23 }
 0x2f0   : > { %v2156_v33 = vpack.c.bf16 %v1916_v50, %v1912_v32 }
 0x2f1   : > { %v2157_v37 = vpack.c.bf16 %v1918_v9, %v1914_v58 }
 0x2f2   : > { %v2220_v48 = vmax.bf16 %v6603_v42, %v2156_v33 }
 0x2f3   : > { %v1921_v57 = vpop.f32.mrb[88].mxu0  ;;  %v2221_v11 = vmax.bf16 %v6603_v42, %v2157_v37  ;;  %v6463_v37 = vld [vmem:[%s8865_s5 + $0x1cc] ss:$16 sps:$4 sm:$0xff]  }
 0x2f4   : > { %v1923_v6 = vpop.f32.mrb[89].mxu0  ;;  %v1922_v63 = vadd.f32 %v1921_v57, %v7519_v43  ;;  %3734 = vmatprep.subr.bf16.mxu1 %v6463_v37 }
 0x2f5   : > { %v1925_v18 = vpop.f32.mrb[90].mxu0  ;;  %2592 = vmatprep.mubr.bf16.mxu1 %v2221_v11  ;;  %v1924_v61 = vadd.f32 %v1923_v6, %v7522_v23  ;;  %3735 = vmatpush1.bf16.msra.mxu1 %v6461_v35 }
 0x2f6   : > { %v1926_v15 = vadd.f32 %v1925_v18, %v7519_v43  ;;  %v1927_v27 = vpop.f32.mrb[91].mxu0  ;;  %2593 = vmatmul.mubr.bf16.gmra.mrb[116].mxu1 %v2220_v48  ;;  %3736 = vmatprep.subr.bf16.mxu1 %v6466_v39 }
 0x2f7   : > { %v1928_v46 = vadd.f32 %v1927_v27, %v7522_v23 }
 0x2f8   : > { %v2158_v4 = vpack.c.bf16 %v1926_v15, %v1922_v63 }
 0x2f9   : > { %v2159_v47 = vpack.c.bf16 %v1928_v46, %v1924_v61 }
 0x2fa   : > { %v2222_v59 = vmax.bf16 %v6603_v42, %v2158_v4 }
 0x2fb   : > { %v1931_v38 = vpop.f32.mrb[92].mxu0  ;;  %v2223_v56 = vmax.bf16 %v6603_v42, %v2159_v47 }
 0x2fc   : > { %v1933_v0 = vpop.f32.mrb[93].mxu0  ;;  %v1932_v29 = vadd.f32 %v1931_v38, %v7519_v43 }
 0x2fd   : > { %v1935_v12 = vpop.f32.mrb[94].mxu0  ;;  %2602 = vmatprep.mubr.bf16.mxu1 %v2223_v56  ;;  %v1934_v20 = vadd.f32 %v1933_v0, %v7522_v23 }
 0x2fe   : > { %v1936_v31 = vadd.f32 %v1935_v12, %v7519_v43  ;;  %v1937_v16 = vpop.f32.mrb[95].mxu0  ;;  %2603 = vmatmul.mubr.bf16.gmra.mrb[120].mxu1 %v2222_v59 }
 0x2ff   : > { %v1938_v24 = vadd.f32 %v1937_v16, %v7522_v23 }
 0x300   : > { %v2160_v7 = vpack.c.bf16 %v1936_v31, %v1932_v29 }
 0x301   : > { %v2161_v41 = vpack.c.bf16 %v1938_v24, %v1934_v20 }
 0x302   : > { %v2224_v55 = vmax.bf16 %v6603_v42, %v2160_v7  ;;  %v6464_v7 = vld [vmem:[%s8865_s5 + $0x1e8] ss:$16 sps:$4 sm:$0xff]  }
 0x303   : > { %v1941_v2 = vpop.f32.mrb[96].mxu0  ;;  %v2225_v14 = vmax.bf16 %v6603_v42, %v2161_v41  ;;  %3737 = vmatpush1.bf16.msra.mxu1 %v6464_v7 }
 0x304   : > { %v1943_v60 = vpop.f32.mrb[97].mxu0  ;;  %v1942_v5 = vadd.f32 %v1941_v2, %v7519_v43 }
 0x305   : > { %v1945_v13 = vpop.f32.mrb[98].mxu0  ;;  %2612 = vmatprep.mubr.bf16.mxu1 %v2225_v14  ;;  %v1944_v10 = vadd.f32 %v1943_v60, %v7522_v23 }
 0x306   : > { %v1946_v26 = vadd.f32 %v1945_v13, %v7519_v43  ;;  %v1947_v25 = vpop.f32.mrb[99].mxu0  ;;  %2613 = vmatmul.mubr.bf16.gmra.mrb[124].mxu1 %v2224_v55 }
 0x307   : > { %v1948_v17 = vadd.f32 %v1947_v25, %v7522_v23 }
 0x308   : > { %v2162_v53 = vpack.c.bf16 %v1946_v26, %v1942_v5 }
 0x309   : > { %v2163_v3 = vpack.c.bf16 %v1948_v17, %v1944_v10 }
 0x30a   : > { %v2226_v32 = vmax.bf16 %v6603_v42, %v2162_v53 }
 0x30b   : > { %v1951_v21 = vpop.f32.mrb[100].mxu0  ;;  %v2227_v40 = vmax.bf16 %v6603_v42, %v2163_v3 }
 0x30c   : > { %v1953_v28 = vpop.f32.mrb[101].mxu0  ;;  %v1952_v52 = vadd.f32 %v1951_v21, %v7519_v43 }
 0x30d   : > { %v1955_v50 = vpop.f32.mrb[102].mxu0  ;;  %2622 = vmatprep.mubr.bf16.mxu1 %v2227_v40  ;;  %v1954_v33 = vadd.f32 %v1953_v28, %v7522_v23 }
 0x30e   : > { %v1956_v58 = vadd.f32 %v1955_v50, %v7519_v43  ;;  %v1957_v9 = vpop.f32.mrb[103].mxu0  ;;  %2623 = vmatmul.mubr.bf16.gmra.mrb[128].mxu1 %v2226_v32 }
 0x30f   : > { %v1958_v22 = vadd.f32 %v1957_v9, %v7522_v23 }
 0x310   : > { %v2164_v34 = vpack.c.bf16 %v1956_v58, %v1952_v52 }
 0x311   : > { %v2165_v51 = vpack.c.bf16 %v1958_v22, %v1954_v33 }
 0x312   : > { %v2228_v48 = vmax.bf16 %v6603_v42, %v2164_v34 }
 0x313   : > { %v1961_v57 = vpop.f32.mrb[104].mxu0  ;;  %v2229_v11 = vmax.bf16 %v6603_v42, %v2165_v51 }
 0x314   : > { %v1963_v6 = vpop.f32.mrb[105].mxu0  ;;  %v1962_v63 = vadd.f32 %v1961_v57, %v7519_v43 }
 0x315   : > { %v1965_v18 = vpop.f32.mrb[106].mxu0  ;;  %2632 = vmatprep.mubr.bf16.mxu1 %v2229_v11  ;;  %v1964_v61 = vadd.f32 %v1963_v6, %v7522_v23 }
 0x316   : > { %v1966_v15 = vadd.f32 %v1965_v18, %v7519_v43  ;;  %v1967_v27 = vpop.f32.mrb[107].mxu0  ;;  %2633 = vmatmul.mubr.bf16.gmra.mrb[132].mxu1 %v2228_v48 }
 0x317   : > { %v1968_v46 = vadd.f32 %v1967_v27, %v7522_v23 }
 0x318   : > { %v2166_v4 = vpack.c.bf16 %v1966_v15, %v1962_v63 }
 0x319   : > { %v2167_v47 = vpack.c.bf16 %v1968_v46, %v1964_v61 }
 0x31a   : > { %v2230_v59 = vmax.bf16 %v6603_v42, %v2166_v4 }
 0x31b   : > { %v1971_v38 = vpop.f32.mrb[108].mxu0  ;;  %v2231_v56 = vmax.bf16 %v6603_v42, %v2167_v47 }
 0x31c   : > { %v1973_v0 = vpop.f32.mrb[109].mxu0  ;;  %v1972_v29 = vadd.f32 %v1971_v38, %v7519_v43 }
 0x31d   : > { %v1975_v12 = vpop.f32.mrb[110].mxu0  ;;  %2642 = vmatprep.mubr.bf16.mxu1 %v2231_v56  ;;  %v1974_v54 = vadd.f32 %v1973_v0, %v7522_v23 }
 0x31e   : > { %v1976_v31 = vadd.f32 %v1975_v12, %v7519_v43  ;;  %v1977_v16 = vpop.f32.mrb[111].mxu0  ;;  %2643 = vmatmul.mubr.bf16.gmra.mrb[136].mxu1 %v2230_v59 }
 0x31f   : > { %v1978_v20 = vadd.f32 %v1977_v16, %v7522_v23 }
 0x320   : > { %v2168_v24 = vpack.c.bf16 %v1976_v31, %v1972_v29 }
 0x321   : > { %v2169_v45 = vpack.c.bf16 %v1978_v20, %v1974_v54 }
 0x322   : > { %v2232_v2 = vmax.bf16 %v6603_v42, %v2168_v24 }
 0x323   : > { %v1981_v44 = vpop.f32.mrb[112].mxu0  ;;  %v2233_v41 = vmax.bf16 %v6603_v42, %v2169_v45 }
 0x324   : > { %v1983_v49 = vpop.f32.mrb[113].mxu0  ;;  %v1982_v62 = vadd.f32 %v1981_v44, %v7519_v43 }
 0x325   : > { %v1985_v14 = vpop.f32.mrb[114].mxu0  ;;  %2652 = vmatprep.mubr.bf16.mxu1 %v2233_v41  ;;  %v1984_v13 = vadd.f32 %v1983_v49, %v7522_v23 }
 0x326   : > { %v1986_v60 = vadd.f32 %v1985_v14, %v7519_v43  ;;  %v1987_v55 = vpop.f32.mrb[115].mxu0  ;;  %2653 = vmatmul.mubr.bf16.gmra.mrb[140].mxu1 %v2232_v2 }
 0x327   : > { %v1988_v5 = vadd.f32 %v1987_v55, %v7522_v23 }
 0x328   : > { %v2170_v26 = vpack.c.bf16 %v1986_v60, %v1982_v62 }
 0x329   : > { %v2171_v25 = vpack.c.bf16 %v1988_v5, %v1984_v13 }
 0x32a   : > { %v2234_v36 = vmax.bf16 %v6603_v42, %v2170_v26 }
 0x32b   : > { %v1991_v30 = vpop.f32.mrb[116].mxu0  ;;  %v2235_v10 = vmax.bf16 %v6603_v42, %v2171_v25 }
 0x32c   : > { %v1993_v17 = vpop.f32.mrb[117].mxu0  ;;  %v1992_v3 = vadd.f32 %v1991_v30, %v7519_v43 }
 0x32d   : > { %v1995_v53 = vpop.f32.mrb[118].mxu0  ;;  %2662 = vmatprep.mubr.bf16.mxu1 %v2235_v10  ;;  %v1994_v28 = vadd.f32 %v1993_v17, %v7522_v23 }
 0x32e   : > { %v1996_v21 = vadd.f32 %v1995_v53, %v7519_v43  ;;  %v1997_v40 = vpop.f32.mrb[119].mxu0  ;;  %2663 = vmatmul.mubr.bf16.gmra.mrb[144].mxu1 %v2234_v36 }
 0x32f   : > { %v1998_v32 = vadd.f32 %v1997_v40, %v7522_v23 }
 0x330   : > { %v2172_v50 = vpack.c.bf16 %v1996_v21, %v1992_v3 }
 0x331   : > { %v2173_v52 = vpack.c.bf16 %v1998_v32, %v1994_v28 }
 0x332   : > { %v2236_v22 = vmax.bf16 %v6603_v42, %v2172_v50 }
 0x333   : > { %v2001_v58 = vpop.f32.mrb[120].mxu0  ;;  %v2237_v9 = vmax.bf16 %v6603_v42, %v2173_v52 }
 0x334   : > { %v2003_v33 = vpop.f32.mrb[121].mxu0  ;;  %v2002_v35 = vadd.f32 %v2001_v58, %v7519_v43 }
 0x335   : > { %v2005_v34 = vpop.f32.mrb[122].mxu0  ;;  %2672 = vmatprep.mubr.bf16.mxu1 %v2237_v9  ;;  %v2004_v57 = vadd.f32 %v2003_v33, %v7522_v23 }
 0x336   : > { %v2006_v37 = vadd.f32 %v2005_v34, %v7519_v43  ;;  %v2007_v51 = vpop.f32.mrb[123].mxu0  ;;  %2673 = vmatmul.mubr.bf16.gmra.mrb[148].mxu1 %v2236_v22 }
 0x337   : > { %v2008_v11 = vadd.f32 %v2007_v51, %v7522_v23 }
 0x338   : > { %v2174_v6 = vpack.c.bf16 %v2006_v37, %v2002_v35 }
 0x339   : > { %v2175_v48 = vpack.c.bf16 %v2008_v11, %v2004_v57 }
 0x33a   : > { %v2238_v27 = vmax.bf16 %v6603_v42, %v2174_v6 }
 0x33b   : > { %v2011_v18 = vpop.f32.mrb[124].mxu0  ;;  %v2239_v63 = vmax.bf16 %v6603_v42, %v2175_v48 }
 0x33c   : > { %v2013_v15 = vpop.f32.mrb[125].mxu0  ;;  %v2012_v46 = vadd.f32 %v2011_v18, %v7519_v43 }
 0x33d   : > { %v2015_v61 = vpop.f32.mrb[126].mxu0  ;;  %2682 = vmatprep.mubr.bf16.mxu1 %v2239_v63  ;;  %v2014_v38 = vadd.f32 %v2013_v15, %v7522_v23 }
 0x33e   : > { %v2016_v4 = vadd.f32 %v2015_v61, %v7519_v43  ;;  %v2017_v47 = vpop.f32.mrb[127].mxu0  ;;  %2683 = vmatmul.mubr.bf16.gmra.mrb[152].mxu1 %v2238_v27 }
 0x33f   : > { %v2018_v56 = vadd.f32 %v2017_v47, %v7522_v23 }
 0x340   : > { %v2176_v0 = vpack.c.bf16 %v2016_v4, %v2012_v46 }
 0x341   : > { %v2177_v59 = vpack.c.bf16 %v2018_v56, %v2014_v38 }
 0x342   : > { %v2240_v16 = vmax.bf16 %v6603_v42, %v2176_v0 }
 0x343   : > { %v2021_v12 = vpop.f32.mrb[128].mxu0  ;;  %v2241_v29 = vmax.bf16 %v6603_v42, %v2177_v59 }
 0x344   : > { %v2023_v31 = vpop.f32.mrb[129].mxu0  ;;  %v2022_v20 = vadd.f32 %v2021_v12, %v7519_v43 }
 0x345   : > { %v2025_v54 = vpop.f32.mrb[130].mxu0  ;;  %2692 = vmatprep.mubr.bf16.mxu1 %v2241_v29  ;;  %v2024_v7 = vadd.f32 %v2023_v31, %v7522_v23 }
 0x346   : > { %v2026_v24 = vadd.f32 %v2025_v54, %v7519_v43  ;;  %v2027_v45 = vpop.f32.mrb[131].mxu0  ;;  %2693 = vmatmul.mubr.bf16.gmra.mrb[156].mxu1 %v2240_v16 }
 0x347   : > { %v2028_v39 = vadd.f32 %v2027_v45, %v7522_v23 }
 0x348   : > { %v2178_v44 = vpack.c.bf16 %v2026_v24, %v2022_v20 }
 0x349   : > { %v2179_v41 = vpack.c.bf16 %v2028_v39, %v2024_v7 }
 0x34a   : > { %v2242_v62 = vmax.bf16 %v6603_v42, %v2178_v44 }
 0x34b   : > { %v2031_v49 = vpop.f32.mrb[132].mxu0  ;;  %v2243_v2 = vmax.bf16 %v6603_v42, %v2179_v41 }
 0x34c   : > { %v2033_v14 = vpop.f32.mrb[133].mxu0  ;;  %v2032_v55 = vadd.f32 %v2031_v49, %v7519_v43 }
 0x34d   : > { %v2035_v60 = vpop.f32.mrb[134].mxu0  ;;  %2702 = vmatprep.mubr.bf16.mxu1 %v2243_v2  ;;  %v2034_v26 = vadd.f32 %v2033_v14, %v7522_v23 }
 0x34e   : > { %v2036_v13 = vadd.f32 %v2035_v60, %v7519_v43  ;;  %v2037_v5 = vpop.f32.mrb[135].mxu0  ;;  %2703 = vmatmul.mubr.bf16.gmra.mrb[160].mxu1 %v2242_v62 }
 0x34f   : > { %v2038_v25 = vadd.f32 %v2037_v5, %v7522_v23 }
 0x350   : > { %v2180_v30 = vpack.c.bf16 %v2036_v13, %v2032_v55 }
 0x351   : > { %v2181_v10 = vpack.c.bf16 %v2038_v25, %v2034_v26 }
 0x352   : > { %v2244_v3 = vmax.bf16 %v6603_v42, %v2180_v30 }
 0x353   : > { %v2041_v17 = vpop.f32.mrb[136].mxu0  ;;  %v2245_v36 = vmax.bf16 %v6603_v42, %v2181_v10 }
 0x354   : > { %v2043_v53 = vpop.f32.mrb[137].mxu0  ;;  %v2042_v40 = vadd.f32 %v2041_v17, %v7519_v43 }
 0x355   : > { %v2045_v21 = vpop.f32.mrb[138].mxu0  ;;  %2712 = vmatprep.mubr.bf16.mxu1 %v2245_v36  ;;  %v2044_v50 = vadd.f32 %v2043_v53, %v7522_v23 }
 0x356   : > { %v2046_v28 = vadd.f32 %v2045_v21, %v7519_v43  ;;  %v2047_v32 = vpop.f32.mrb[139].mxu0  ;;  %2713 = vmatmul.mubr.bf16.gmra.mrb[164].mxu1 %v2244_v3 }
 0x357   : > { %v2048_v52 = vadd.f32 %v2047_v32, %v7522_v23  ;;  %v2298_v32 = vld [vmem:[%s8869_s9] sm:$0x3] }
 0x358   : > { %v2182_v58 = vpack.c.bf16 %v2046_v28, %v2042_v40 }
 0x359   : > { %v2183_v9 = vpack.c.bf16 %v2048_v52, %v2044_v50 }
 0x35a   : > { %v2246_v35 = vmax.bf16 %v6603_v42, %v2182_v58 }
 0x35b   : > { %v2051_v33 = vpop.f32.mrb[140].mxu0  ;;  %v2247_v22 = vmax.bf16 %v6603_v42, %v2183_v9 }
 0x35c   : > { %v2053_v34 = vpop.f32.mrb[141].mxu0  ;;  %v2052_v51 = vadd.f32 %v2051_v33, %v7519_v43 }
 0x35d   : > { %v2055_v37 = vpop.f32.mrb[142].mxu0  ;;  %2722 = vmatprep.mubr.bf16.mxu1 %v2247_v22  ;;  %v2054_v6 = vadd.f32 %v2053_v34, %v7522_v23  ;;  %v7858_v34 = vrot.slane %v2298_v32, %v7503_v8 }
 0x35e   : > { %v2056_v57 = vadd.f32 %v2055_v37, %v7519_v43  ;;  %v2057_v11 = vpop.f32.mrb[143].mxu0  ;;  %2723 = vmatmul.mubr.bf16.gmra.mrb[168].mxu1 %v2246_v35 }
 0x35f   : > { %v2058_v48 = vadd.f32 %v2057_v11, %v7522_v23 }
 0x360   : > { %v2184_v18 = vpack.c.bf16 %v2056_v57, %v2052_v51  ;;  %v7861_v51 = vrot.slane %v2298_v32, %v7509_v19 }
 0x361   : > { %v2185_v63 = vpack.c.bf16 %v2058_v48, %v2054_v6 }
 0x362   : > { %v2248_v46 = vmax.bf16 %v6603_v42, %v2184_v18 }
 0x363   : > { %v2061_v15 = vpop.f32.mrb[144].mxu0  ;;  %v2249_v27 = vmax.bf16 %v6603_v42, %v2185_v63 }
 0x364   : > { %v2063_v61 = vpop.f32.mrb[145].mxu0  ;;  %v2062_v47 = vadd.f32 %v2061_v15, %v7519_v43 }
 0x365   : > { %v2065_v4 = vpop.f32.mrb[146].mxu0  ;;  %2732 = vmatprep.mubr.bf16.mxu1 %v2249_v27  ;;  %v2064_v0 = vadd.f32 %v2063_v61, %v7522_v23 }
 0x366   : > { %v2066_v38 = vadd.f32 %v2065_v4, %v7519_v43  ;;  %v2067_v56 = vpop.f32.mrb[147].mxu0  ;;  %2733 = vmatmul.mubr.bf16.gmra.mrb[172].mxu1 %v2248_v46 }
 0x367   : > { %v2068_v59 = vadd.f32 %v2067_v56, %v7522_v23 }
 0x368   : > { %v2186_v12 = vpack.c.bf16 %v2066_v38, %v2062_v47 }
 0x369   : > { %v2187_v29 = vpack.c.bf16 %v2068_v59, %v2064_v0 }
 0x36a   : > { %v2250_v20 = vmax.bf16 %v6603_v42, %v2186_v12 }
 0x36b   : > { %v2071_v31 = vpop.f32.mrb[148].mxu0  ;;  %v2251_v16 = vmax.bf16 %v6603_v42, %v2187_v29 }
 0x36c   : > { %v2073_v54 = vpop.f32.mrb[149].mxu0  ;;  %v2072_v45 = vadd.f32 %v2071_v31, %v7519_v43 }
 0x36d   : > { %v2075_v24 = vpop.f32.mrb[150].mxu0  ;;  %2742 = vmatprep.mubr.bf16.mxu1 %v2251_v16  ;;  %v2074_v44 = vadd.f32 %v2073_v54, %v7522_v23 }
 0x36e   : > { %v2076_v7 = vadd.f32 %v2075_v24, %v7519_v43  ;;  %v2077_v39 = vpop.f32.mrb[151].mxu0  ;;  %2743 = vmatmul.mubr.bf16.gmra.mrb[176].mxu1 %v2250_v20 }
 0x36f   : > { %v2078_v41 = vadd.f32 %v2077_v39, %v7522_v23 }
 0x370   : > { %v2188_v49 = vpack.c.bf16 %v2076_v7, %v2072_v45 }
 0x371   : > { %v2189_v2 = vpack.c.bf16 %v2078_v41, %v2074_v44 }
 0x372   : > { %v2252_v55 = vmax.bf16 %v6603_v42, %v2188_v49 }
 0x373   : > { %v2081_v14 = vpop.f32.mrb[152].mxu0  ;;  %v2253_v62 = vmax.bf16 %v6603_v42, %v2189_v2 }
 0x374   : > { %v2083_v60 = vpop.f32.mrb[153].mxu0  ;;  %v2082_v5 = vadd.f32 %v2081_v14, %v7519_v43 }
 0x375   : > { %v2085_v13 = vpop.f32.mrb[154].mxu0  ;;  %2752 = vmatprep.mubr.bf16.mxu1 %v2253_v62  ;;  %v2084_v30 = vadd.f32 %v2083_v60, %v7522_v23 }
 0x376   : > { %v2086_v26 = vadd.f32 %v2085_v13, %v7519_v43  ;;  %v2087_v25 = vpop.f32.mrb[155].mxu0  ;;  %2753 = vmatmul.mubr.bf16.gmra.mrb[180].mxu1 %v2252_v55 }
 0x377   : > { %v2088_v10 = vadd.f32 %v2087_v25, %v7522_v23 }
 0x378   : > { %v2190_v17 = vpack.c.bf16 %v2086_v26, %v2082_v5 }
 0x379   : > { %v2191_v36 = vpack.c.bf16 %v2088_v10, %v2084_v30 }
 0x37a   : > { %v2254_v40 = vmax.bf16 %v6603_v42, %v2190_v17 }
 0x37b   : > { %v2091_v53 = vpop.f32.mrb[156].mxu0  ;;  %v2255_v3 = vmax.bf16 %v6603_v42, %v2191_v36 }
 0x37c   : > { %v2093_v21 = vpop.f32.mrb[157].mxu0  ;;  %v2092_v50 = vadd.f32 %v2091_v53, %v7519_v43 }
 0x37d   : > { %v2095_v28 = vpop.f32.mrb[158].mxu0  ;;  %2762 = vmatprep.mubr.bf16.mxu1 %v2255_v3  ;;  %v2094_v9 = vadd.f32 %v2093_v21, %v7522_v23 }
 0x37e   : > { %v2096_v52 = vadd.f32 %v2095_v28, %v7519_v43  ;;  %v2097_v58 = vpop.f32.mrb[159].mxu0  ;;  %2763 = vmatmul.mubr.bf16.gmra.mrb[184].mxu1 %v2254_v40 }
 0x37f   : > { %v2098_v33 = vadd.f32 %v2097_v58, %v7522_v23 }
 0x380   : > { %v2192_v22 = vpack.c.bf16 %v2096_v52, %v2092_v50 }
 0x381   : > { %v2193_v35 = vpack.c.bf16 %v2098_v33, %v2094_v9  ;;  %v2504_v37 = vpop.f32.mrb[80].mxu1 }
 0x382   : > { %v2506_v57 = vpop.f32.mrb[81].mxu1  ;;  %v2505_v18 = vadd.f32 %v2504_v37, %v7858_v34  ;;  %v2256_v61 = vmax.bf16 %v6603_v42, %v2192_v22 }
 0x383   : > { %v2101_v11 = vpop.f32.mrb[160].mxu0  ;;  %v2508_v6 = vpop.f32.mrb[82].mxu1  ;;  %v2257_v48 = vmax.bf16 %v6603_v42, %v2193_v35  ;;  %v2507_v46 = vadd.f32 %v2506_v57, %v7861_v51 }
 0x384   : > { %v2509_v63 = vadd.f32 %v2508_v6, %v7858_v34  ;;  %v2103_v15 = vpop.f32.mrb[161].mxu0  ;;  %v2510_v27 = vpop.f32.mrb[83].mxu1  ;;  %v2102_v38 = vadd.f32 %v2101_v11, %v7519_v43 }
 0x385   : > { %v2511_v4 = vadd.f32 %v2510_v27, %v7861_v51  ;;  %v2105_v47 = vpop.f32.mrb[162].mxu0  ;;  %2772 = vmatprep.mubr.bf16.mxu1 %v2257_v48  ;;  %v2104_v12 = vadd.f32 %v2103_v15, %v7522_v23 }
 0x386   : > { %v2821_v56 = vpack.c.bf16 %v2509_v63, %v2505_v18  ;;  %v2106_v0 = vadd.f32 %v2105_v47, %v7519_v43  ;;  %v2107_v59 = vpop.f32.mrb[163].mxu0  ;;  %2773 = vmatmul.mubr.bf16.gmra.mrb[188].mxu1 %v2256_v61 }
 0x387   : > { %v2822_v29 = vpack.c.bf16 %v2511_v4, %v2507_v46  ;;  %v2108_v31 = vadd.f32 %v2107_v59, %v7522_v23 }
 0x388   : > { %v2194_v16 = vpack.c.bf16 %v2106_v0, %v2102_v38  ;;  %v7877_v45 = vmax.bf16 %v6603_v42, %v2821_v56 }
 0x389   : > { %v2195_v54 = vpack.c.bf16 %v2108_v31, %v2104_v12  ;;  %v2514_v20 = vpop.f32.mrb[84].mxu1  ;;  %v7874_v24 = vmax.bf16 %v6603_v42, %v2822_v29 }
 0x38a   : > { %v2516_v7 = vpop.f32.mrb[85].mxu1  ;;  %v2515_v49 = vadd.f32 %v2514_v20, %v7858_v34  ;;  %v2258_v60 = vmax.bf16 %v6603_v42, %v2194_v16 }
 0x38b   : > { %v2111_v39 = vpop.f32.mrb[164].mxu0  ;;  %v2518_v44 = vpop.f32.mrb[86].mxu1  ;;  %3387 = vmatprep.mubr.bf16.mxu0 %v7874_v24  ;;  %v2259_v41 = vmax.bf16 %v6603_v42, %v2195_v54  ;;  %v2517_v55 = vadd.f32 %v2516_v7, %v7861_v51 }
 0x38c   : > { %v2519_v2 = vadd.f32 %v2518_v44, %v7858_v34  ;;  %v2113_v14 = vpop.f32.mrb[165].mxu0  ;;  %v2520_v62 = vpop.f32.mrb[87].mxu1  ;;  %3388 = vmatmul.mubr.bf16.vlgmr.msra.gmra.mrb[176].mxu0 %v7877_v45  ;;  %v2112_v26 = vadd.f32 %v2111_v39, %v7519_v43 }
 0x38d   : > { %v2521_v13 = vadd.f32 %v2520_v62, %v7861_v51  ;;  %v2115_v5 = vpop.f32.mrb[166].mxu0  ;;  %2782 = vmatprep.mubr.bf16.mxu1 %v2259_v41  ;;  %v2114_v17 = vadd.f32 %v2113_v14, %v7522_v23 }
 0x38e   : > { %v2823_v25 = vpack.c.bf16 %v2519_v2, %v2515_v49  ;;  %v2116_v30 = vadd.f32 %v2115_v5, %v7519_v43  ;;  %v2117_v10 = vpop.f32.mrb[167].mxu0  ;;  %2783 = vmatmul.mubr.bf16.gmra.mrb[192].mxu1 %v2258_v60 }
 0x38f   : > { %v2824_v36 = vpack.c.bf16 %v2521_v13, %v2517_v55  ;;  %v2118_v53 = vadd.f32 %v2117_v10, %v7522_v23 }
 0x390   : > { %v2196_v3 = vpack.c.bf16 %v2116_v30, %v2112_v26  ;;  %v7895_v50 = vmax.bf16 %v6603_v42, %v2823_v25 }
 0x391   : > { %v2197_v21 = vpack.c.bf16 %v2118_v53, %v2114_v17  ;;  %v2524_v40 = vpop.f32.mrb[88].mxu1  ;;  %v7892_v28 = vmax.bf16 %v6603_v42, %v2824_v36 }
 0x392   : > { %v2526_v32 = vpop.f32.mrb[89].mxu1  ;;  %v2525_v33 = vadd.f32 %v2524_v40, %v7858_v34  ;;  %v2260_v57 = vmax.bf16 %v6603_v42, %v2196_v3 }
 0x393   : > { %v2121_v52 = vpop.f32.mrb[168].mxu0  ;;  %v2528_v58 = vpop.f32.mrb[90].mxu1  ;;  %3397 = vmatprep.mubr.bf16.mxu0 %v7892_v28  ;;  %v2261_v9 = vmax.bf16 %v6603_v42, %v2197_v21  ;;  %v2527_v11 = vadd.f32 %v2526_v32, %v7861_v51 }
 0x394   : > { %v2529_v22 = vadd.f32 %v2528_v58, %v7858_v34  ;;  %v2123_v35 = vpop.f32.mrb[169].mxu0  ;;  %v2530_v37 = vpop.f32.mrb[91].mxu1  ;;  %3398 = vmatmul.mubr.bf16.gmra.mrb[180].mxu0 %v7895_v50  ;;  %v2122_v18 = vadd.f32 %v2121_v52, %v7519_v43 }
 0x395   : > { %v2531_v6 = vadd.f32 %v2530_v37, %v7861_v51  ;;  %v2125_v48 = vpop.f32.mrb[170].mxu0  ;;  %2792 = vmatprep.mubr.bf16.mxu1 %v2261_v9  ;;  %v2124_v61 = vadd.f32 %v2123_v35, %v7522_v23 }
 0x396   : > { %v2825_v63 = vpack.c.bf16 %v2529_v22, %v2525_v33  ;;  %v2126_v15 = vadd.f32 %v2125_v48, %v7519_v43  ;;  %v2127_v27 = vpop.f32.mrb[171].mxu0  ;;  %2793 = vmatmul.mubr.bf16.gmra.mrb[196].mxu1 %v2260_v57 }
 0x397   : > { %v2826_v46 = vpack.c.bf16 %v2531_v6, %v2527_v11  ;;  %v2128_v4 = vadd.f32 %v2127_v27, %v7522_v23 }
 0x398   : > { %v2198_v47 = vpack.c.bf16 %v2126_v15, %v2122_v18  ;;  %v7913_v12 = vmax.bf16 %v6603_v42, %v2825_v63 }
 0x399   : > { %v2199_v38 = vpack.c.bf16 %v2128_v4, %v2124_v61  ;;  %v2534_v56 = vpop.f32.mrb[92].mxu1  ;;  %v7910_v0 = vmax.bf16 %v6603_v42, %v2826_v46 }
 0x39a   : > { %v2536_v59 = vpop.f32.mrb[93].mxu1  ;;  %v2535_v54 = vadd.f32 %v2534_v56, %v7858_v34  ;;  %v2262_v41 = vmax.bf16 %v6603_v42, %v2198_v47 }
 0x39b   : > { %v2131_v29 = vpop.f32.mrb[172].mxu0  ;;  %v2538_v31 = vpop.f32.mrb[94].mxu1  ;;  %3407 = vmatprep.mubr.bf16.mxu0 %v7910_v0  ;;  %v2263_v16 = vmax.bf16 %v6603_v42, %v2199_v38  ;;  %v2537_v49 = vadd.f32 %v2536_v59, %v7861_v51 }
 0x39c   : > { %v2132_v20 = vadd.f32 %v2131_v29, %v7519_v43  ;;  %v2539_v7 = vadd.f32 %v2538_v31, %v7858_v34  ;;  %v2133_v39 = vpop.f32.mrb[173].mxu0  ;;  %v2540_v44 = vpop.f32.mrb[95].mxu1  ;;  %3408 = vmatmul.mubr.bf16.gmra.mrb[184].mxu0 %v7913_v12 }
 0x39d   : > { %v2134_v2 = vadd.f32 %v2133_v39, %v7522_v23  ;;  %v2541_v14 = vadd.f32 %v2540_v44, %v7861_v51  ;;  %v2135_v62 = vpop.f32.mrb[174].mxu0  ;;  %2802 = vmatprep.mubr.bf16.mxu1 %v2263_v16 }
 0x39e   : > { %v2827_v60 = vpack.c.bf16 %v2539_v7, %v2535_v54  ;;  %v2136_v55 = vpop.f32.mrb[175].mxu0  ;;  %2803 = vmatmul.mubr.bf16.gmra.mrb[200].mxu1 %v2262_v41  ;;  %v2200_v5 = vpack.c.bf16 %v2132_v20, %v2132_v20 }
 0x39f   : > { %v2201_v43 = vpack.c.bf16 %v2134_v2, %v2134_v2  ;;  %v2828_v13 = vpack.c.bf16 %v2541_v14, %v2537_v49 }
 0x3a0   : > { %v7930_v17 = vmax.bf16 %v6603_v42, %v2827_v60  ;;  %v2264_v36 = vmax.bf16 %v6603_v42, %v2200_v5 }
 0x3a1   : > { %v2265_v26 = vmax.bf16 %v6603_v42, %v2201_v43  ;;  %v2544_v25 = vpop.f32.mrb[96].mxu1  ;;  %v7927_v30 = vmax.bf16 %v6603_v42, %v2828_v13 }
 0x3a2   : > { %v2546_v10 = vpop.f32.mrb[97].mxu1  ;;  %v2545_v53 = vadd.f32 %v2544_v25, %v7858_v34 }
 0x3a3   : > { %v2548_v23 = vpop.f32.mrb[98].mxu1  ;;  %2812 = vmatprep.mubr.bf16.mxu1 %v2265_v26  ;;  %3417 = vmatprep.mubr.bf16.mxu0 %v7927_v30  ;;  %v2547_v40 = vadd.f32 %v2546_v10, %v7861_v51 }
 0x3a4   : > { %v2549_v3 = vadd.f32 %v2548_v23, %v7858_v34  ;;  %v2550_v21 = vpop.f32.mrb[99].mxu1  ;;  %3418 = vmatmul.mubr.bf16.gmra.mrb[188].mxu0 %v7930_v17 }
 0x3a5   : > { %v2551_v32 = vadd.f32 %v2550_v21, %v7861_v51 }
 0x3a6   : > { %v2829_v52 = vpack.c.bf16 %v2549_v3, %v2545_v53  ;;  %2813 = vmatmul.mubr.bf16.gmra.mrb[204].mxu1 %v2264_v36 }
 0x3a7   : > { %v2830_v58 = vpack.c.bf16 %v2551_v32, %v2547_v40  ;;  %3738 = vmatprep.mubr.bf16.mxu1 %v7874_v24 }
 0x3a8   : > { %v7942_v35 = vmax.bf16 %v6603_v42, %v2829_v52 }
 0x3a9   : > { %v2554_v9 = vpop.f32.mrb[100].mxu1  ;;  %v2894_v33 = vmax.bf16 %v6603_v42, %v2830_v58 }
 0x3aa   : > { %v2556_v22 = vpop.f32.mrb[101].mxu1  ;;  %v2555_v57 = vadd.f32 %v2554_v9, %v7858_v34 }
 0x3ab   : > { %v2558_v37 = vpop.f32.mrb[102].mxu1  ;;  %3427 = vmatprep.mubr.bf16.mxu0 %v2894_v33  ;;  %v2557_v48 = vadd.f32 %v2556_v22, %v7861_v51 }
 0x3ac   : > { %v2559_v11 = vadd.f32 %v2558_v37, %v7858_v34  ;;  %v2560_v6 = vpop.f32.mrb[103].mxu1  ;;  %3428 = vmatmul.mubr.bf16.gmra.mrb[192].mxu0 %v7942_v35 }
 0x3ad   : > { %v2561_v24 = vadd.f32 %v2560_v6, %v7861_v51 }
 0x3ae   : > { %v2831_v18 = vpack.c.bf16 %v2559_v11, %v2555_v57  ;;  %3739 = vmatmul.mubr.bf16.vlgmr.msra.gmra.mrb[208].mxu1 %v7877_v45 }
 0x3af   : > { %v2832_v63 = vpack.c.bf16 %v2561_v24, %v2557_v48  ;;  %3748 = vmatprep.mubr.bf16.mxu1 %v7892_v28 }
 0x3b0   : > { %v7953_v46 = vmax.bf16 %v6603_v42, %v2831_v18 }
 0x3b1   : > { %v2564_v15 = vpop.f32.mrb[104].mxu1  ;;  %v2896_v27 = vmax.bf16 %v6603_v42, %v2832_v63 }
 0x3b2   : > { %v2566_v61 = vpop.f32.mrb[105].mxu1  ;;  %v2565_v47 = vadd.f32 %v2564_v15, %v7858_v34 }
 0x3b3   : > { %v2568_v4 = vpop.f32.mrb[106].mxu1  ;;  %3437 = vmatprep.mubr.bf16.mxu0 %v2896_v27  ;;  %v2567_v45 = vadd.f32 %v2566_v61, %v7861_v51 }
 0x3b4   : > { %v2569_v38 = vadd.f32 %v2568_v4, %v7858_v34  ;;  %v2570_v56 = vpop.f32.mrb[107].mxu1  ;;  %3438 = vmatmul.mubr.bf16.gmra.mrb[196].mxu0 %v7953_v46 }
 0x3b5   : > { %v2571_v28 = vadd.f32 %v2570_v56, %v7861_v51 }
 0x3b6   : > { %v2833_v59 = vpack.c.bf16 %v2569_v38, %v2565_v47  ;;  %3749 = vmatmul.mubr.bf16.gmra.mrb[212].mxu1 %v7895_v50 }
 0x3b7   : > { %v2834_v29 = vpack.c.bf16 %v2571_v28, %v2567_v45  ;;  %3758 = vmatprep.mubr.bf16.mxu1 %v7910_v0 }
 0x3b8   : > { %v7964_v20 = vmax.bf16 %v6603_v42, %v2833_v59 }
 0x3b9   : > { %v2574_v31 = vpop.f32.mrb[108].mxu1  ;;  %v2898_v16 = vmax.bf16 %v6603_v42, %v2834_v29 }
 0x3ba   : > { %v2576_v54 = vpop.f32.mrb[109].mxu1  ;;  %v2575_v39 = vadd.f32 %v2574_v31, %v7858_v34 }
 0x3bb   : > { %v2578_v7 = vpop.f32.mrb[110].mxu1  ;;  %3447 = vmatprep.mubr.bf16.mxu0 %v2898_v16  ;;  %v2577_v50 = vadd.f32 %v2576_v54, %v7861_v51 }
 0x3bc   : > { %v2579_v44 = vadd.f32 %v2578_v7, %v7858_v34  ;;  %v2580_v41 = vpop.f32.mrb[111].mxu1  ;;  %3448 = vmatmul.mubr.bf16.gmra.mrb[200].mxu0 %v7964_v20 }
 0x3bd   : > { %v2581_v0 = vadd.f32 %v2580_v41, %v7861_v51 }
 0x3be   : > { %v2835_v49 = vpack.c.bf16 %v2579_v44, %v2575_v39  ;;  %3759 = vmatmul.mubr.bf16.gmra.mrb[216].mxu1 %v7913_v12 }
 0x3bf   : > { %v2836_v2 = vpack.c.bf16 %v2581_v0, %v2577_v50  ;;  %3768 = vmatprep.mubr.bf16.mxu1 %v7927_v30 }
 0x3c0   : > { %v7975_v55 = vmax.bf16 %v6603_v42, %v2835_v49 }
 0x3c1   : > { %v2584_v14 = vpop.f32.mrb[112].mxu1  ;;  %v2900_v62 = vmax.bf16 %v6603_v42, %v2836_v2 }
 0x3c2   : > { %v2586_v60 = vpop.f32.mrb[113].mxu1  ;;  %v2585_v13 = vadd.f32 %v2584_v14, %v7858_v34 }
 0x3c3   : > { %v2588_v43 = vpop.f32.mrb[114].mxu1  ;;  %3457 = vmatprep.mubr.bf16.mxu0 %v2900_v62  ;;  %v2587_v12 = vadd.f32 %v2586_v60, %v7861_v51 }
 0x3c4   : > { %v2589_v5 = vadd.f32 %v2588_v43, %v7858_v34  ;;  %v2590_v26 = vpop.f32.mrb[115].mxu1  ;;  %3458 = vmatmul.mubr.bf16.gmra.mrb[204].mxu0 %v7975_v55 }
 0x3c5   : > { %v2591_v25 = vadd.f32 %v2590_v26, %v7861_v51 }
 0x3c6   : > { %v2837_v30 = vpack.c.bf16 %v2589_v5, %v2585_v13  ;;  %3769 = vmatmul.mubr.bf16.gmra.mrb[220].mxu1 %v7930_v17 }
 0x3c7   : > { %v2838_v10 = vpack.c.bf16 %v2591_v25, %v2587_v12  ;;  %3778 = vmatprep.mubr.bf16.mxu1 %v2894_v33 }
 0x3c8   : > { %v7985_v3 = vmax.bf16 %v6603_v42, %v2837_v30 }
 0x3c9   : > { %v2594_v23 = vpop.f32.mrb[116].mxu1  ;;  %v2902_v36 = vmax.bf16 %v6603_v42, %v2838_v10 }
 0x3ca   : > { %v2596_v53 = vpop.f32.mrb[117].mxu1  ;;  %v2595_v40 = vadd.f32 %v2594_v23, %v7858_v34 }
 0x3cb   : > { %v2598_v21 = vpop.f32.mrb[118].mxu1  ;;  %3467 = vmatprep.mubr.bf16.mxu0 %v2902_v36  ;;  %v2597_v17 = vadd.f32 %v2596_v53, %v7861_v51 }
 0x3cc   : > { %v2599_v32 = vadd.f32 %v2598_v21, %v7858_v34  ;;  %v2600_v52 = vpop.f32.mrb[119].mxu1  ;;  %3468 = vmatmul.mubr.bf16.gmra.mrb[208].mxu0 %v7985_v3 }
 0x3cd   : > { %v2601_v58 = vadd.f32 %v2600_v52, %v7861_v51 }
 0x3ce   : > { %v2839_v9 = vpack.c.bf16 %v2599_v32, %v2595_v40  ;;  %3779 = vmatmul.mubr.bf16.gmra.mrb[224].mxu1 %v7942_v35 }
 0x3cf   : > { %v2840_v33 = vpack.c.bf16 %v2601_v58, %v2597_v17  ;;  %3788 = vmatprep.mubr.bf16.mxu1 %v2896_v27 }
 0x3d0   : > { %v7995_v11 = vmax.bf16 %v6603_v42, %v2839_v9 }
 0x3d1   : > { %v2604_v22 = vpop.f32.mrb[120].mxu1  ;;  %v2904_v37 = vmax.bf16 %v6603_v42, %v2840_v33 }
 0x3d2   : > { %v2606_v57 = vpop.f32.mrb[121].mxu1  ;;  %v2605_v48 = vadd.f32 %v2604_v22, %v7858_v34 }
 0x3d3   : > { %v2608_v6 = vpop.f32.mrb[122].mxu1  ;;  %3477 = vmatprep.mubr.bf16.mxu0 %v2904_v37  ;;  %v2607_v35 = vadd.f32 %v2606_v57, %v7861_v51 }
 0x3d4   : > { %v2609_v24 = vadd.f32 %v2608_v6, %v7858_v34  ;;  %v2610_v18 = vpop.f32.mrb[123].mxu1  ;;  %3478 = vmatmul.mubr.bf16.gmra.mrb[212].mxu0 %v7995_v11 }
 0x3d5   : > { %v2611_v63 = vadd.f32 %v2610_v18, %v7861_v51 }
 0x3d6   : > { %v2841_v15 = vpack.c.bf16 %v2609_v24, %v2605_v48  ;;  %3789 = vmatmul.mubr.bf16.gmra.mrb[228].mxu1 %v7953_v46 }
 0x3d7   : > { %v2842_v27 = vpack.c.bf16 %v2611_v63, %v2607_v35  ;;  %3798 = vmatprep.mubr.bf16.mxu1 %v2898_v16 }
 0x3d8   : > { %v8005_v38 = vmax.bf16 %v6603_v42, %v2841_v15 }
 0x3d9   : > { %v2614_v61 = vpop.f32.mrb[124].mxu1  ;;  %v2906_v4 = vmax.bf16 %v6603_v42, %v2842_v27 }
 0x3da   : > { %v2616_v47 = vpop.f32.mrb[125].mxu1  ;;  %v2615_v45 = vadd.f32 %v2614_v61, %v7858_v34 }
 0x3db   : > { %v2618_v56 = vpop.f32.mrb[126].mxu1  ;;  %3487 = vmatprep.mubr.bf16.mxu0 %v2906_v4  ;;  %v2617_v46 = vadd.f32 %v2616_v47, %v7861_v51 }
 0x3dc   : > { %v2619_v28 = vadd.f32 %v2618_v56, %v7858_v34  ;;  %v2620_v59 = vpop.f32.mrb[127].mxu1  ;;  %3488 = vmatmul.mubr.bf16.gmra.mrb[216].mxu0 %v8005_v38 }
 0x3dd   : > { %v2621_v29 = vadd.f32 %v2620_v59, %v7861_v51 }
 0x3de   : > { %v2843_v31 = vpack.c.bf16 %v2619_v28, %v2615_v45  ;;  %3799 = vmatmul.mubr.bf16.gmra.mrb[232].mxu1 %v7964_v20 }
 0x3df   : > { %v2844_v16 = vpack.c.bf16 %v2621_v29, %v2617_v46  ;;  %3808 = vmatprep.mubr.bf16.mxu1 %v2900_v62 }
 0x3e0   : > { %v8015_v44 = vmax.bf16 %v6603_v42, %v2843_v31 }
 0x3e1   : > { %v2624_v54 = vpop.f32.mrb[128].mxu1  ;;  %v2908_v7 = vmax.bf16 %v6603_v42, %v2844_v16 }
 0x3e2   : > { %v2626_v39 = vpop.f32.mrb[129].mxu1  ;;  %v2625_v50 = vadd.f32 %v2624_v54, %v7858_v34 }
 0x3e3   : > { %v2628_v41 = vpop.f32.mrb[130].mxu1  ;;  %3497 = vmatprep.mubr.bf16.mxu0 %v2908_v7  ;;  %v2627_v20 = vadd.f32 %v2626_v39, %v7861_v51 }
 0x3e4   : > { %v2629_v0 = vadd.f32 %v2628_v41, %v7858_v34  ;;  %v2630_v49 = vpop.f32.mrb[131].mxu1  ;;  %3498 = vmatmul.mubr.bf16.gmra.mrb[220].mxu0 %v8015_v44 }
 0x3e5   : > { %v2631_v2 = vadd.f32 %v2630_v49, %v7861_v51 }
 0x3e6   : > { %v2845_v14 = vpack.c.bf16 %v2629_v0, %v2625_v50  ;;  %3809 = vmatmul.mubr.bf16.gmra.mrb[236].mxu1 %v7975_v55 }
 0x3e7   : > { %v2846_v62 = vpack.c.bf16 %v2631_v2, %v2627_v20  ;;  %3818 = vmatprep.mubr.bf16.mxu1 %v2902_v36 }
 0x3e8   : > { %v8025_v5 = vmax.bf16 %v6603_v42, %v2845_v14 }
 0x3e9   : > { %v2634_v60 = vpop.f32.mrb[132].mxu1  ;;  %v2910_v43 = vmax.bf16 %v6603_v42, %v2846_v62 }
 0x3ea   : > { %v2636_v13 = vpop.f32.mrb[133].mxu1  ;;  %v2635_v12 = vadd.f32 %v2634_v60, %v7858_v34 }
 0x3eb   : > { %v2638_v26 = vpop.f32.mrb[134].mxu1  ;;  %3507 = vmatprep.mubr.bf16.mxu0 %v2910_v43  ;;  %v2637_v55 = vadd.f32 %v2636_v13, %v7861_v51 }
 0x3ec   : > { %v2639_v25 = vadd.f32 %v2638_v26, %v7858_v34  ;;  %v2640_v30 = vpop.f32.mrb[135].mxu1  ;;  %3508 = vmatmul.mubr.bf16.gmra.mrb[224].mxu0 %v8025_v5 }
 0x3ed   : > { %v2641_v10 = vadd.f32 %v2640_v30, %v7861_v51 }
 0x3ee   : > { %v2847_v23 = vpack.c.bf16 %v2639_v25, %v2635_v12  ;;  %3819 = vmatmul.mubr.bf16.gmra.mrb[240].mxu1 %v7985_v3 }
 0x3ef   : > { %v2848_v36 = vpack.c.bf16 %v2641_v10, %v2637_v55  ;;  %3828 = vmatprep.mubr.bf16.mxu1 %v2904_v37 }
 0x3f0   : > { %v8035_v32 = vmax.bf16 %v6603_v42, %v2847_v23 }
 0x3f1   : > { %v2644_v53 = vpop.f32.mrb[136].mxu1  ;;  %v2912_v21 = vmax.bf16 %v6603_v42, %v2848_v36 }
 0x3f2   : > { %v2646_v40 = vpop.f32.mrb[137].mxu1  ;;  %v2645_v17 = vadd.f32 %v2644_v53, %v7858_v34 }
 0x3f3   : > { %v2648_v52 = vpop.f32.mrb[138].mxu1  ;;  %3517 = vmatprep.mubr.bf16.mxu0 %v2912_v21  ;;  %v2647_v3 = vadd.f32 %v2646_v40, %v7861_v51 }
 0x3f4   : > { %v2649_v58 = vadd.f32 %v2648_v52, %v7858_v34  ;;  %v2650_v9 = vpop.f32.mrb[139].mxu1  ;;  %3518 = vmatmul.mubr.bf16.gmra.mrb[228].mxu0 %v8035_v32 }
 0x3f5   : > { %v2651_v33 = vadd.f32 %v2650_v9, %v7861_v51 }
 0x3f6   : > { %v2849_v22 = vpack.c.bf16 %v2649_v58, %v2645_v17  ;;  %3829 = vmatmul.mubr.bf16.gmra.mrb[244].mxu1 %v7995_v11 }
 0x3f7   : > { %v2850_v37 = vpack.c.bf16 %v2651_v33, %v2647_v3  ;;  %3838 = vmatprep.mubr.bf16.mxu1 %v2906_v4 }
 0x3f8   : > { %v8045_v24 = vmax.bf16 %v6603_v42, %v2849_v22 }
 0x3f9   : > { %v2654_v57 = vpop.f32.mrb[140].mxu1  ;;  %v2914_v6 = vmax.bf16 %v6603_v42, %v2850_v37 }
 0x3fa   : > { %v2656_v48 = vpop.f32.mrb[141].mxu1  ;;  %v2655_v35 = vadd.f32 %v2654_v57, %v7858_v34 }
 0x3fb   : > { %v2658_v18 = vpop.f32.mrb[142].mxu1  ;;  %3527 = vmatprep.mubr.bf16.mxu0 %v2914_v6  ;;  %v2657_v11 = vadd.f32 %v2656_v48, %v7861_v51 }
 0x3fc   : > { %v2659_v63 = vadd.f32 %v2658_v18, %v7858_v34  ;;  %v2660_v15 = vpop.f32.mrb[143].mxu1  ;;  %3528 = vmatmul.mubr.bf16.gmra.mrb[232].mxu0 %v8045_v24 }
 0x3fd   : > { %v2661_v27 = vadd.f32 %v2660_v15, %v7861_v51 }
 0x3fe   : > { %v2851_v61 = vpack.c.bf16 %v2659_v63, %v2655_v35  ;;  %3839 = vmatmul.mubr.bf16.gmra.mrb[248].mxu1 %v8005_v38 }
 0x3ff   : > { %v2852_v4 = vpack.c.bf16 %v2661_v27, %v2657_v11  ;;  %3848 = vmatprep.mubr.bf16.mxu1 %v2908_v7 }
 0x400   : > { %v8055_v28 = vmax.bf16 %v6603_v42, %v2851_v61 }
 0x401   : > { %v2664_v47 = vpop.f32.mrb[144].mxu1  ;;  %v2916_v56 = vmax.bf16 %v6603_v42, %v2852_v4 }
 0x402   : > { %v2666_v45 = vpop.f32.mrb[145].mxu1  ;;  %v2665_v46 = vadd.f32 %v2664_v47, %v7858_v34  ;;  %v6467_v47 = vld [vmem:[%s8873_s13] ss:$8 sps:$4 sm:$0xff]  }
 0x403   : > { %v2668_v59 = vpop.f32.mrb[146].mxu1  ;;  %3537 = vmatprep.mubr.bf16.mxu0 %v2916_v56  ;;  %v2667_v38 = vadd.f32 %v2666_v45, %v7861_v51 }
 0x404   : > { %v2669_v29 = vadd.f32 %v2668_v59, %v7858_v34  ;;  %v2670_v31 = vpop.f32.mrb[147].mxu1  ;;  %3538 = vmatmul.mubr.bf16.gmra.mrb[236].mxu0 %v8055_v28 }
 0x405   : > { %v2671_v16 = vadd.f32 %v2670_v31, %v7861_v51 }
 0x406   : > { %v2853_v54 = vpack.c.bf16 %v2669_v29, %v2665_v46  ;;  %3849 = vmatmul.mubr.bf16.gmra.mrb[252].mxu1 %v8015_v44 }
 0x407   : > { %v2854_v7 = vpack.c.bf16 %v2671_v16, %v2667_v38  ;;  %3858 = vmatprep.mubr.bf16.mxu1 %v2910_v43 }
 0x408   : > { %v8067_v0 = vmax.bf16 %v6603_v42, %v2853_v54 }
 0x409   : > { %v2674_v39 = vpop.f32.mrb[148].mxu1  ;;  %v8064_v41 = vmax.bf16 %v6603_v42, %v2854_v7 }
 0x40a   : > { %v2676_v50 = vpop.f32.mrb[149].mxu1  ;;  %v2675_v20 = vadd.f32 %v2674_v39, %v7858_v34 }
 0x40b   : > { %v2678_v49 = vpop.f32.mrb[150].mxu1  ;;  %3547 = vmatprep.mubr.bf16.mxu0 %v8064_v41  ;;  %v2677_v44 = vadd.f32 %v2676_v50, %v7861_v51 }
 0x40c   : > { %v2679_v2 = vadd.f32 %v2678_v49, %v7858_v34  ;;  %v2680_v14 = vpop.f32.mrb[151].mxu1  ;;  %3548 = vmatmul.mubr.bf16.gmra.mrb[240].mxu0 %v8067_v0 }
 0x40d   : > { %v2681_v62 = vadd.f32 %v2680_v14, %v7861_v51 }
 0x40e   : > { %v2855_v60 = vpack.c.bf16 %v2679_v2, %v2675_v20  ;;  %3859 = vmatmul.mubr.bf16.gmra.mrb[0].mxu1 %v8025_v5 }
 0x40f   : > { %v2856_v43 = vpack.c.bf16 %v2681_v62, %v2677_v44  ;;  %3868 = vmatprep.mubr.bf16.mxu1 %v2912_v21 }
 0x410   : > { %v8080_v25 = vmax.bf16 %v6603_v42, %v2855_v60 }
 0x411   : > { %v2684_v13 = vpop.f32.mrb[152].mxu1  ;;  %v8077_v26 = vmax.bf16 %v6603_v42, %v2856_v43 }
 0x412   : > { %v2686_v12 = vpop.f32.mrb[153].mxu1  ;;  %v2685_v55 = vadd.f32 %v2684_v13, %v7858_v34 }
 0x413   : > { %v2688_v30 = vpop.f32.mrb[154].mxu1  ;;  %3557 = vmatprep.mubr.bf16.mxu0 %v8077_v26  ;;  %v2687_v5 = vadd.f32 %v2686_v12, %v7861_v51  ;;  %v6470_v12 = vld [vmem:[%s8873_s13 + $0x10] ss:$8 sps:$4 sm:$0xff]  }
 0x414   : > { %v2689_v10 = vadd.f32 %v2688_v30, %v7858_v34  ;;  %v2690_v23 = vpop.f32.mrb[155].mxu1  ;;  %3558 = vmatmul.mubr.bf16.gmra.mrb[244].mxu0 %v8080_v25  ;;  %v6472_v30 = vld [vmem:[%s8873_s13 + $0x14] ss:$8 sps:$4 sm:$0xff]  }
 0x415   : > { %v2691_v36 = vadd.f32 %v2690_v23, %v7861_v51 }
 0x416   : > { %v2857_v53 = vpack.c.bf16 %v2689_v10, %v2685_v55  ;;  %3869 = vmatmul.mubr.bf16.gmra.mrb[4].mxu1 %v8035_v32 }
 0x417   : > { %v2858_v21 = vpack.c.bf16 %v2691_v36, %v2687_v5  ;;  %3878 = vmatprep.mubr.bf16.mxu1 %v2914_v6 }
 0x418   : > { %v8093_v58 = vmax.bf16 %v6603_v42, %v2857_v53 }
 0x419   : > { %v2694_v40 = vpop.f32.mrb[156].mxu1  ;;  %v8090_v52 = vmax.bf16 %v6603_v42, %v2858_v21 }
 0x41a   : > { %v2696_v17 = vpop.f32.mrb[157].mxu1  ;;  %v2695_v3 = vadd.f32 %v2694_v40, %v7858_v34 }
 0x41b   : > { %v2698_v9 = vpop.f32.mrb[158].mxu1  ;;  %3567 = vmatprep.mubr.bf16.mxu0 %v8090_v52  ;;  %v2697_v32 = vadd.f32 %v2696_v17, %v7861_v51 }
 0x41c   : > { %v2699_v33 = vadd.f32 %v2698_v9, %v7858_v34  ;;  %v2700_v22 = vpop.f32.mrb[159].mxu1  ;;  %3568 = vmatmul.mubr.bf16.gmra.mrb[248].mxu0 %v8093_v58 }
 0x41d   : > { %v2701_v37 = vadd.f32 %v2700_v22, %v7861_v51 }
 0x41e   : > { %v2859_v57 = vpack.c.bf16 %v2699_v33, %v2695_v3  ;;  %3879 = vmatmul.mubr.bf16.gmra.mrb[8].mxu1 %v8045_v24 }
 0x41f   : > { %v2860_v6 = vpack.c.bf16 %v2701_v37, %v2697_v32  ;;  %3888 = vmatprep.mubr.bf16.mxu1 %v2916_v56  ;;  %v6469_v56 = vld [vmem:[%s8873_s13 + $0x4] ss:$8 sps:$4 sm:$0xff]  }
 0x420   : > { %v8106_v63 = vmax.bf16 %v6603_v42, %v2859_v57  ;;  %5423 = vmatprep.subr.bf16.mxu0 %v6469_v56 }
 0x421   : > { %v2704_v48 = vpop.f32.mrb[160].mxu1  ;;  %v8103_v18 = vmax.bf16 %v6603_v42, %v2860_v6  ;;  %5424 = vmatpush1.bf16.msra.mxu0 %v6467_v47 }
 0x422   : > { %v2706_v35 = vpop.f32.mrb[161].mxu1  ;;  %v2705_v11 = vadd.f32 %v2704_v48, %v7858_v34  ;;  %5425 = vmatprep.subr.bf16.mxu0 %v6472_v30  ;;  %v8230_v30 = vld [vmem:[%s8870_s10] sm:$0xf] }
 0x423   : > { %v2708_v15 = vpop.f32.mrb[162].mxu1  ;;  %3577 = vmatprep.mubr.bf16.mxu0 %v8103_v18  ;;  %v2707_v24 = vadd.f32 %v2706_v35, %v7861_v51 }
 0x424   : > { %v2709_v27 = vadd.f32 %v2708_v15, %v7858_v34  ;;  %v2710_v61 = vpop.f32.mrb[163].mxu1  ;;  %3578 = vmatmul.mubr.bf16.gmra.mrb[252].mxu0 %v8106_v63 }
 0x425   : > { %v2711_v4 = vadd.f32 %v2710_v61, %v7861_v51  ;;  %5426 = vmatpush1.bf16.msra.mxu0 %v6470_v12 }
 0x426   : > { %v2861_v45 = vpack.c.bf16 %v2709_v27, %v2705_v11  ;;  %3889 = vmatmul.mubr.bf16.gmra.mrb[12].mxu1 %v8055_v28  ;;  %v6473_v11 = vld [vmem:[%s8873_s13 + $0x20] ss:$8 sps:$4 sm:$0xff]   ;;  %v6475_v27 = vld [vmem:[%s8873_s13 + $0x24] ss:$8 sps:$4 sm:$0xff]  }
 0x427   : > { %v2862_v59 = vpack.c.bf16 %v2711_v4, %v2707_v24  ;;  %3898 = vmatprep.mubr.bf16.mxu1 %v8064_v41  ;;  %5427 = vmatprep.subr.bf16.mxu0 %v6475_v27 }
 0x428   : > { %v8126_v31 = vmax.bf16 %v6603_v42, %v2861_v45 }
 0x429   : > { %v2714_v46 = vpop.f32.mrb[164].mxu1  ;;  %v8123_v29 = vmax.bf16 %v6603_v42, %v2862_v59  ;;  %5428 = vmatpush1.bf16.msra.mxu0 %v6473_v11 }
 0x42a   : > { %v2716_v38 = vpop.f32.mrb[165].mxu1  ;;  %v2715_v54 = vadd.f32 %v2714_v46, %v7858_v34 }
 0x42b   : > { %v2718_v16 = vpop.f32.mrb[166].mxu1  ;;  %3587 = vmatprep.mubr.bf16.mxu0 %v8123_v29  ;;  %v2717_v39 = vadd.f32 %v2716_v38, %v7861_v51 }
 0x42c   : > { %v2719_v28 = vadd.f32 %v2718_v16, %v7858_v34  ;;  %v2720_v7 = vpop.f32.mrb[167].mxu1  ;;  %3588 = vmatmul.mubr.bf16.gmra.mrb[0].mxu0 %v8126_v31 }
 0x42d   : > { %v2721_v41 = vadd.f32 %v2720_v7, %v7861_v51 }
 0x42e   : > { %v2863_v50 = vpack.c.bf16 %v2719_v28, %v2715_v54  ;;  %3899 = vmatmul.mubr.bf16.gmra.mrb[16].mxu1 %v8067_v0 }
 0x42f   : > { %v2864_v49 = vpack.c.bf16 %v2721_v41, %v2717_v39  ;;  %3908 = vmatprep.mubr.bf16.mxu1 %v8077_v26 }
 0x430   : > { %v8140_v14 = vmax.bf16 %v6603_v42, %v2863_v50 }
 0x431   : > { %v2724_v20 = vpop.f32.mrb[168].mxu1  ;;  %v8137_v2 = vmax.bf16 %v6603_v42, %v2864_v49 }
 0x432   : > { %v2726_v44 = vpop.f32.mrb[169].mxu1  ;;  %v2725_v60 = vadd.f32 %v2724_v20, %v7858_v34 }
 0x433   : > { %v2728_v62 = vpop.f32.mrb[170].mxu1  ;;  %3597 = vmatprep.mubr.bf16.mxu0 %v8137_v2  ;;  %v2727_v0 = vadd.f32 %v2726_v44, %v7861_v51 }
 0x434   : > { %v2729_v43 = vadd.f32 %v2728_v62, %v7858_v34  ;;  %v2730_v13 = vpop.f32.mrb[171].mxu1  ;;  %3598 = vmatmul.mubr.bf16.gmra.mrb[4].mxu0 %v8140_v14 }
 0x435   : > { %v2731_v26 = vadd.f32 %v2730_v13, %v7861_v51 }
 0x436   : > { %v2865_v55 = vpack.c.bf16 %v2729_v43, %v2725_v60  ;;  %3909 = vmatmul.mubr.bf16.gmra.mrb[20].mxu1 %v8080_v25  ;;  %v6476_v60 = vld [vmem:[%s8873_s13 + $0x30] ss:$8 sps:$4 sm:$0xff]   ;;  %v6478_v43 = vld [vmem:[%s8873_s13 + $0x34] ss:$8 sps:$4 sm:$0xff]  }
 0x437   : > { %v2866_v10 = vpack.c.bf16 %v2731_v26, %v2727_v0  ;;  %3918 = vmatprep.mubr.bf16.mxu1 %v8090_v52  ;;  %5429 = vmatprep.subr.bf16.mxu0 %v6478_v43 }
 0x438   : > { %v8160_v36 = vmax.bf16 %v6603_v42, %v2865_v55  ;;  %5430 = vmatpush1.bf16.msra.mxu0 %v6476_v60 }
 0x439   : > { %v2734_v23 = vpop.f32.mrb[172].mxu1  ;;  %v8157_v5 = vmax.bf16 %v6603_v42, %v2866_v10 }
 0x43a   : > { %v2736_v53 = vpop.f32.mrb[173].mxu1  ;;  %v2735_v40 = vadd.f32 %v2734_v23, %v7858_v34 }
 0x43b   : > { %v2738_v21 = vpop.f32.mrb[174].mxu1  ;;  %3607 = vmatprep.mubr.bf16.mxu0 %v8157_v5  ;;  %v2737_v52 = vadd.f32 %v2736_v53, %v7861_v51 }
 0x43c   : > { %v2739_v25 = vadd.f32 %v2738_v21, %v7858_v34  ;;  %v2740_v17 = vpop.f32.mrb[175].mxu1  ;;  %3608 = vmatmul.mubr.bf16.gmra.mrb[8].mxu0 %v8160_v36  ;;  %v8241_v21 = vrot.slane %v8230_v30, %v7503_v8 }
 0x43d   : > { %v2741_v9 = vadd.f32 %v2740_v17, %v7861_v51  ;;  %v8247_v17 = vrot.slane %v8230_v30, %v7509_v19 }
 0x43e   : > { %v2867_v3 = vpack.c.bf16 %v2739_v25, %v2735_v40  ;;  %3919 = vmatmul.mubr.bf16.gmra.mrb[24].mxu1 %v8093_v58 }
 0x43f   : > { %v2868_v33 = vpack.c.bf16 %v2741_v9, %v2737_v52  ;;  %3928 = vmatprep.mubr.bf16.mxu1 %v8103_v18 }
 0x440   : > { %v8174_v37 = vmax.bf16 %v6603_v42, %v2867_v3 }
 0x441   : > { %v2744_v22 = vpop.f32.mrb[176].mxu1  ;;  %v8171_v32 = vmax.bf16 %v6603_v42, %v2868_v33 }
 0x442   : > { %v2746_v57 = vpop.f32.mrb[177].mxu1  ;;  %v2745_v48 = vadd.f32 %v2744_v22, %v7858_v34 }
 0x443   : > { %v2748_v6 = vpop.f32.mrb[178].mxu1  ;;  %3617 = vmatprep.mubr.bf16.mxu0 %v8171_v32  ;;  %v2747_v58 = vadd.f32 %v2746_v57, %v7861_v51 }
 0x444   : > { %v2749_v35 = vadd.f32 %v2748_v6, %v7858_v34  ;;  %v2750_v15 = vpop.f32.mrb[179].mxu1  ;;  %3618 = vmatmul.mubr.bf16.gmra.mrb[12].mxu0 %v8174_v37 }
 0x445   : > { %v2751_v18 = vadd.f32 %v2750_v15, %v7861_v51 }
 0x446   : > { %v2869_v61 = vpack.c.bf16 %v2749_v35, %v2745_v48  ;;  %3929 = vmatmul.mubr.bf16.gmra.mrb[28].mxu1 %v8106_v63 }
 0x447   : > { %v2870_v24 = vpack.c.bf16 %v2751_v18, %v2747_v58  ;;  %3938 = vmatprep.mubr.bf16.mxu1 %v8123_v29 }
 0x448   : > { %v8194_v56 = vmax.bf16 %v6603_v42, %v2869_v61 }
 0x449   : > { %v2754_v4 = vpop.f32.mrb[180].mxu1  ;;  %v8191_v47 = vmax.bf16 %v6603_v42, %v2870_v24 }
 0x44a   : > { %v2756_v45 = vpop.f32.mrb[181].mxu1  ;;  %v2755_v46 = vadd.f32 %v2754_v4, %v7858_v34 }
 0x44b   : > { %v2758_v59 = vpop.f32.mrb[182].mxu1  ;;  %3627 = vmatprep.mubr.bf16.mxu0 %v8191_v47  ;;  %v2757_v29 = vadd.f32 %v2756_v45, %v7861_v51 }
 0x44c   : > { %v2759_v63 = vadd.f32 %v2758_v59, %v7858_v34  ;;  %v2760_v38 = vpop.f32.mrb[183].mxu1  ;;  %3628 = vmatmul.mubr.bf16.gmra.mrb[16].mxu0 %v8194_v56 }
 0x44d   : > { %v2761_v16 = vadd.f32 %v2760_v38, %v7861_v51 }
 0x44e   : > { %v2871_v54 = vpack.c.bf16 %v2759_v63, %v2755_v46  ;;  %3939 = vmatmul.mubr.bf16.gmra.mrb[32].mxu1 %v8126_v31 }
 0x44f   : > { %v2872_v28 = vpack.c.bf16 %v2761_v16, %v2757_v29  ;;  %3948 = vmatprep.mubr.bf16.mxu1 %v8137_v2  ;;  %v6479_v29 = vld [vmem:[%s8873_s13 + $0x40] ss:$8 sps:$4 sm:$0xff]   ;;  %v6481_v16 = vld [vmem:[%s8873_s13 + $0x44] ss:$8 sps:$4 sm:$0xff]  }
 0x450   : > { %v8208_v41 = vmax.bf16 %v6603_v42, %v2871_v54  ;;  %5431 = vmatprep.subr.bf16.mxu0 %v6481_v16 }
 0x451   : > { %v2764_v7 = vpop.f32.mrb[184].mxu1  ;;  %v8205_v39 = vmax.bf16 %v6603_v42, %v2872_v28  ;;  %5432 = vmatpush1.bf16.msra.mxu0 %v6479_v29 }
 0x452   : > { %v2766_v50 = vpop.f32.mrb[185].mxu1  ;;  %v2765_v20 = vadd.f32 %v2764_v7, %v7858_v34 }
 0x453   : > { %v2768_v49 = vpop.f32.mrb[186].mxu1  ;;  %3637 = vmatprep.mubr.bf16.mxu0 %v8205_v39  ;;  %v2767_v31 = vadd.f32 %v2766_v50, %v7861_v51 }
 0x454   : > { %v2769_v44 = vadd.f32 %v2768_v49, %v7858_v34  ;;  %v2770_v62 = vpop.f32.mrb[187].mxu1  ;;  %3638 = vmatmul.mubr.bf16.gmra.mrb[20].mxu0 %v8208_v41 }
 0x455   : > { %v2771_v2 = vadd.f32 %v2770_v62, %v7861_v51 }
 0x456   : > { %v2873_v13 = vpack.c.bf16 %v2769_v44, %v2765_v20  ;;  %3949 = vmatmul.mubr.bf16.gmra.mrb[36].mxu1 %v8140_v14 }
 0x457   : > { %v2874_v0 = vpack.c.bf16 %v2771_v2, %v2767_v31  ;;  %3958 = vmatprep.mubr.bf16.mxu1 %v8157_v5 }
 0x458   : > { %v8233_v55 = vmax.bf16 %v6603_v42, %v2873_v13 }
 0x459   : > { %v2774_v26 = vpop.f32.mrb[188].mxu1  ;;  %v8225_v12 = vmax.bf16 %v6603_v42, %v2874_v0 }
 0x45a   : > { %v2776_v10 = vpop.f32.mrb[189].mxu1  ;;  %v2775_v14 = vadd.f32 %v2774_v26, %v7858_v34 }
 0x45b   : > { %v2778_v23 = vpop.f32.mrb[190].mxu1  ;;  %3647 = vmatprep.mubr.bf16.mxu0 %v8225_v12  ;;  %v2777_v40 = vadd.f32 %v2776_v10, %v7861_v51 }
 0x45c   : > { %v2779_v5 = vadd.f32 %v2778_v23, %v7858_v34  ;;  %v2780_v53 = vpop.f32.mrb[191].mxu1  ;;  %3648 = vmatmul.mubr.bf16.gmra.mrb[24].mxu0 %v8233_v55 }
 0x45d   : > { %v2781_v25 = vadd.f32 %v2780_v53, %v7861_v51 }
 0x45e   : > { %v2875_v52 = vpack.c.bf16 %v2779_v5, %v2775_v14  ;;  %3959 = vmatmul.mubr.bf16.gmra.mrb[40].mxu1 %v8160_v36 }
 0x45f   : > { %v2876_v9 = vpack.c.bf16 %v2781_v25, %v2777_v40  ;;  %v3389_v3 = vpop.f32.mrb[176].mxu0  ;;  %3968 = vmatprep.mubr.bf16.mxu1 %v8171_v32 }
 0x460   : > { %v3390_v33 = vadd.f32 %v3389_v3, %v8241_v21  ;;  %v3391_v22 = vpop.f32.mrb[177].mxu0  ;;  %v8257_v15 = vmax.bf16 %v6603_v42, %v2875_v52 }
 0x461   : > { %v3392_v57 = vadd.f32 %v3391_v22, %v8247_v17  ;;  %v2784_v6 = vpop.f32.mrb[192].mxu1  ;;  %v3393_v48 = vpop.f32.mrb[178].mxu0  ;;  %v8254_v35 = vmax.bf16 %v6603_v42, %v2876_v9 }
 0x462   : > { %v3394_v58 = vadd.f32 %v3393_v48, %v8241_v21  ;;  %v2786_v36 = vpop.f32.mrb[193].mxu1  ;;  %v3395_v18 = vpop.f32.mrb[179].mxu0  ;;  %v4057_v27 = vmax.f32 %v3390_v33, 0.0  ;;  %v2785_v61 = vadd.f32 %v2784_v6, %v7858_v34 }
 0x463   : > { %v3396_v11 = vadd.f32 %v3395_v18, %v8247_v17  ;;  %v2788_v32 = vpop.f32.mrb[194].mxu1  ;;  %3657 = vmatprep.mubr.bf16.mxu0 %v8254_v35  ;;  %v4058_v59 = vmax.f32 %v3392_v57, 0.0  ;;  %v2787_v46 = vadd.f32 %v2786_v36, %v7861_v51 }
 0x464   : > { %v4061_v24 = vmax.f32 %v3394_v58, 0.0  ;;  %v2789_v4 = vadd.f32 %v2788_v32, %v7858_v34  ;;  %v2790_v45 = vpop.f32.mrb[195].mxu1  ;;  %3658 = vmatmul.mubr.bf16.gmra.mrb[28].mxu0 %v8257_v15 }
 0x465   : > { %v4062_v63 = vmax.f32 %v3396_v11, 0.0  ;;  %v2791_v38 = vadd.f32 %v2790_v45, %v7861_v51 }
 0x466   : > { %v4309_v54 = vmax.f32 %v4057_v27, %v4061_v24  ;;  %v4557_v28 = vmin.f32 %v4057_v27, %v4061_v24  ;;  %v2877_v7 = vpack.c.bf16 %v2789_v4, %v2785_v61  ;;  %3969 = vmatmul.mubr.bf16.gmra.mrb[44].mxu1 %v8174_v37 }
 0x467   : > { %v4371_v50 = vmax.f32 %v4058_v59, %v4062_v63  ;;  %v4619_v49 = vmin.f32 %v4058_v59, %v4062_v63  ;;  %v2878_v20 = vpack.c.bf16 %v2791_v38, %v2787_v46  ;;  %v3399_v44 = vpop.f32.mrb[180].mxu0  ;;  %3978 = vmatprep.mubr.bf16.mxu1 %v8191_v47 }
 0x468   : > { %v3400_v62 = vadd.f32 %v3399_v44, %v8241_v21  ;;  %v3401_v31 = vpop.f32.mrb[181].mxu0  ;;  %v8281_v37 = vmax.bf16 %v6603_v42, %v2877_v7 }
 0x469   : > { %v3402_v2 = vadd.f32 %v3401_v31, %v8247_v17  ;;  %v2794_v60 = vpop.f32.mrb[196].mxu1  ;;  %v3403_v43 = vpop.f32.mrb[182].mxu0  ;;  %v8278_v13 = vmax.bf16 %v6603_v42, %v2878_v20 }
 0x46a   : > { %v4065_v0 = vmax.f32 %v3400_v62, 0.0  ;;  %v3404_v26 = vadd.f32 %v3403_v43, %v8241_v21  ;;  %v2796_v10 = vpop.f32.mrb[197].mxu1  ;;  %v3405_v47 = vpop.f32.mrb[183].mxu0  ;;  %v2795_v14 = vadd.f32 %v2794_v60, %v7858_v34 }
 0x46b   : > { %v4066_v23 = vmax.f32 %v3402_v2, 0.0  ;;  %v2797_v5 = vadd.f32 %v2796_v10, %v7861_v51  ;;  %v3406_v53 = vadd.f32 %v3405_v47, %v8247_v17  ;;  %v2798_v40 = vpop.f32.mrb[198].mxu1  ;;  %3667 = vmatprep.mubr.bf16.mxu0 %v8278_v13  ;;  %v6482_v10 = vld [vmem:[%s8873_s13 + $0x50] ss:$8 sps:$4 sm:$0xff]   ;;  %v6484_v47 = vld [vmem:[%s8873_s13 + $0x54] ss:$8 sps:$4 sm:$0xff]  }
 0x46c   : > { %v4310_v25 = vmax.f32 %v4309_v54, %v4065_v0  ;;  %v4558_v52 = vmin.f32 %v4557_v28, %v4065_v0  ;;  %v4069_v9 = vmax.f32 %v3404_v26, 0.0  ;;  %v2799_v3 = vadd.f32 %v2798_v40, %v7858_v34  ;;  %v2800_v33 = vpop.f32.mrb[199].mxu1  ;;  %3668 = vmatmul.mubr.bf16.gmra.mrb[32].mxu0 %v8281_v37  ;;  %5433 = vmatprep.subr.bf16.mxu0 %v6484_v47 }
 0x46d   : > { %v4372_v22 = vmax.f32 %v4371_v50, %v4066_v23  ;;  %v4620_v57 = vmin.f32 %v4619_v49, %v4066_v23  ;;  %v4070_v6 = vmax.f32 %v3406_v53, 0.0  ;;  %v2801_v48 = vadd.f32 %v2800_v33, %v7861_v51  ;;  %5434 = vmatpush1.bf16.msra.mxu0 %v6482_v10 }
 0x46e   : > { %v4311_v58 = vmax.f32 %v4310_v25, %v4069_v9  ;;  %v4559_v36 = vmin.f32 %v4558_v52, %v4069_v9  ;;  %v2879_v18 = vpack.c.bf16 %v2799_v3, %v2795_v14  ;;  %3979 = vmatmul.mubr.bf16.gmra.mrb[48].mxu1 %v8194_v56 }
 0x46f   : > { %v4373_v11 = vmax.f32 %v4372_v22, %v4070_v6  ;;  %v4621_v32 = vmin.f32 %v4620_v57, %v4070_v6  ;;  %v2880_v27 = vpack.c.bf16 %v2801_v48, %v2797_v5  ;;  %v3409_v61 = vpop.f32.mrb[184].mxu0  ;;  %3988 = vmatprep.mubr.bf16.mxu1 %v8205_v39 }
 0x470   : > { %v3410_v24 = vadd.f32 %v3409_v61, %v8241_v21  ;;  %v3411_v4 = vpop.f32.mrb[185].mxu0  ;;  %v8299_v38 = vmax.bf16 %v6603_v42, %v2879_v18 }
 0x471   : > { %v3412_v45 = vadd.f32 %v3411_v4, %v8247_v17  ;;  %v2804_v59 = vpop.f32.mrb[200].mxu1  ;;  %v3413_v46 = vpop.f32.mrb[186].mxu0  ;;  %v8296_v63 = vmax.bf16 %v6603_v42, %v2880_v27 }
 0x472   : > { %v4073_v56 = vmax.f32 %v3410_v24, 0.0  ;;  %v3414_v29 = vadd.f32 %v3413_v46, %v8241_v21  ;;  %v2806_v16 = vpop.f32.mrb[201].mxu1  ;;  %v3415_v54 = vpop.f32.mrb[187].mxu0  ;;  %v2805_v39 = vadd.f32 %v2804_v59, %v7858_v34  ;;  %v3025_v24 = vsub.s32 2, %v7496_v1 }
 0x473   : > { %v4074_v28 = vmax.f32 %v3412_v45, 0.0  ;;  %v2807_v7 = vadd.f32 %v2806_v16, %v7861_v51  ;;  %v3416_v50 = vadd.f32 %v3415_v54, %v8247_v17  ;;  %v2808_v49 = vpop.f32.mrb[202].mxu1  ;;  %3677 = vmatprep.mubr.bf16.mxu0 %v8296_v63 }
 0x474   : > { %v4312_v20 = vmax.f32 %v4311_v58, %v4073_v56  ;;  %v4560_v44 = vmin.f32 %v4559_v36, %v4073_v56  ;;  %v4077_v62 = vmax.f32 %v3414_v29, 0.0  ;;  %v2809_v31 = vadd.f32 %v2808_v49, %v7858_v34  ;;  %v2810_v2 = vpop.f32.mrb[203].mxu1  ;;  %3678 = vmatmul.mubr.bf16.gmra.mrb[36].mxu0 %v8299_v38 }
 0x475   : > { %v4374_v60 = vmax.f32 %v4373_v11, %v4074_v28  ;;  %v4622_v43 = vmin.f32 %v4621_v32, %v4074_v28  ;;  %v4078_v0 = vmax.f32 %v3416_v50, 0.0  ;;  %v2811_v26 = vadd.f32 %v2810_v2, %v7861_v51 }
 0x476   : > { %v4313_v23 = vmax.f32 %v4312_v20, %v4077_v62  ;;  %v4561_v14 = vmin.f32 %v4560_v44, %v4077_v62  ;;  %v2881_v5 = vpack.c.bf16 %v2809_v31, %v2805_v39  ;;  %3989 = vmatmul.mubr.bf16.gmra.mrb[52].mxu1 %v8208_v41  ;;  %v8341_v44 = vrot.slane %v8230_v30, %v3025_v24 }
 0x477   : > { %v4375_v53 = vmax.f32 %v4374_v60, %v4078_v0  ;;  %v4623_v40 = vmin.f32 %v4622_v43, %v4078_v0  ;;  %v2882_v25 = vpack.c.bf16 %v2811_v26, %v2807_v7  ;;  %v3419_v52 = vpop.f32.mrb[188].mxu0  ;;  %3998 = vmatprep.mubr.bf16.mxu1 %v8225_v12 }
 0x478   : > { %v3420_v9 = vadd.f32 %v3419_v52, %v8241_v21  ;;  %v3421_v3 = vpop.f32.mrb[189].mxu0  ;;  %v8323_v41 = vmax.bf16 %v6603_v42, %v2881_v5 }
 0x479   : > { %v3422_v33 = vadd.f32 %v3421_v3, %v8247_v17  ;;  %v2814_v22 = vpop.f32.mrb[204].mxu1  ;;  %v3423_v57 = vpop.f32.mrb[190].mxu0  ;;  %v8320_v6 = vmax.bf16 %v6603_v42, %v2882_v25 }
 0x47a   : > { %v4081_v48 = vmax.f32 %v3420_v9, 0.0  ;;  %v2815_v58 = vadd.f32 %v2814_v22, %v7858_v34  ;;  %v3424_v12 = vadd.f32 %v3423_v57, %v8241_v21  ;;  %v2816_v36 = vpop.f32.mrb[205].mxu1  ;;  %v3425_v18 = vpop.f32.mrb[191].mxu0  ;;  %v3029_v34 = vsub.s32 3, %v7496_v1  ;;  %v6485_v22 = vld [vmem:[%s8873_s13 + $0x60] ss:$8 sps:$4 sm:$0xff]  }
 0x47b   : > { %v4082_v11 = vmax.f32 %v3422_v33, 0.0  ;;  %v2817_v32 = vadd.f32 %v2816_v36, %v7861_v51  ;;  %v3426_v27 = vadd.f32 %v3425_v18, %v8247_v17  ;;  %v2818_v61 = vpop.f32.mrb[206].mxu1  ;;  %3687 = vmatprep.mubr.bf16.mxu0 %v8320_v6  ;;  %v6487_v57 = vld [vmem:[%s8873_s13 + $0x64] ss:$8 sps:$4 sm:$0xff]  }
 0x47c   : > { %v4314_v4 = vmax.f32 %v4313_v23, %v4081_v48  ;;  %v4562_v45 = vmin.f32 %v4561_v14, %v4081_v48  ;;  %v4085_v59 = vmax.f32 %v3424_v12, 0.0  ;;  %v2819_v46 = vpop.f32.mrb[207].mxu1  ;;  %3688 = vmatmul.mubr.bf16.gmra.mrb[40].mxu0 %v8323_v41  ;;  %v2883_v51 = vpack.c.bf16 %v2815_v58, %v2815_v58  ;;  %5435 = vmatprep.subr.bf16.mxu0 %v6487_v57 }
 0x47d   : > { %v4376_v56 = vmax.f32 %v4375_v53, %v4082_v11  ;;  %v4624_v29 = vmin.f32 %v4623_v40, %v4082_v11  ;;  %v2884_v16 = vpack.c.bf16 %v2817_v32, %v2817_v32  ;;  %v4086_v54 = vmax.f32 %v3426_v27, 0.0  ;;  %5436 = vmatpush1.bf16.msra.mxu0 %v6485_v22 }
 0x47e   : > { %v4315_v28 = vmax.f32 %v4314_v4, %v4085_v59  ;;  %v4563_v39 = vmin.f32 %v4562_v45, %v4085_v59  ;;  %3999 = vmatmul.mubr.bf16.gmra.mrb[56].mxu1 %v8233_v55  ;;  %v8347_v55 = vrot.slane %v8230_v30, %v3029_v34 }
 0x47f   : > { %v8335_v7 = vmax.bf16 %v6603_v42, %v2884_v16  ;;  %v4377_v50 = vmax.f32 %v4376_v56, %v4086_v54  ;;  %v4625_v49 = vmin.f32 %v4624_v29, %v4086_v54  ;;  %v3429_v20 = vpop.f32.mrb[192].mxu0  ;;  %4008 = vmatprep.mubr.bf16.mxu1 %v8254_v35  ;;  %v8352_v35 = vmax.bf16 %v6603_v42, %v2883_v51 }
 0x480   : > { %v3430_v62 = vadd.f32 %v3429_v20, %v8241_v21  ;;  %v3431_v31 = vpop.f32.mrb[193].mxu0 }
 0x481   : > { %v3432_v2 = vadd.f32 %v3431_v31, %v8247_v17  ;;  %v3433_v60 = vpop.f32.mrb[194].mxu0  ;;  %3697 = vmatprep.mubr.bf16.mxu0 %v8335_v7  ;;  %v3740_v43 = vpop.f32.mrb[208].mxu1 }
 0x482   : > { %v4089_v0 = vmax.f32 %v3430_v62, 0.0  ;;  %v3434_v26 = vadd.f32 %v3433_v60, %v8241_v21  ;;  %v3435_v10 = vpop.f32.mrb[195].mxu0  ;;  %v3742_v47 = vpop.f32.mrb[209].mxu1  ;;  %v3741_v14 = vadd.f32 %v3740_v43, %v8341_v44 }
 0x483   : > { %v4090_v23 = vmax.f32 %v3432_v2, 0.0  ;;  %v3436_v30 = vadd.f32 %v3435_v10, %v8247_v17  ;;  %v3744_v5 = vpop.f32.mrb[210].mxu1  ;;  %v3743_v52 = vadd.f32 %v3742_v47, %v8347_v55 }
 0x484   : > { %v4316_v53 = vmax.f32 %v4315_v28, %v4089_v0  ;;  %v4564_v40 = vmin.f32 %v4563_v39, %v4089_v0  ;;  %v4093_v25 = vmax.f32 %v3434_v26, 0.0  ;;  %3698 = vmatmul.mubr.bf16.gmra.mrb[44].mxu0 %v8352_v35  ;;  %v3746_v42 = vpop.f32.mrb[211].mxu1  ;;  %v3745_v12 = vadd.f32 %v3744_v5, %v8341_v44 }
 0x485   : > { %v4378_v9 = vmax.f32 %v4377_v50, %v4090_v23  ;;  %v4626_v3 = vmin.f32 %v4625_v49, %v4090_v23  ;;  %v4094_v33 = vmax.f32 %v3436_v30, 0.0  ;;  %v3747_v36 = vadd.f32 %v3746_v42, %v8347_v55 }
 0x486   : > { %v4317_v48 = vmax.f32 %v4316_v53, %v4093_v25  ;;  %v4565_v58 = vmin.f32 %v4564_v40, %v4093_v25  ;;  %4009 = vmatmul.mubr.bf16.gmra.mrb[60].mxu1 %v8257_v15  ;;  %v4059_v18 = vmax.f32 %v3741_v14, 0.0  ;;  %v4060_v61 = vmax.f32 %v3743_v52, 0.0 }
 0x487   : > { %v4379_v11 = vmax.f32 %v4378_v9, %v4094_v33  ;;  %v4627_v32 = vmin.f32 %v4626_v3, %v4094_v33  ;;  %v3439_v27 = vpop.f32.mrb[196].mxu0  ;;  %4018 = vmatprep.mubr.bf16.mxu1 %v8278_v13  ;;  %v4063_v4 = vmax.f32 %v3745_v12, 0.0  ;;  %v4064_v45 = vmax.f32 %v3747_v36, 0.0 }
 0x488   : > { %v3440_v59 = vadd.f32 %v3439_v27, %v8241_v21  ;;  %v3441_v46 = vpop.f32.mrb[197].mxu0 }
 0x489   : > { %v3442_v56 = vadd.f32 %v3441_v46, %v8247_v17  ;;  %v3443_v29 = vpop.f32.mrb[198].mxu0  ;;  %v3750_v16 = vpop.f32.mrb[212].mxu1  ;;  %v4433_v54 = vmax.f32 %v4059_v18, %v4063_v4  ;;  %v4681_v15 = vmin.f32 %v4059_v18, %v4063_v4  ;;  %v4495_v51 = vmax.f32 %v4060_v61, %v4064_v45 }
 0x48a   : > { %v4743_v28 = vmin.f32 %v4060_v61, %v4064_v45  ;;  %v3445_v39 = vpop.f32.mrb[199].mxu0  ;;  %v3752_v50 = vpop.f32.mrb[213].mxu1  ;;  %v4097_v49 = vmax.f32 %v3440_v59, 0.0  ;;  %v3444_v20 = vadd.f32 %v3443_v29, %v8241_v21  ;;  %v3751_v62 = vadd.f32 %v3750_v16, %v8341_v44 }
 0x48b   : > { %v4098_v13 = vmax.f32 %v3442_v56, 0.0  ;;  %v3754_v31 = vpop.f32.mrb[214].mxu1  ;;  %v3446_v2 = vadd.f32 %v3445_v39, %v8247_v17  ;;  %v3753_v60 = vadd.f32 %v3752_v50, %v8347_v55 }
 0x48c   : > { %v3755_v43 = vadd.f32 %v3754_v31, %v8341_v44  ;;  %v3756_v0 = vpop.f32.mrb[215].mxu1  ;;  %v4318_v26 = vmax.f32 %v4317_v48, %v4097_v49  ;;  %v4566_v10 = vmin.f32 %v4565_v58, %v4097_v49  ;;  %v4101_v14 = vmax.f32 %v3444_v20, 0.0 }
 0x48d   : > { %v4380_v47 = vmax.f32 %v4379_v11, %v4098_v13  ;;  %v4628_v23 = vmin.f32 %v4627_v32, %v4098_v13  ;;  %v4067_v30 = vmax.f32 %v3751_v62, 0.0  ;;  %v4102_v5 = vmax.f32 %v3446_v2, 0.0  ;;  %v6488_v13 = vld [vmem:[%s8873_s13 + $0x70] ss:$8 sps:$4 sm:$0xff]  }
 0x48e   : > { %v4068_v53 = vmax.f32 %v3753_v60, 0.0  ;;  %4019 = vmatmul.mubr.bf16.gmra.mrb[64].mxu1 %v8281_v37  ;;  %v4071_v40 = vmax.f32 %v3755_v43, 0.0  ;;  %v3757_v25 = vadd.f32 %v3756_v0, %v8347_v55  ;;  %v4319_v42 = vmax.f32 %v4318_v26, %v4101_v14  ;;  %v6490_v60 = vld [vmem:[%s8873_s13 + $0x74] ss:$8 sps:$4 sm:$0xff]  }
 0x48f   : > { %v3449_v52 = vpop.f32.mrb[200].mxu0  ;;  %4028 = vmatprep.mubr.bf16.mxu1 %v8296_v63  ;;  %v4567_v9 = vmin.f32 %v4566_v10, %v4101_v14  ;;  %v4434_v3 = vmax.f32 %v4433_v54, %v4067_v30  ;;  %v4682_v33 = vmin.f32 %v4681_v15, %v4067_v30  ;;  %v4381_v57 = vmax.f32 %v4380_v47, %v4102_v5 }
 0x490   : > { %v3451_v22 = vpop.f32.mrb[201].mxu0  ;;  %v4629_v48 = vmin.f32 %v4628_v23, %v4102_v5  ;;  %v4496_v58 = vmax.f32 %v4495_v51, %v4068_v53  ;;  %v4744_v12 = vmin.f32 %v4743_v28, %v4068_v53  ;;  %v4072_v37 = vmax.f32 %v3757_v25, 0.0  ;;  %5437 = vmatprep.subr.bf16.mxu0 %v6490_v60 }
 0x491   : > { %v3453_v36 = vpop.f32.mrb[202].mxu0  ;;  %v3760_v18 = vpop.f32.mrb[216].mxu1  ;;  %v4435_v11 = vmax.f32 %v4434_v3, %v4071_v40  ;;  %v4683_v32 = vmin.f32 %v4682_v33, %v4071_v40  ;;  %v3450_v27 = vadd.f32 %v3449_v52, %v8241_v21  ;;  %v3452_v63 = vadd.f32 %v3451_v22, %v8247_v17  ;;  %5438 = vmatpush1.bf16.msra.mxu0 %v6488_v13 }
 0x492   : > { %v3455_v61 = vpop.f32.mrb[203].mxu0  ;;  %v3762_v4 = vpop.f32.mrb[217].mxu1  ;;  %v3454_v45 = vadd.f32 %v3453_v36, %v8241_v21  ;;  %v3761_v59 = vadd.f32 %v3760_v18, %v8341_v44  ;;  %v4497_v29 = vmax.f32 %v4496_v58, %v4072_v37  ;;  %v4745_v16 = vmin.f32 %v4744_v12, %v4072_v37 }
 0x493   : > { %v3456_v46 = vadd.f32 %v3455_v61, %v8247_v17  ;;  %v3764_v56 = vpop.f32.mrb[218].mxu1  ;;  %v4105_v54 = vmax.f32 %v3450_v27, 0.0  ;;  %v3763_v15 = vadd.f32 %v3762_v4, %v8347_v55  ;;  %v4106_v28 = vmax.f32 %v3452_v63, 0.0 }
 0x494   : > { %v3766_v51 = vpop.f32.mrb[219].mxu1  ;;  %v4109_v39 = vmax.f32 %v3454_v45, 0.0  ;;  %v4075_v50 = vmax.f32 %v3761_v59, 0.0  ;;  %v3765_v2 = vadd.f32 %v3764_v56, %v8341_v44 }
 0x495   : > { %v4110_v49 = vmax.f32 %v3456_v46, 0.0  ;;  %v4320_v20 = vmax.f32 %v4319_v42, %v4105_v54  ;;  %v4568_v62 = vmin.f32 %v4567_v9, %v4105_v54  ;;  %v4076_v31 = vmax.f32 %v3763_v15, 0.0 }
 0x496   : > { %4029 = vmatmul.mubr.bf16.gmra.mrb[68].mxu1 %v8299_v38  ;;  %v4382_v43 = vmax.f32 %v4381_v57, %v4106_v28  ;;  %v4630_v0 = vmin.f32 %v4629_v48, %v4106_v28  ;;  %v4436_v26 = vmax.f32 %v4435_v11, %v4075_v50  ;;  %v4684_v10 = vmin.f32 %v4683_v32, %v4075_v50 }
 0x497   : > { %v3459_v47 = vpop.f32.mrb[204].mxu0  ;;  %4038 = vmatprep.mubr.bf16.mxu1 %v8320_v6  ;;  %v4321_v23 = vmax.f32 %v4320_v20, %v4109_v39  ;;  %v4569_v14 = vmin.f32 %v4568_v62, %v4109_v39  ;;  %v4498_v30 = vmax.f32 %v4497_v29, %v4076_v31  ;;  %v4746_v5 = vmin.f32 %v4745_v16, %v4076_v31 }
 0x498   : > { %v3461_v53 = vpop.f32.mrb[205].mxu0  ;;  %v4383_v40 = vmax.f32 %v4382_v43, %v4110_v49  ;;  %v4631_v25 = vmin.f32 %v4630_v0, %v4110_v49  ;;  %v4079_v38 = vmax.f32 %v3765_v2, 0.0  ;;  %v3767_v52 = vadd.f32 %v3766_v51, %v8347_v55 }
 0x499   : > { %v3463_v42 = vpop.f32.mrb[206].mxu0  ;;  %v3770_v9 = vpop.f32.mrb[220].mxu1  ;;  %v3460_v3 = vadd.f32 %v3459_v47, %v8241_v21  ;;  %v3462_v33 = vadd.f32 %v3461_v53, %v8247_v17 }
 0x49a   : > { %v3464_v6 = vadd.f32 %v3463_v42, %v8241_v21  ;;  %v3771_v22 = vadd.f32 %v3770_v9, %v8341_v44  ;;  %v3465_v57 = vpop.f32.mrb[207].mxu0  ;;  %v3772_v48 = vpop.f32.mrb[221].mxu1  ;;  %v4437_v58 = vmax.f32 %v4436_v26, %v4079_v38  ;;  %v4685_v12 = vmin.f32 %v4684_v10, %v4079_v38 }
 0x49b   : > { %v4080_v36 = vmax.f32 %v3767_v52, 0.0  ;;  %v3466_v18 = vadd.f32 %v3465_v57, %v8247_v17  ;;  %v3774_v11 = vpop.f32.mrb[222].mxu1  ;;  %v4113_v32 = vmax.f32 %v3460_v3, 0.0  ;;  %v4114_v37 = vmax.f32 %v3462_v33, 0.0 }
 0x49c   : > { %v4117_v27 = vmax.f32 %v3464_v6, 0.0  ;;  %v4083_v61 = vmax.f32 %v3771_v22, 0.0  ;;  %v3776_v4 = vpop.f32.mrb[223].mxu1  ;;  %v3773_v46 = vadd.f32 %v3772_v48, %v8347_v55  ;;  %v3775_v39 = vadd.f32 %v3774_v11, %v8341_v44 }
 0x49d   : > { %v4499_v63 = vmax.f32 %v4498_v30, %v4080_v36  ;;  %v4747_v45 = vmin.f32 %v4746_v5, %v4080_v36  ;;  %v4118_v59 = vmax.f32 %v3466_v18, 0.0  ;;  %v4322_v56 = vmax.f32 %v4321_v23, %v4113_v32 }
 0x49e   : > { %v4570_v29 = vmin.f32 %v4569_v14, %v4113_v32  ;;  %v4384_v16 = vmax.f32 %v4383_v40, %v4114_v37  ;;  %v4632_v54 = vmin.f32 %v4631_v25, %v4114_v37  ;;  %4039 = vmatmul.mubr.bf16.gmra.mrb[72].mxu1 %v8323_v41  ;;  %v4438_v15 = vmax.f32 %v4437_v58, %v4083_v61  ;;  %v6491_v58 = vld [vmem:[%s8873_s13 + $0x80] ss:$8 sps:$4 sm:$0xff]  }
 0x49f   : > { %v4686_v51 = vmin.f32 %v4685_v12, %v4083_v61  ;;  %v4084_v28 = vmax.f32 %v3773_v46, 0.0  ;;  %v3469_v50 = vpop.f32.mrb[208].mxu0  ;;  %4048 = vmatprep.mubr.bf16.mxu1 %v8335_v7  ;;  %v4323_v49 = vmax.f32 %v4322_v56, %v4117_v27  ;;  %v4087_v43 = vmax.f32 %v3775_v39, 0.0  ;;  %v6493_v12 = vld [vmem:[%s8873_s13 + $0x84] ss:$8 sps:$4 sm:$0xff]  }
 0x4a0   : > { %v4571_v13 = vmin.f32 %v4570_v29, %v4117_v27  ;;  %v4385_v20 = vmax.f32 %v4384_v16, %v4118_v59  ;;  %v4633_v62 = vmin.f32 %v4632_v54, %v4118_v59  ;;  %v3471_v31 = vpop.f32.mrb[209].mxu0  ;;  %v3777_v0 = vadd.f32 %v3776_v4, %v8347_v55  ;;  %5439 = vmatprep.subr.bf16.mxu0 %v6493_v12 }
 0x4a1   : > { %v4500_v2 = vmax.f32 %v4499_v63, %v4084_v28  ;;  %v4748_v60 = vmin.f32 %v4747_v45, %v4084_v28  ;;  %v3473_v26 = vpop.f32.mrb[210].mxu0  ;;  %v3780_v41 = vpop.f32.mrb[224].mxu1  ;;  %v3470_v10 = vadd.f32 %v3469_v50, %v8241_v21  ;;  %v3472_v47 = vadd.f32 %v3471_v31, %v8247_v17  ;;  %5440 = vmatpush1.bf16.msra.mxu0 %v6491_v58 }
 0x4a2   : > { %v3474_v23 = vadd.f32 %v3473_v26, %v8241_v21  ;;  %v3781_v7 = vadd.f32 %v3780_v41, %v8341_v44  ;;  %v3475_v14 = vpop.f32.mrb[211].mxu0  ;;  %v3782_v30 = vpop.f32.mrb[225].mxu1  ;;  %v4439_v5 = vmax.f32 %v4438_v15, %v4087_v43  ;;  %v4687_v53 = vmin.f32 %v4686_v51, %v4087_v43 }
 0x4a3   : > { %v4088_v40 = vmax.f32 %v3777_v0, 0.0  ;;  %v3476_v25 = vadd.f32 %v3475_v14, %v8247_v17  ;;  %v3784_v38 = vpop.f32.mrb[226].mxu1  ;;  %v4121_v52 = vmax.f32 %v3470_v10, 0.0  ;;  %v4122_v42 = vmax.f32 %v3472_v47, 0.0 }
 0x4a4   : > { %v4125_v9 = vmax.f32 %v3474_v23, 0.0  ;;  %v4091_v3 = vmax.f32 %v3781_v7, 0.0  ;;  %v3786_v33 = vpop.f32.mrb[227].mxu1  ;;  %v3783_v48 = vadd.f32 %v3782_v30, %v8347_v55  ;;  %v3785_v4 = vadd.f32 %v3784_v38, %v8341_v44 }
 0x4a5   : > { %v4501_v6 = vmax.f32 %v4500_v2, %v4088_v40  ;;  %v4749_v22 = vmin.f32 %v4748_v60, %v4088_v40  ;;  %v4126_v57 = vmax.f32 %v3476_v25, 0.0  ;;  %v4324_v36 = vmax.f32 %v4323_v49, %v4121_v52 }
 0x4a6   : > { %v4572_v18 = vmin.f32 %v4571_v13, %v4121_v52  ;;  %v4386_v11 = vmax.f32 %v4385_v20, %v4122_v42  ;;  %v4634_v32 = vmin.f32 %v4633_v62, %v4122_v42  ;;  %4049 = vmatmul.mubr.bf16.gmra.mrb[76].mxu1 %v8352_v35  ;;  %v4440_v37 = vmax.f32 %v4439_v5, %v4091_v3 }
 0x4a7   : > { %v4688_v27 = vmin.f32 %v4687_v53, %v4091_v3  ;;  %v4092_v61 = vmax.f32 %v3783_v48, 0.0  ;;  %v3479_v63 = vpop.f32.mrb[212].mxu0  ;;  %v4325_v45 = vmax.f32 %v4324_v36, %v4125_v9  ;;  %v4095_v15 = vmax.f32 %v3785_v4, 0.0 }
 0x4a8   : > { %v4573_v59 = vmin.f32 %v4572_v18, %v4125_v9  ;;  %v4387_v46 = vmax.f32 %v4386_v11, %v4126_v57  ;;  %v4635_v56 = vmin.f32 %v4634_v32, %v4126_v57  ;;  %v3481_v29 = vpop.f32.mrb[213].mxu0  ;;  %v3787_v51 = vadd.f32 %v3786_v33, %v8347_v55 }
 0x4a9   : > { %v4502_v16 = vmax.f32 %v4501_v6, %v4092_v61  ;;  %v4750_v54 = vmin.f32 %v4749_v22, %v4092_v61  ;;  %v3483_v28 = vpop.f32.mrb[214].mxu0  ;;  %v3790_v35 = vpop.f32.mrb[228].mxu1  ;;  %v3480_v39 = vadd.f32 %v3479_v63, %v8241_v21  ;;  %v3482_v50 = vadd.f32 %v3481_v29, %v8247_v17 }
 0x4aa   : > { %v3484_v49 = vadd.f32 %v3483_v28, %v8241_v21  ;;  %v3791_v13 = vadd.f32 %v3790_v35, %v8341_v44  ;;  %v3485_v20 = vpop.f32.mrb[215].mxu0  ;;  %v3792_v62 = vpop.f32.mrb[229].mxu1  ;;  %v4441_v31 = vmax.f32 %v4440_v37, %v4095_v15  ;;  %v4689_v2 = vmin.f32 %v4688_v27, %v4095_v15 }
 0x4ab   : > { %v4096_v60 = vmax.f32 %v3787_v51, 0.0  ;;  %v3486_v43 = vadd.f32 %v3485_v20, %v8247_v17  ;;  %v3794_v0 = vpop.f32.mrb[230].mxu1  ;;  %v4129_v26 = vmax.f32 %v3480_v39, 0.0  ;;  %v4130_v41 = vmax.f32 %v3482_v50, 0.0 }
 0x4ac   : > { %v4133_v10 = vmax.f32 %v3484_v49, 0.0  ;;  %v4099_v47 = vmax.f32 %v3791_v13, 0.0  ;;  %v3796_v23 = vpop.f32.mrb[231].mxu1  ;;  %v3793_v5 = vadd.f32 %v3792_v62, %v8347_v55  ;;  %v3795_v3 = vadd.f32 %v3794_v0, %v8341_v44  ;;  %v6494_v62 = vld [vmem:[%s8873_s13 + $0x90] ss:$8 sps:$4 sm:$0xff]  }
 0x4ad   : > { %v4503_v7 = vmax.f32 %v4502_v16, %v4096_v60  ;;  %v4751_v14 = vmin.f32 %v4750_v54, %v4096_v60  ;;  %v4134_v30 = vmax.f32 %v3486_v43, 0.0  ;;  %v4326_v53 = vmax.f32 %v4325_v45, %v4129_v26 }
 0x4ae   : > { %v4574_v40 = vmin.f32 %v4573_v59, %v4129_v26  ;;  %v4388_v25 = vmax.f32 %v4387_v46, %v4130_v41  ;;  %v4636_v38 = vmin.f32 %v4635_v56, %v4130_v41  ;;  %v4442_v52 = vmax.f32 %v4441_v31, %v4099_v47  ;;  %v6496_v31 = vld [vmem:[%s8873_s13 + $0x94] ss:$8 sps:$4 sm:$0xff]  }
 0x4af   : > { %v4690_v42 = vmin.f32 %v4689_v2, %v4099_v47  ;;  %v4100_v9 = vmax.f32 %v3793_v5, 0.0  ;;  %v3489_v33 = vpop.f32.mrb[216].mxu0  ;;  %v4327_v6 = vmax.f32 %v4326_v53, %v4133_v10  ;;  %v4103_v18 = vmax.f32 %v3795_v3, 0.0  ;;  %5441 = vmatprep.subr.bf16.mxu0 %v6496_v31 }
 0x4b0   : > { %v4575_v22 = vmin.f32 %v4574_v40, %v4133_v10  ;;  %v4389_v57 = vmax.f32 %v4388_v25, %v4134_v30  ;;  %v4637_v48 = vmin.f32 %v4636_v38, %v4134_v30  ;;  %v3491_v58 = vpop.f32.mrb[217].mxu0  ;;  %v3797_v11 = vadd.f32 %v3796_v23, %v8347_v55  ;;  %5442 = vmatpush1.bf16.msra.mxu0 %v6494_v62 }
 0x4b1   : > { %v4504_v12 = vmax.f32 %v4503_v7, %v4100_v9  ;;  %v4752_v36 = vmin.f32 %v4751_v14, %v4100_v9  ;;  %v3493_v32 = vpop.f32.mrb[218].mxu0  ;;  %v3800_v37 = vpop.f32.mrb[232].mxu1  ;;  %v3490_v27 = vadd.f32 %v3489_v33, %v8241_v21  ;;  %v3492_v61 = vadd.f32 %v3491_v58, %v8247_v17 }
 0x4b2   : > { %v3494_v4 = vadd.f32 %v3493_v32, %v8241_v21  ;;  %v3801_v63 = vadd.f32 %v3800_v37, %v8341_v44  ;;  %v3495_v45 = vpop.f32.mrb[219].mxu0  ;;  %v3802_v59 = vpop.f32.mrb[233].mxu1  ;;  %v4443_v46 = vmax.f32 %v4442_v52, %v4103_v18  ;;  %v4691_v56 = vmin.f32 %v4690_v42, %v4103_v18 }
 0x4b3   : > { %v4104_v29 = vmax.f32 %v3797_v11, 0.0  ;;  %v3496_v16 = vadd.f32 %v3495_v45, %v8247_v17  ;;  %v3804_v54 = vpop.f32.mrb[234].mxu1  ;;  %v4137_v15 = vmax.f32 %v3490_v27, 0.0  ;;  %v4138_v51 = vmax.f32 %v3492_v61, 0.0 }
 0x4b4   : > { %v4141_v28 = vmax.f32 %v3494_v4, 0.0  ;;  %v4107_v35 = vmax.f32 %v3801_v63, 0.0  ;;  %v3806_v39 = vpop.f32.mrb[235].mxu1  ;;  %v3803_v20 = vadd.f32 %v3802_v59, %v8347_v55  ;;  %v3805_v47 = vadd.f32 %v3804_v54, %v8341_v44 }
 0x4b5   : > { %v4505_v50 = vmax.f32 %v4504_v12, %v4104_v29  ;;  %v4753_v49 = vmin.f32 %v4752_v36, %v4104_v29  ;;  %v4142_v13 = vmax.f32 %v3496_v16, 0.0  ;;  %v4328_v2 = vmax.f32 %v4327_v6, %v4137_v15 }
 0x4b6   : > { %v4576_v60 = vmin.f32 %v4575_v22, %v4137_v15  ;;  %v4390_v43 = vmax.f32 %v4389_v57, %v4138_v51  ;;  %v4638_v0 = vmin.f32 %v4637_v48, %v4138_v51  ;;  %v4444_v26 = vmax.f32 %v4443_v46, %v4107_v35 }
 0x4b7   : > { %v4692_v41 = vmin.f32 %v4691_v56, %v4107_v35  ;;  %v4108_v10 = vmax.f32 %v3803_v20, 0.0  ;;  %v3499_v23 = vpop.f32.mrb[220].mxu0  ;;  %v4329_v7 = vmax.f32 %v4328_v2, %v4141_v28  ;;  %v4111_v38 = vmax.f32 %v3805_v47, 0.0 }
 0x4b8   : > { %v4577_v14 = vmin.f32 %v4576_v60, %v4141_v28  ;;  %v4391_v30 = vmax.f32 %v4390_v43, %v4142_v13  ;;  %v4639_v5 = vmin.f32 %v4638_v0, %v4142_v13  ;;  %v3501_v53 = vpop.f32.mrb[221].mxu0  ;;  %v3807_v52 = vadd.f32 %v3806_v39, %v8347_v55 }
 0x4b9   : > { %v4506_v40 = vmax.f32 %v4505_v50, %v4108_v10  ;;  %v4754_v25 = vmin.f32 %v4753_v49, %v4108_v10  ;;  %v3503_v42 = vpop.f32.mrb[222].mxu0  ;;  %v3810_v9 = vpop.f32.mrb[236].mxu1  ;;  %v3500_v3 = vadd.f32 %v3499_v23, %v8241_v21  ;;  %v3502_v33 = vadd.f32 %v3501_v53, %v8247_v17 }
 0x4ba   : > { %v3504_v6 = vadd.f32 %v3503_v42, %v8241_v21  ;;  %v3811_v22 = vadd.f32 %v3810_v9, %v8341_v44  ;;  %v3505_v57 = vpop.f32.mrb[223].mxu0  ;;  %v3812_v48 = vpop.f32.mrb[237].mxu1  ;;  %v4445_v58 = vmax.f32 %v4444_v26, %v4111_v38  ;;  %v4693_v12 = vmin.f32 %v4692_v41, %v4111_v38 }
 0x4bb   : > { %v4112_v36 = vmax.f32 %v3807_v52, 0.0  ;;  %v3506_v18 = vadd.f32 %v3505_v57, %v8247_v17  ;;  %v3814_v11 = vpop.f32.mrb[238].mxu1  ;;  %v4145_v32 = vmax.f32 %v3500_v3, 0.0  ;;  %v4146_v37 = vmax.f32 %v3502_v33, 0.0 }
 0x4bc   : > { %v4149_v27 = vmax.f32 %v3504_v6, 0.0  ;;  %v4115_v61 = vmax.f32 %v3811_v22, 0.0  ;;  %v3816_v4 = vpop.f32.mrb[239].mxu1  ;;  %v3813_v46 = vadd.f32 %v3812_v48, %v8347_v55  ;;  %v3815_v35 = vadd.f32 %v3814_v11, %v8341_v44  ;;  %v6497_v48 = vld [vmem:[%s8873_s13 + $0xa0] ss:$8 sps:$4 sm:$0xff]  }
 0x4bd   : > { %v4507_v63 = vmax.f32 %v4506_v40, %v4112_v36  ;;  %v4755_v45 = vmin.f32 %v4754_v25, %v4112_v36  ;;  %v4150_v59 = vmax.f32 %v3506_v18, 0.0  ;;  %v4330_v56 = vmax.f32 %v4329_v7, %v4145_v32 }
 0x4be   : > { %v4578_v29 = vmin.f32 %v4577_v14, %v4145_v32  ;;  %v4392_v16 = vmax.f32 %v4391_v30, %v4146_v37  ;;  %v4640_v54 = vmin.f32 %v4639_v5, %v4146_v37  ;;  %v4446_v15 = vmax.f32 %v4445_v58, %v4115_v61  ;;  %v6499_v58 = vld [vmem:[%s8873_s13 + $0xa4] ss:$8 sps:$4 sm:$0xff]  }
 0x4bf   : > { %v4694_v51 = vmin.f32 %v4693_v12, %v4115_v61  ;;  %v4116_v28 = vmax.f32 %v3813_v46, 0.0  ;;  %v3509_v39 = vpop.f32.mrb[224].mxu0  ;;  %v4331_v50 = vmax.f32 %v4330_v56, %v4149_v27  ;;  %v4119_v60 = vmax.f32 %v3815_v35, 0.0  ;;  %5443 = vmatprep.subr.bf16.mxu0 %v6499_v58 }
 0x4c0   : > { %v4579_v49 = vmin.f32 %v4578_v29, %v4149_v27  ;;  %v4393_v13 = vmax.f32 %v4392_v16, %v4150_v59  ;;  %v4641_v20 = vmin.f32 %v4640_v54, %v4150_v59  ;;  %v3511_v62 = vpop.f32.mrb[225].mxu0  ;;  %v3817_v43 = vadd.f32 %v3816_v4, %v8347_v55  ;;  %5444 = vmatpush1.bf16.msra.mxu0 %v6497_v48 }
 0x4c1   : > { %v4508_v31 = vmax.f32 %v4507_v63, %v4116_v28  ;;  %v4756_v2 = vmin.f32 %v4755_v45, %v4116_v28  ;;  %v3513_v0 = vpop.f32.mrb[226].mxu0  ;;  %v3820_v26 = vpop.f32.mrb[240].mxu1  ;;  %v3510_v41 = vadd.f32 %v3509_v39, %v8241_v21  ;;  %v3512_v10 = vadd.f32 %v3511_v62, %v8247_v17 }
 0x4c2   : > { %v3514_v47 = vadd.f32 %v3513_v0, %v8241_v21  ;;  %v3821_v23 = vadd.f32 %v3820_v26, %v8341_v44  ;;  %v3515_v7 = vpop.f32.mrb[227].mxu0  ;;  %v3822_v14 = vpop.f32.mrb[241].mxu1  ;;  %v4447_v30 = vmax.f32 %v4446_v15, %v4119_v60  ;;  %v4695_v5 = vmin.f32 %v4694_v51, %v4119_v60 }
 0x4c3   : > { %v4120_v53 = vmax.f32 %v3817_v43, 0.0  ;;  %v3516_v40 = vadd.f32 %v3515_v7, %v8247_v17  ;;  %v3824_v25 = vpop.f32.mrb[242].mxu1  ;;  %v4153_v38 = vmax.f32 %v3510_v41, 0.0  ;;  %v4154_v52 = vmax.f32 %v3512_v10, 0.0 }
 0x4c4   : > { %v4157_v42 = vmax.f32 %v3514_v47, 0.0  ;;  %v4123_v9 = vmax.f32 %v3821_v23, 0.0  ;;  %v3826_v3 = vpop.f32.mrb[243].mxu1  ;;  %v3823_v57 = vadd.f32 %v3822_v14, %v8347_v55  ;;  %v3825_v61 = vadd.f32 %v3824_v25, %v8341_v44 }
 0x4c5   : > { %v4509_v33 = vmax.f32 %v4508_v31, %v4120_v53  ;;  %v4757_v6 = vmin.f32 %v4756_v2, %v4120_v53  ;;  %v4158_v22 = vmax.f32 %v3516_v40, 0.0  ;;  %v4332_v12 = vmax.f32 %v4331_v50, %v4153_v38 }
 0x4c6   : > { %v4580_v36 = vmin.f32 %v4579_v49, %v4153_v38  ;;  %v4394_v18 = vmax.f32 %v4393_v13, %v4154_v52  ;;  %v4642_v11 = vmin.f32 %v4641_v20, %v4154_v52  ;;  %v4448_v32 = vmax.f32 %v4447_v30, %v4123_v9 }
 0x4c7   : > { %v4696_v37 = vmin.f32 %v4695_v5, %v4123_v9  ;;  %v4124_v27 = vmax.f32 %v3823_v57, 0.0  ;;  %v3519_v4 = vpop.f32.mrb[228].mxu0  ;;  %v4333_v63 = vmax.f32 %v4332_v12, %v4157_v42  ;;  %v4127_v54 = vmax.f32 %v3825_v61, 0.0 }
 0x4c8   : > { %v4581_v45 = vmin.f32 %v4580_v36, %v4157_v42  ;;  %v4395_v59 = vmax.f32 %v4394_v18, %v4158_v22  ;;  %v4643_v46 = vmin.f32 %v4642_v11, %v4158_v22  ;;  %v3521_v56 = vpop.f32.mrb[229].mxu0  ;;  %v3827_v15 = vadd.f32 %v3826_v3, %v8347_v55 }
 0x4c9   : > { %v4510_v29 = vmax.f32 %v4509_v33, %v4124_v27  ;;  %v4758_v16 = vmin.f32 %v4757_v6, %v4124_v27  ;;  %v3523_v51 = vpop.f32.mrb[230].mxu0  ;;  %v3830_v28 = vpop.f32.mrb[244].mxu1  ;;  %v3520_v35 = vadd.f32 %v3519_v4, %v8241_v21  ;;  %v3522_v39 = vadd.f32 %v3521_v56, %v8247_v17 }
 0x4ca   : > { %v3524_v50 = vadd.f32 %v3523_v51, %v8241_v21  ;;  %v3831_v49 = vadd.f32 %v3830_v28, %v8341_v44  ;;  %v3525_v13 = vpop.f32.mrb[231].mxu0  ;;  %v3832_v20 = vpop.f32.mrb[245].mxu1  ;;  %v4449_v62 = vmax.f32 %v4448_v32, %v4127_v54  ;;  %v4697_v31 = vmin.f32 %v4696_v37, %v4127_v54 }
 0x4cb   : > { %v4128_v2 = vmax.f32 %v3827_v15, 0.0  ;;  %v3526_v60 = vadd.f32 %v3525_v13, %v8247_v17  ;;  %v3834_v43 = vpop.f32.mrb[246].mxu1  ;;  %v4161_v0 = vmax.f32 %v3520_v35, 0.0  ;;  %v4162_v26 = vmax.f32 %v3522_v39, 0.0 }
 0x4cc   : > { %v4165_v41 = vmax.f32 %v3524_v50, 0.0  ;;  %v4131_v10 = vmax.f32 %v3831_v49, 0.0  ;;  %v3836_v47 = vpop.f32.mrb[247].mxu1  ;;  %v3833_v30 = vadd.f32 %v3832_v20, %v8347_v55  ;;  %v3835_v9 = vadd.f32 %v3834_v43, %v8341_v44  ;;  %v6500_v20 = vld [vmem:[%s8873_s13 + $0xb0] ss:$8 sps:$4 sm:$0xff]  }
 0x4cd   : > { %v4511_v23 = vmax.f32 %v4510_v29, %v4128_v2  ;;  %v4759_v7 = vmin.f32 %v4758_v16, %v4128_v2  ;;  %v4166_v14 = vmax.f32 %v3526_v60, 0.0  ;;  %v4334_v5 = vmax.f32 %v4333_v63, %v4161_v0 }
 0x4ce   : > { %v4582_v53 = vmin.f32 %v4581_v45, %v4161_v0  ;;  %v4396_v40 = vmax.f32 %v4395_v59, %v4162_v26  ;;  %v4644_v25 = vmin.f32 %v4643_v46, %v4162_v26  ;;  %v4450_v38 = vmax.f32 %v4449_v62, %v4131_v10  ;;  %v6502_v62 = vld [vmem:[%s8873_s13 + $0xb4] ss:$8 sps:$4 sm:$0xff]  }
 0x4cf   : > { %v4698_v52 = vmin.f32 %v4697_v31, %v4131_v10  ;;  %v4132_v42 = vmax.f32 %v3833_v30, 0.0  ;;  %v3529_v3 = vpop.f32.mrb[232].mxu0  ;;  %v4335_v33 = vmax.f32 %v4334_v5, %v4165_v41  ;;  %v4135_v36 = vmax.f32 %v3835_v9, 0.0  ;;  %5445 = vmatprep.subr.bf16.mxu0 %v6502_v62 }
 0x4d0   : > { %v4583_v6 = vmin.f32 %v4582_v53, %v4165_v41  ;;  %v4397_v22 = vmax.f32 %v4396_v40, %v4166_v14  ;;  %v4645_v57 = vmin.f32 %v4644_v25, %v4166_v14  ;;  %v3531_v48 = vpop.f32.mrb[233].mxu0  ;;  %v3837_v18 = vadd.f32 %v3836_v47, %v8347_v55  ;;  %5446 = vmatpush1.bf16.msra.mxu0 %v6500_v20 }
 0x4d1   : > { %v4512_v58 = vmax.f32 %v4511_v23, %v4132_v42  ;;  %v4760_v12 = vmin.f32 %v4759_v7, %v4132_v42  ;;  %v3533_v11 = vpop.f32.mrb[234].mxu0  ;;  %v3840_v32 = vpop.f32.mrb[248].mxu1  ;;  %v3530_v37 = vadd.f32 %v3529_v3, %v8241_v21  ;;  %v3532_v27 = vadd.f32 %v3531_v48, %v8247_v17 }
 0x4d2   : > { %v3534_v61 = vadd.f32 %v3533_v11, %v8241_v21  ;;  %v3841_v4 = vadd.f32 %v3840_v32, %v8341_v44  ;;  %v3535_v63 = vpop.f32.mrb[235].mxu0  ;;  %v3842_v45 = vpop.f32.mrb[249].mxu1  ;;  %v4451_v59 = vmax.f32 %v4450_v38, %v4135_v36  ;;  %v4699_v46 = vmin.f32 %v4698_v52, %v4135_v36 }
 0x4d3   : > { %v4136_v56 = vmax.f32 %v3837_v18, 0.0  ;;  %v3536_v29 = vadd.f32 %v3535_v63, %v8247_v17  ;;  %v3844_v16 = vpop.f32.mrb[250].mxu1  ;;  %v4169_v54 = vmax.f32 %v3530_v37, 0.0  ;;  %v4170_v15 = vmax.f32 %v3532_v27, 0.0 }
 0x4d4   : > { %v4173_v51 = vmax.f32 %v3534_v61, 0.0  ;;  %v4139_v28 = vmax.f32 %v3841_v4, 0.0  ;;  %v3846_v35 = vpop.f32.mrb[251].mxu1  ;;  %v3843_v13 = vadd.f32 %v3842_v45, %v8347_v55  ;;  %v3845_v10 = vadd.f32 %v3844_v16, %v8341_v44 }
 0x4d5   : > { %v4513_v39 = vmax.f32 %v4512_v58, %v4136_v56  ;;  %v4761_v50 = vmin.f32 %v4760_v12, %v4136_v56  ;;  %v4174_v49 = vmax.f32 %v3536_v29, 0.0  ;;  %v4336_v31 = vmax.f32 %v4335_v33, %v4169_v54 }
 0x4d6   : > { %v4584_v2 = vmin.f32 %v4583_v6, %v4169_v54  ;;  %v4398_v60 = vmax.f32 %v4397_v22, %v4170_v15  ;;  %v4646_v43 = vmin.f32 %v4645_v57, %v4170_v15  ;;  %v4452_v0 = vmax.f32 %v4451_v59, %v4139_v28 }
 0x4d7   : > { %v4700_v26 = vmin.f32 %v4699_v46, %v4139_v28  ;;  %v4140_v41 = vmax.f32 %v3843_v13, 0.0  ;;  %v3539_v47 = vpop.f32.mrb[236].mxu0  ;;  %v4337_v23 = vmax.f32 %v4336_v31, %v4173_v51  ;;  %v4143_v25 = vmax.f32 %v3845_v10, 0.0 }
 0x4d8   : > { %v4585_v7 = vmin.f32 %v4584_v2, %v4173_v51  ;;  %v4399_v14 = vmax.f32 %v4398_v60, %v4174_v49  ;;  %v4647_v30 = vmin.f32 %v4646_v43, %v4174_v49  ;;  %v3541_v5 = vpop.f32.mrb[237].mxu0  ;;  %v3847_v38 = vadd.f32 %v3846_v35, %v8347_v55 }
 0x4d9   : > { %v4514_v53 = vmax.f32 %v4513_v39, %v4140_v41  ;;  %v4762_v40 = vmin.f32 %v4761_v50, %v4140_v41  ;;  %v3543_v52 = vpop.f32.mrb[238].mxu0  ;;  %v3850_v42 = vpop.f32.mrb[252].mxu1  ;;  %v3540_v9 = vadd.f32 %v3539_v47, %v8241_v21  ;;  %v3542_v3 = vadd.f32 %v3541_v5, %v8247_v17 }
 0x4da   : > { %v3544_v33 = vadd.f32 %v3543_v52, %v8241_v21  ;;  %v3851_v6 = vadd.f32 %v3850_v42, %v8341_v44  ;;  %v3545_v22 = vpop.f32.mrb[239].mxu0  ;;  %v3852_v57 = vpop.f32.mrb[253].mxu1  ;;  %v4453_v48 = vmax.f32 %v4452_v0, %v4143_v25  ;;  %v4701_v58 = vmin.f32 %v4700_v26, %v4143_v25 }
 0x4db   : > { %v4144_v12 = vmax.f32 %v3847_v38, 0.0  ;;  %v3546_v36 = vadd.f32 %v3545_v22, %v8247_v17  ;;  %v3854_v18 = vpop.f32.mrb[254].mxu1  ;;  %v4177_v11 = vmax.f32 %v3540_v9, 0.0  ;;  %v4178_v32 = vmax.f32 %v3542_v3, 0.0 }
 0x4dc   : > { %v4181_v37 = vmax.f32 %v3544_v33, 0.0  ;;  %v4147_v27 = vmax.f32 %v3851_v6, 0.0  ;;  %v3856_v61 = vpop.f32.mrb[255].mxu1  ;;  %v3853_v59 = vadd.f32 %v3852_v57, %v8347_v55  ;;  %v3855_v28 = vadd.f32 %v3854_v18, %v8341_v44 }
 0x4dd   : > { %v4515_v4 = vmax.f32 %v4514_v53, %v4144_v12  ;;  %v4763_v63 = vmin.f32 %v4762_v40, %v4144_v12  ;;  %v4182_v45 = vmax.f32 %v3546_v36, 0.0  ;;  %v4338_v46 = vmax.f32 %v4337_v23, %v4177_v11 }
 0x4de   : > { %v4586_v56 = vmin.f32 %v4585_v7, %v4177_v11  ;;  %v4400_v29 = vmax.f32 %v4399_v14, %v4178_v32  ;;  %v4648_v16 = vmin.f32 %v4647_v30, %v4178_v32  ;;  %v4454_v54 = vmax.f32 %v4453_v48, %v4147_v27 }
 0x4df   : > { %v4702_v15 = vmin.f32 %v4701_v58, %v4147_v27  ;;  %v4148_v51 = vmax.f32 %v3853_v59, 0.0  ;;  %v3549_v35 = vpop.f32.mrb[240].mxu0  ;;  %v4339_v39 = vmax.f32 %v4338_v46, %v4181_v37  ;;  %v4151_v2 = vmax.f32 %v3855_v28, 0.0 }
 0x4e0   : > { %v4587_v50 = vmin.f32 %v4586_v56, %v4181_v37  ;;  %v4401_v49 = vmax.f32 %v4400_v29, %v4182_v45  ;;  %v4649_v13 = vmin.f32 %v4648_v16, %v4182_v45  ;;  %v3551_v20 = vpop.f32.mrb[241].mxu0  ;;  %v3857_v60 = vadd.f32 %v3856_v61, %v8347_v55 }
 0x4e1   : > { %v4516_v62 = vmax.f32 %v4515_v4, %v4148_v51  ;;  %v4764_v31 = vmin.f32 %v4763_v63, %v4148_v51  ;;  %v3553_v43 = vpop.f32.mrb[242].mxu0  ;;  %v3860_v0 = vpop.f32.mrb[0].mxu1  ;;  %v3550_v26 = vadd.f32 %v3549_v35, %v8241_v21  ;;  %v3552_v41 = vadd.f32 %v3551_v20, %v8247_v17 }
 0x4e2   : > { %v3554_v10 = vadd.f32 %v3553_v43, %v8241_v21  ;;  %v3861_v47 = vadd.f32 %v3860_v0, %v8341_v44  ;;  %v3555_v23 = vpop.f32.mrb[243].mxu0  ;;  %v3862_v7 = vpop.f32.mrb[1].mxu1  ;;  %v4455_v14 = vmax.f32 %v4454_v54, %v4151_v2  ;;  %v4703_v30 = vmin.f32 %v4702_v15, %v4151_v2 }
 0x4e3   : > { %v4152_v5 = vmax.f32 %v3857_v60, 0.0  ;;  %v3556_v53 = vadd.f32 %v3555_v23, %v8247_v17  ;;  %v3864_v40 = vpop.f32.mrb[2].mxu1  ;;  %v4185_v25 = vmax.f32 %v3550_v26, 0.0  ;;  %v4186_v38 = vmax.f32 %v3552_v41, 0.0 }
 0x4e4   : > { %v4189_v52 = vmax.f32 %v3554_v10, 0.0  ;;  %v4155_v42 = vmax.f32 %v3861_v47, 0.0  ;;  %v3866_v9 = vpop.f32.mrb[3].mxu1  ;;  %v3863_v22 = vadd.f32 %v3862_v7, %v8347_v55  ;;  %v3865_v32 = vadd.f32 %v3864_v40, %v8341_v44  ;;  %v6505_v40 = vld [vmem:[%s8873_s13 + $0xc4] ss:$8 sps:$4 sm:$0xff]  }
 0x4e5   : > { %v4517_v3 = vmax.f32 %v4516_v62, %v4152_v5  ;;  %v4765_v33 = vmin.f32 %v4764_v31, %v4152_v5  ;;  %v4190_v6 = vmax.f32 %v3556_v53, 0.0  ;;  %v4340_v57 = vmax.f32 %v4339_v39, %v4185_v25  ;;  %v6503_v53 = vld [vmem:[%s8873_s13 + $0xc0] ss:$8 sps:$4 sm:$0xff]   ;;  %5447 = vmatprep.subr.bf16.mxu0 %v6505_v40 }
 0x4e6   : > { %v4588_v48 = vmin.f32 %v4587_v50, %v4185_v25  ;;  %v4402_v58 = vmax.f32 %v4401_v49, %v4186_v38  ;;  %v4650_v12 = vmin.f32 %v4649_v13, %v4186_v38  ;;  %v4456_v36 = vmax.f32 %v4455_v14, %v4155_v42  ;;  %5448 = vmatpush1.bf16.msra.mxu0 %v6503_v53 }
 0x4e7   : > { %v4704_v18 = vmin.f32 %v4703_v30, %v4155_v42  ;;  %v4156_v11 = vmax.f32 %v3863_v22, 0.0  ;;  %v3559_v37 = vpop.f32.mrb[244].mxu0  ;;  %v4341_v27 = vmax.f32 %v4340_v57, %v4189_v52  ;;  %v4159_v56 = vmax.f32 %v3865_v32, 0.0 }
 0x4e8   : > { %v4589_v61 = vmin.f32 %v4588_v48, %v4189_v52  ;;  %v4403_v4 = vmax.f32 %v4402_v58, %v4190_v6  ;;  %v4651_v63 = vmin.f32 %v4650_v12, %v4190_v6  ;;  %v3561_v45 = vpop.f32.mrb[245].mxu0  ;;  %v3867_v29 = vadd.f32 %v3866_v9, %v8347_v55 }
 0x4e9   : > { %v4518_v59 = vmax.f32 %v4517_v3, %v4156_v11  ;;  %v4766_v46 = vmin.f32 %v4765_v33, %v4156_v11  ;;  %v3563_v16 = vpop.f32.mrb[246].mxu0  ;;  %v3870_v54 = vpop.f32.mrb[4].mxu1  ;;  %v3560_v15 = vadd.f32 %v3559_v37, %v8241_v21  ;;  %v3562_v51 = vadd.f32 %v3561_v45, %v8247_v17  ;;  %v6506_v45 = vld [vmem:[%s8873_s13 + $0xd0] ss:$8 sps:$4 sm:$0xff]  }
 0x4ea   : > { %v3564_v28 = vadd.f32 %v3563_v16, %v8241_v21  ;;  %v3871_v35 = vadd.f32 %v3870_v54, %v8341_v44  ;;  %v3565_v39 = vpop.f32.mrb[247].mxu0  ;;  %v3872_v50 = vpop.f32.mrb[5].mxu1  ;;  %v4457_v49 = vmax.f32 %v4456_v36, %v4159_v56  ;;  %v4705_v13 = vmin.f32 %v4704_v18, %v4159_v56 }
 0x4eb   : > { %v4160_v20 = vmax.f32 %v3867_v29, 0.0  ;;  %v3566_v62 = vadd.f32 %v3565_v39, %v8247_v17  ;;  %v3874_v31 = vpop.f32.mrb[6].mxu1  ;;  %v4193_v2 = vmax.f32 %v3560_v15, 0.0  ;;  %v4194_v60 = vmax.f32 %v3562_v51, 0.0 }
 0x4ec   : > { %v4197_v43 = vmax.f32 %v3564_v28, 0.0  ;;  %v4163_v0 = vmax.f32 %v3871_v35, 0.0  ;;  %v3876_v26 = vpop.f32.mrb[7].mxu1  ;;  %v3873_v23 = vadd.f32 %v3872_v50, %v8347_v55  ;;  %v3875_v42 = vadd.f32 %v3874_v31, %v8341_v44 }
 0x4ed   : > { %v4519_v41 = vmax.f32 %v4518_v59, %v4160_v20  ;;  %v4767_v10 = vmin.f32 %v4766_v46, %v4160_v20  ;;  %v4198_v47 = vmax.f32 %v3566_v62, 0.0  ;;  %v4342_v7 = vmax.f32 %v4341_v27, %v4193_v2  ;;  %v6508_v59 = vld [vmem:[%s8873_s13 + $0xd4] ss:$8 sps:$4 sm:$0xff]  }
 0x4ee   : > { %v4590_v14 = vmin.f32 %v4589_v61, %v4193_v2  ;;  %v4404_v30 = vmax.f32 %v4403_v4, %v4194_v60  ;;  %v4652_v5 = vmin.f32 %v4651_v63, %v4194_v60  ;;  %v4458_v25 = vmax.f32 %v4457_v49, %v4163_v0  ;;  %5449 = vmatprep.subr.bf16.mxu0 %v6508_v59 }
 0x4ef   : > { %v4706_v38 = vmin.f32 %v4705_v13, %v4163_v0  ;;  %v4164_v52 = vmax.f32 %v3873_v23, 0.0  ;;  %v3569_v9 = vpop.f32.mrb[248].mxu0  ;;  %v4343_v3 = vmax.f32 %v4342_v7, %v4197_v43  ;;  %v4167_v12 = vmax.f32 %v3875_v42, 0.0  ;;  %5450 = vmatpush1.bf16.msra.mxu0 %v6506_v45 }
 0x4f0   : > { %v4591_v33 = vmin.f32 %v4590_v14, %v4197_v43  ;;  %v4405_v6 = vmax.f32 %v4404_v30, %v4198_v47  ;;  %v4653_v22 = vmin.f32 %v4652_v5, %v4198_v47  ;;  %v3571_v57 = vpop.f32.mrb[249].mxu0  ;;  %v3877_v36 = vadd.f32 %v3876_v26, %v8347_v55 }
 0x4f1   : > { %v4520_v48 = vmax.f32 %v4519_v41, %v4164_v52  ;;  %v4768_v58 = vmin.f32 %v4767_v10, %v4164_v52  ;;  %v3573_v18 = vpop.f32.mrb[250].mxu0  ;;  %v3880_v11 = vpop.f32.mrb[8].mxu1  ;;  %v3570_v32 = vadd.f32 %v3569_v9, %v8241_v21  ;;  %v3572_v37 = vadd.f32 %v3571_v57, %v8247_v17 }
 0x4f2   : > { %v3574_v27 = vadd.f32 %v3573_v18, %v8241_v21  ;;  %v3881_v61 = vadd.f32 %v3880_v11, %v8341_v44  ;;  %v3575_v4 = vpop.f32.mrb[251].mxu0  ;;  %v3882_v63 = vpop.f32.mrb[9].mxu1  ;;  %v4459_v46 = vmax.f32 %v4458_v25, %v4167_v12  ;;  %v4707_v56 = vmin.f32 %v4706_v38, %v4167_v12 }
 0x4f3   : > { %v4168_v29 = vmax.f32 %v3877_v36, 0.0  ;;  %v3576_v16 = vadd.f32 %v3575_v4, %v8247_v17  ;;  %v3884_v54 = vpop.f32.mrb[10].mxu1  ;;  %v4201_v15 = vmax.f32 %v3570_v32, 0.0  ;;  %v4202_v51 = vmax.f32 %v3572_v37, 0.0 }
 0x4f4   : > { %v4205_v28 = vmax.f32 %v3574_v27, 0.0  ;;  %v4171_v35 = vmax.f32 %v3881_v61, 0.0  ;;  %v3886_v39 = vpop.f32.mrb[11].mxu1  ;;  %v3883_v20 = vadd.f32 %v3882_v63, %v8347_v55  ;;  %v3885_v41 = vadd.f32 %v3884_v54, %v8341_v44 }
 0x4f5   : > { %v4521_v50 = vmax.f32 %v4520_v48, %v4168_v29  ;;  %v4769_v49 = vmin.f32 %v4768_v58, %v4168_v29  ;;  %v4206_v13 = vmax.f32 %v3576_v16, 0.0  ;;  %v4344_v62 = vmax.f32 %v4343_v3, %v4201_v15 }
 0x4f6   : > { %v4592_v31 = vmin.f32 %v4591_v33, %v4201_v15  ;;  %v4406_v2 = vmax.f32 %v4405_v6, %v4202_v51  ;;  %v4654_v60 = vmin.f32 %v4653_v22, %v4202_v51  ;;  %v4460_v43 = vmax.f32 %v4459_v46, %v4171_v35 }
 0x4f7   : > { %v4708_v0 = vmin.f32 %v4707_v56, %v4171_v35  ;;  %v4172_v26 = vmax.f32 %v3883_v20, 0.0  ;;  %v3579_v10 = vpop.f32.mrb[252].mxu0  ;;  %v4345_v47 = vmax.f32 %v4344_v62, %v4205_v28  ;;  %v4175_v40 = vmax.f32 %v3885_v41, 0.0 }
 0x4f8   : > { %v4593_v23 = vmin.f32 %v4592_v31, %v4205_v28  ;;  %v4407_v7 = vmax.f32 %v4406_v2, %v4206_v13  ;;  %v4655_v14 = vmin.f32 %v4654_v60, %v4206_v13  ;;  %v3581_v30 = vpop.f32.mrb[253].mxu0  ;;  %v3887_v25 = vadd.f32 %v3886_v39, %v8347_v55 }
 0x4f9   : > { %v4522_v5 = vmax.f32 %v4521_v50, %v4172_v26  ;;  %v4770_v53 = vmin.f32 %v4769_v49, %v4172_v26  ;;  %v3583_v38 = vpop.f32.mrb[254].mxu0  ;;  %v3890_v52 = vpop.f32.mrb[12].mxu1  ;;  %v3580_v42 = vadd.f32 %v3579_v10, %v8241_v21  ;;  %v3582_v9 = vadd.f32 %v3581_v30, %v8247_v17 }
 0x4fa   : > { %v3584_v3 = vadd.f32 %v3583_v38, %v8241_v21  ;;  %v3891_v33 = vadd.f32 %v3890_v52, %v8341_v44  ;;  %v3585_v6 = vpop.f32.mrb[255].mxu0  ;;  %v3892_v22 = vpop.f32.mrb[13].mxu1  ;;  %v4461_v57 = vmax.f32 %v4460_v43, %v4175_v40  ;;  %v4709_v48 = vmin.f32 %v4708_v0, %v4175_v40 }
 0x4fb   : > { %v4176_v58 = vmax.f32 %v3887_v25, 0.0  ;;  %v3586_v12 = vadd.f32 %v3585_v6, %v8247_v17  ;;  %v3894_v36 = vpop.f32.mrb[14].mxu1  ;;  %v4209_v18 = vmax.f32 %v3580_v42, 0.0  ;;  %v4210_v11 = vmax.f32 %v3582_v9, 0.0 }
 0x4fc   : > { %v4213_v32 = vmax.f32 %v3584_v3, 0.0  ;;  %v4179_v37 = vmax.f32 %v3891_v33, 0.0  ;;  %v3896_v27 = vpop.f32.mrb[15].mxu1  ;;  %v3893_v45 = vadd.f32 %v3892_v22, %v8347_v55  ;;  %v3895_v51 = vadd.f32 %v3894_v36, %v8341_v44 }
 0x4fd   : > { %v4523_v61 = vmax.f32 %v4522_v5, %v4176_v58  ;;  %v4771_v4 = vmin.f32 %v4770_v53, %v4176_v58  ;;  %v4214_v63 = vmax.f32 %v3586_v12, 0.0  ;;  %v4346_v59 = vmax.f32 %v4345_v47, %v4209_v18 }
 0x4fe   : > { %v4594_v46 = vmin.f32 %v4593_v23, %v4209_v18  ;;  %v4408_v56 = vmax.f32 %v4407_v7, %v4210_v11  ;;  %v4656_v29 = vmin.f32 %v4655_v14, %v4210_v11  ;;  %v4462_v16 = vmax.f32 %v4461_v57, %v4179_v37 }
 0x4ff   : > { %v4710_v54 = vmin.f32 %v4709_v48, %v4179_v37  ;;  %v4180_v15 = vmax.f32 %v3893_v45, 0.0  ;;  %v3589_v28 = vpop.f32.mrb[0].mxu0  ;;  %v4347_v35 = vmax.f32 %v4346_v59, %v4213_v32  ;;  %v4183_v31 = vmax.f32 %v3895_v51, 0.0 }
 0x500   : > { %v4595_v39 = vmin.f32 %v4594_v46, %v4213_v32  ;;  %v4409_v50 = vmax.f32 %v4408_v56, %v4214_v63  ;;  %v4657_v49 = vmin.f32 %v4656_v29, %v4214_v63  ;;  %v3591_v13 = vpop.f32.mrb[1].mxu0  ;;  %v3897_v2 = vadd.f32 %v3896_v27, %v8347_v55 }
 0x501   : > { %v4524_v20 = vmax.f32 %v4523_v61, %v4180_v15  ;;  %v4772_v62 = vmin.f32 %v4771_v4, %v4180_v15  ;;  %v3593_v60 = vpop.f32.mrb[2].mxu0  ;;  %v3900_v43 = vpop.f32.mrb[16].mxu1  ;;  %v3590_v0 = vadd.f32 %v3589_v28, %v8241_v21  ;;  %v3592_v26 = vadd.f32 %v3591_v13, %v8247_v17 }
 0x502   : > { %v3594_v41 = vadd.f32 %v3593_v60, %v8241_v21  ;;  %v3901_v10 = vadd.f32 %v3900_v43, %v8341_v44  ;;  %v3595_v47 = vpop.f32.mrb[3].mxu0  ;;  %v3902_v23 = vpop.f32.mrb[17].mxu1  ;;  %v4463_v7 = vmax.f32 %v4462_v16, %v4183_v31  ;;  %v4711_v14 = vmin.f32 %v4710_v54, %v4183_v31 }
 0x503   : > { %v4184_v30 = vmax.f32 %v3897_v2, 0.0  ;;  %v3596_v5 = vadd.f32 %v3595_v47, %v8247_v17  ;;  %v3904_v53 = vpop.f32.mrb[18].mxu1  ;;  %v4217_v40 = vmax.f32 %v3590_v0, 0.0  ;;  %v4218_v25 = vmax.f32 %v3592_v26, 0.0 }
 0x504   : > { %v4221_v38 = vmax.f32 %v3594_v41, 0.0  ;;  %v4187_v52 = vmax.f32 %v3901_v10, 0.0  ;;  %v3906_v42 = vpop.f32.mrb[19].mxu1  ;;  %v3903_v6 = vadd.f32 %v3902_v23, %v8347_v55  ;;  %v3905_v11 = vadd.f32 %v3904_v53, %v8341_v44 }
 0x505   : > { %v4525_v9 = vmax.f32 %v4524_v20, %v4184_v30  ;;  %v4773_v3 = vmin.f32 %v4772_v62, %v4184_v30  ;;  %v4222_v33 = vmax.f32 %v3596_v5, 0.0  ;;  %v4348_v22 = vmax.f32 %v4347_v35, %v4217_v40 }
 0x506   : > { %v4596_v57 = vmin.f32 %v4595_v39, %v4217_v40  ;;  %v4410_v48 = vmax.f32 %v4409_v50, %v4218_v25  ;;  %v4658_v58 = vmin.f32 %v4657_v49, %v4218_v25  ;;  %v4464_v12 = vmax.f32 %v4463_v7, %v4187_v52 }
 0x507   : > { %v4712_v36 = vmin.f32 %v4711_v14, %v4187_v52  ;;  %v4188_v18 = vmax.f32 %v3903_v6, 0.0  ;;  %v3599_v32 = vpop.f32.mrb[4].mxu0  ;;  %v4349_v37 = vmax.f32 %v4348_v22, %v4221_v38  ;;  %v4191_v46 = vmax.f32 %v3905_v11, 0.0 }
 0x508   : > { %v4597_v27 = vmin.f32 %v4596_v57, %v4221_v38  ;;  %v4411_v61 = vmax.f32 %v4410_v48, %v4222_v33  ;;  %v4659_v4 = vmin.f32 %v4658_v58, %v4222_v33  ;;  %v3601_v63 = vpop.f32.mrb[5].mxu0  ;;  %v3907_v56 = vadd.f32 %v3906_v42, %v8347_v55 }
 0x509   : > { %v4526_v45 = vmax.f32 %v4525_v9, %v4188_v18  ;;  %v4774_v59 = vmin.f32 %v4773_v3, %v4188_v18  ;;  %v3603_v29 = vpop.f32.mrb[6].mxu0  ;;  %v3910_v16 = vpop.f32.mrb[20].mxu1  ;;  %v3600_v54 = vadd.f32 %v3599_v32, %v8241_v21  ;;  %v3602_v15 = vadd.f32 %v3601_v63, %v8247_v17 }
 0x50a   : > { %v3604_v51 = vadd.f32 %v3603_v29, %v8241_v21  ;;  %v3911_v28 = vadd.f32 %v3910_v16, %v8341_v44  ;;  %v3605_v35 = vpop.f32.mrb[7].mxu0  ;;  %v3912_v39 = vpop.f32.mrb[21].mxu1  ;;  %v4465_v50 = vmax.f32 %v4464_v12, %v4191_v46  ;;  %v4713_v49 = vmin.f32 %v4712_v36, %v4191_v46  ;;  %v6509_v46 = vld [vmem:[%s8873_s13 + $0xe0] ss:$8 sps:$4 sm:$0xff]  }
 0x50b   : > { %v4192_v13 = vmax.f32 %v3907_v56, 0.0  ;;  %v3606_v20 = vadd.f32 %v3605_v35, %v8247_v17  ;;  %v3914_v62 = vpop.f32.mrb[22].mxu1  ;;  %v4225_v31 = vmax.f32 %v3600_v54, 0.0  ;;  %v4226_v2 = vmax.f32 %v3602_v15, 0.0  ;;  %v6511_v56 = vld [vmem:[%s8873_s13 + $0xe4] ss:$8 sps:$4 sm:$0xff]  }
 0x50c   : > { %v4229_v60 = vmax.f32 %v3604_v51, 0.0  ;;  %v4195_v43 = vmax.f32 %v3911_v28, 0.0  ;;  %v3916_v0 = vpop.f32.mrb[23].mxu1  ;;  %v3913_v47 = vadd.f32 %v3912_v39, %v8347_v55  ;;  %v3915_v25 = vadd.f32 %v3914_v62, %v8341_v44  ;;  %5451 = vmatprep.subr.bf16.mxu0 %v6511_v56 }
 0x50d   : > { %v4527_v26 = vmax.f32 %v4526_v45, %v4192_v13  ;;  %v4775_v41 = vmin.f32 %v4774_v59, %v4192_v13  ;;  %v4230_v10 = vmax.f32 %v3606_v20, 0.0  ;;  %v4350_v23 = vmax.f32 %v4349_v37, %v4225_v31  ;;  %5452 = vmatpush1.bf16.msra.mxu0 %v6509_v46 }
 0x50e   : > { %v4598_v7 = vmin.f32 %v4597_v27, %v4225_v31  ;;  %v4412_v14 = vmax.f32 %v4411_v61, %v4226_v2  ;;  %v4660_v30 = vmin.f32 %v4659_v4, %v4226_v2  ;;  %v4466_v5 = vmax.f32 %v4465_v50, %v4195_v43  ;;  %v6512_v2 = vld [vmem:[%s8873_s13 + $0xf0] ss:$8 sps:$4 sm:$0xff]  }
 0x50f   : > { %v4714_v53 = vmin.f32 %v4713_v49, %v4195_v43  ;;  %v4196_v40 = vmax.f32 %v3913_v47, 0.0  ;;  %v3609_v38 = vpop.f32.mrb[8].mxu0  ;;  %v4351_v52 = vmax.f32 %v4350_v23, %v4229_v60  ;;  %v4199_v57 = vmax.f32 %v3915_v25, 0.0  ;;  %v6514_v49 = vld [vmem:[%s8873_s13 + $0xf4] ss:$8 sps:$4 sm:$0xff]  }
 0x510   : > { %v4599_v42 = vmin.f32 %v4598_v7, %v4229_v60  ;;  %v4413_v9 = vmax.f32 %v4412_v14, %v4230_v10  ;;  %v4661_v3 = vmin.f32 %v4660_v30, %v4230_v10  ;;  %v3611_v33 = vpop.f32.mrb[9].mxu0  ;;  %v3917_v48 = vadd.f32 %v3916_v0, %v8347_v55  ;;  %5453 = vmatprep.subr.bf16.mxu0 %v6514_v49 }
 0x511   : > { %v4528_v6 = vmax.f32 %v4527_v26, %v4196_v40  ;;  %v4776_v22 = vmin.f32 %v4775_v41, %v4196_v40  ;;  %v3613_v58 = vpop.f32.mrb[10].mxu0  ;;  %v3920_v12 = vpop.f32.mrb[24].mxu1  ;;  %v3610_v36 = vadd.f32 %v3609_v38, %v8241_v21  ;;  %v3612_v18 = vadd.f32 %v3611_v33, %v8247_v17  ;;  %5454 = vmatpush1.bf16.msra.mxu0 %v6512_v2 }
 0x512   : > { %v3614_v11 = vadd.f32 %v3613_v58, %v8241_v21  ;;  %v3921_v32 = vadd.f32 %v3920_v12, %v8341_v44  ;;  %v3615_v37 = vpop.f32.mrb[11].mxu0  ;;  %v3922_v27 = vpop.f32.mrb[25].mxu1  ;;  %v4467_v61 = vmax.f32 %v4466_v5, %v4199_v57  ;;  %v4715_v4 = vmin.f32 %v4714_v53, %v4199_v57 }
 0x513   : > { %v4200_v63 = vmax.f32 %v3917_v48, 0.0  ;;  %v3616_v45 = vadd.f32 %v3615_v37, %v8247_v17  ;;  %v3924_v59 = vpop.f32.mrb[26].mxu1  ;;  %v4233_v29 = vmax.f32 %v3610_v36, 0.0  ;;  %v4234_v16 = vmax.f32 %v3612_v18, 0.0 }
 0x514   : > { %v4237_v54 = vmax.f32 %v3614_v11, 0.0  ;;  %v4203_v15 = vmax.f32 %v3921_v32, 0.0  ;;  %v3926_v51 = vpop.f32.mrb[27].mxu1  ;;  %v3923_v50 = vadd.f32 %v3922_v27, %v8347_v55  ;;  %v3925_v26 = vadd.f32 %v3924_v59, %v8341_v44 }
 0x515   : > { %v4529_v28 = vmax.f32 %v4528_v6, %v4200_v63  ;;  %v4777_v35 = vmin.f32 %v4776_v22, %v4200_v63  ;;  %v4238_v39 = vmax.f32 %v3616_v45, 0.0  ;;  %v4352_v13 = vmax.f32 %v4351_v52, %v4233_v29 }
 0x516   : > { %v4600_v20 = vmin.f32 %v4599_v42, %v4233_v29  ;;  %v4414_v62 = vmax.f32 %v4413_v9, %v4234_v16  ;;  %v4662_v31 = vmin.f32 %v4661_v3, %v4234_v16  ;;  %v4468_v60 = vmax.f32 %v4467_v61, %v4203_v15  ;;  %v6517_v29 = vld [vmem:[%s8873_s13 + $0x104] ss:$8 sps:$4 sm:$0xff]  }
 0x517   : > { %v4716_v43 = vmin.f32 %v4715_v4, %v4203_v15  ;;  %v4204_v0 = vmax.f32 %v3923_v50, 0.0  ;;  %v3619_v41 = vpop.f32.mrb[12].mxu0  ;;  %v4353_v10 = vmax.f32 %v4352_v13, %v4237_v54  ;;  %v4207_v53 = vmax.f32 %v3925_v26, 0.0  ;;  %5464 = vmatprep.subr.bf16.mxu0 %v6517_v29 }
 0x518   : > { %v4601_v47 = vmin.f32 %v4600_v20, %v4237_v54  ;;  %v4415_v23 = vmax.f32 %v4414_v62, %v4238_v39  ;;  %v4663_v7 = vmin.f32 %v4662_v31, %v4238_v39  ;;  %v3621_v14 = vpop.f32.mrb[13].mxu0  ;;  %v3927_v40 = vadd.f32 %v3926_v51, %v8347_v55 }
 0x519   : > { %v4530_v30 = vmax.f32 %v4529_v28, %v4204_v0  ;;  %v4778_v5 = vmin.f32 %v4777_v35, %v4204_v0  ;;  %v3623_v25 = vpop.f32.mrb[14].mxu0  ;;  %v3930_v38 = vpop.f32.mrb[28].mxu1  ;;  %v3620_v52 = vadd.f32 %v3619_v41, %v8241_v21  ;;  %v3622_v42 = vadd.f32 %v3621_v14, %v8247_v17 }
 0x51a   : > { %v3624_v9 = vadd.f32 %v3623_v25, %v8241_v21  ;;  %v3931_v3 = vadd.f32 %v3930_v38, %v8341_v44  ;;  %v3625_v33 = vpop.f32.mrb[15].mxu0  ;;  %v3932_v6 = vpop.f32.mrb[29].mxu1  ;;  %v4469_v22 = vmax.f32 %v4468_v60, %v4207_v53  ;;  %v4717_v57 = vmin.f32 %v4716_v43, %v4207_v53 }
 0x51b   : > { %v4208_v48 = vmax.f32 %v3927_v40, 0.0  ;;  %v3626_v58 = vadd.f32 %v3625_v33, %v8247_v17  ;;  %v3934_v12 = vpop.f32.mrb[30].mxu1  ;;  %v4241_v36 = vmax.f32 %v3620_v52, 0.0  ;;  %v4242_v18 = vmax.f32 %v3622_v42, 0.0 }
 0x51c   : > { %v4245_v11 = vmax.f32 %v3624_v9, 0.0  ;;  %v4211_v32 = vmax.f32 %v3931_v3, 0.0  ;;  %v3936_v37 = vpop.f32.mrb[31].mxu1  ;;  %v3933_v63 = vadd.f32 %v3932_v6, %v8347_v55  ;;  %v3935_v51 = vadd.f32 %v3934_v12, %v8341_v44 }
 0x51d   : > { %v4531_v27 = vmax.f32 %v4530_v30, %v4208_v48  ;;  %v4779_v61 = vmin.f32 %v4778_v5, %v4208_v48  ;;  %v4246_v4 = vmax.f32 %v3626_v58, 0.0  ;;  %v4354_v45 = vmax.f32 %v4353_v10, %v4241_v36 }
 0x51e   : > { %v4602_v59 = vmin.f32 %v4601_v47, %v4241_v36  ;;  %v4416_v46 = vmax.f32 %v4415_v23, %v4242_v18  ;;  %v4664_v56 = vmin.f32 %v4663_v7, %v4242_v18  ;;  %v4470_v16 = vmax.f32 %v4469_v22, %v4211_v32 }
 0x51f   : > { %v4718_v54 = vmin.f32 %v4717_v57, %v4211_v32  ;;  %v4212_v15 = vmax.f32 %v3933_v63, 0.0  ;;  %v3629_v28 = vpop.f32.mrb[16].mxu0  ;;  %v4355_v35 = vmax.f32 %v4354_v45, %v4245_v11  ;;  %v4215_v31 = vmax.f32 %v3935_v51, 0.0 }
 0x520   : > { %v4603_v39 = vmin.f32 %v4602_v59, %v4245_v11  ;;  %v4417_v50 = vmax.f32 %v4416_v46, %v4246_v4  ;;  %v4665_v49 = vmin.f32 %v4664_v56, %v4246_v4  ;;  %v3631_v13 = vpop.f32.mrb[17].mxu0  ;;  %v3937_v2 = vadd.f32 %v3936_v37, %v8347_v55 }
 0x521   : > { %v4532_v20 = vmax.f32 %v4531_v27, %v4212_v15  ;;  %v4780_v62 = vmin.f32 %v4779_v61, %v4212_v15  ;;  %v3633_v60 = vpop.f32.mrb[18].mxu0  ;;  %v3940_v43 = vpop.f32.mrb[32].mxu1  ;;  %v3630_v0 = vadd.f32 %v3629_v28, %v8241_v21  ;;  %v3632_v26 = vadd.f32 %v3631_v13, %v8247_v17 }
 0x522   : > { %v3634_v41 = vadd.f32 %v3633_v60, %v8241_v21  ;;  %v3941_v10 = vadd.f32 %v3940_v43, %v8341_v44  ;;  %v3635_v47 = vpop.f32.mrb[19].mxu0  ;;  %v3942_v23 = vpop.f32.mrb[33].mxu1  ;;  %v4471_v7 = vmax.f32 %v4470_v16, %v4215_v31  ;;  %v4719_v14 = vmin.f32 %v4718_v54, %v4215_v31 }
 0x523   : > { %v4216_v30 = vmax.f32 %v3937_v2, 0.0  ;;  %v3636_v5 = vadd.f32 %v3635_v47, %v8247_v17  ;;  %v3944_v53 = vpop.f32.mrb[34].mxu1  ;;  %v4249_v40 = vmax.f32 %v3630_v0, 0.0  ;;  %v4250_v25 = vmax.f32 %v3632_v26, 0.0 }
 0x524   : > { %v4253_v38 = vmax.f32 %v3634_v41, 0.0  ;;  %v4219_v52 = vmax.f32 %v3941_v10, 0.0  ;;  %v3946_v42 = vpop.f32.mrb[35].mxu1  ;;  %v3943_v6 = vadd.f32 %v3942_v23, %v8347_v55  ;;  %v3945_v11 = vadd.f32 %v3944_v53, %v8341_v44 }
 0x525   : > { %v4533_v9 = vmax.f32 %v4532_v20, %v4216_v30  ;;  %v4781_v3 = vmin.f32 %v4780_v62, %v4216_v30  ;;  %v4254_v33 = vmax.f32 %v3636_v5, 0.0  ;;  %v4356_v22 = vmax.f32 %v4355_v35, %v4249_v40 }
 0x526   : > { %v4604_v57 = vmin.f32 %v4603_v39, %v4249_v40  ;;  %v4418_v48 = vmax.f32 %v4417_v50, %v4250_v25  ;;  %v4666_v58 = vmin.f32 %v4665_v49, %v4250_v25  ;;  %v4472_v12 = vmax.f32 %v4471_v7, %v4219_v52 }
 0x527   : > { %v4720_v36 = vmin.f32 %v4719_v14, %v4219_v52  ;;  %v4220_v18 = vmax.f32 %v3943_v6, 0.0  ;;  %v3639_v32 = vpop.f32.mrb[20].mxu0  ;;  %v4357_v37 = vmax.f32 %v4356_v22, %v4253_v38  ;;  %v4223_v46 = vmax.f32 %v3945_v11, 0.0 }
 0x528   : > { %v4605_v27 = vmin.f32 %v4604_v57, %v4253_v38  ;;  %v4419_v61 = vmax.f32 %v4418_v48, %v4254_v33  ;;  %v4667_v4 = vmin.f32 %v4666_v58, %v4254_v33  ;;  %v3641_v63 = vpop.f32.mrb[21].mxu0  ;;  %v3947_v56 = vadd.f32 %v3946_v42, %v8347_v55 }
 0x529   : > { %v4534_v45 = vmax.f32 %v4533_v9, %v4220_v18  ;;  %v4782_v59 = vmin.f32 %v4781_v3, %v4220_v18  ;;  %v3643_v29 = vpop.f32.mrb[22].mxu0  ;;  %v3950_v16 = vpop.f32.mrb[36].mxu1  ;;  %v3640_v54 = vadd.f32 %v3639_v32, %v8241_v21  ;;  %v3642_v15 = vadd.f32 %v3641_v63, %v8247_v17 }
 0x52a   : > { %v3644_v51 = vadd.f32 %v3643_v29, %v8241_v21  ;;  %v3951_v28 = vadd.f32 %v3950_v16, %v8341_v44  ;;  %v3645_v35 = vpop.f32.mrb[23].mxu0  ;;  %v3952_v39 = vpop.f32.mrb[37].mxu1  ;;  %v4473_v50 = vmax.f32 %v4472_v12, %v4223_v46  ;;  %v4721_v49 = vmin.f32 %v4720_v36, %v4223_v46 }
 0x52b   : > { %v4224_v13 = vmax.f32 %v3947_v56, 0.0  ;;  %v3646_v20 = vadd.f32 %v3645_v35, %v8247_v17  ;;  %v3954_v62 = vpop.f32.mrb[38].mxu1  ;;  %v4257_v31 = vmax.f32 %v3640_v54, 0.0  ;;  %v4258_v2 = vmax.f32 %v3642_v15, 0.0 }
 0x52c   : > { %v4261_v60 = vmax.f32 %v3644_v51, 0.0  ;;  %v4227_v43 = vmax.f32 %v3951_v28, 0.0  ;;  %v3956_v0 = vpop.f32.mrb[39].mxu1  ;;  %v3953_v47 = vadd.f32 %v3952_v39, %v8347_v55  ;;  %v3955_v25 = vadd.f32 %v3954_v62, %v8341_v44 }
 0x52d   : > { %v4535_v26 = vmax.f32 %v4534_v45, %v4224_v13  ;;  %v4783_v41 = vmin.f32 %v4782_v59, %v4224_v13  ;;  %v4262_v10 = vmax.f32 %v3646_v20, 0.0  ;;  %v4358_v23 = vmax.f32 %v4357_v37, %v4257_v31 }
 0x52e   : > { %v4606_v7 = vmin.f32 %v4605_v27, %v4257_v31  ;;  %v4420_v14 = vmax.f32 %v4419_v61, %v4258_v2  ;;  %v4668_v30 = vmin.f32 %v4667_v4, %v4258_v2  ;;  %v4474_v5 = vmax.f32 %v4473_v50, %v4227_v43 }
 0x52f   : > { %v4722_v53 = vmin.f32 %v4721_v49, %v4227_v43  ;;  %v4228_v40 = vmax.f32 %v3953_v47, 0.0  ;;  %v3649_v38 = vpop.f32.mrb[24].mxu0  ;;  %v4359_v52 = vmax.f32 %v4358_v23, %v4261_v60  ;;  %v4231_v57 = vmax.f32 %v3955_v25, 0.0  ;;  %v6536_v47 = vld [vmem:[%s8875_s15 + $0x40] sm:$0xff]  }
 0x530   : > { %v4607_v42 = vmin.f32 %v4606_v7, %v4261_v60  ;;  %v4421_v9 = vmax.f32 %v4420_v14, %v4262_v10  ;;  %v4669_v3 = vmin.f32 %v4668_v30, %v4262_v10  ;;  %v3651_v33 = vpop.f32.mrb[25].mxu0  ;;  %v3957_v48 = vadd.f32 %v3956_v0, %v8347_v55  ;;  %6054 = vmatprep.subr.bf16.mxu1 %v6536_v47 }
 0x531   : > { %v4536_v6 = vmax.f32 %v4535_v26, %v4228_v40  ;;  %v4784_v22 = vmin.f32 %v4783_v41, %v4228_v40  ;;  %v3653_v58 = vpop.f32.mrb[26].mxu0  ;;  %v3960_v12 = vpop.f32.mrb[40].mxu1  ;;  %v3650_v36 = vadd.f32 %v3649_v38, %v8241_v21  ;;  %v3652_v18 = vadd.f32 %v3651_v33, %v8247_v17  ;;  %v6540_v40 = vld [vmem:[%s8875_s15] sm:$0xff]  }
 0x532   : > { %v3654_v11 = vadd.f32 %v3653_v58, %v8241_v21  ;;  %v3961_v32 = vadd.f32 %v3960_v12, %v8341_v44  ;;  %v3655_v37 = vpop.f32.mrb[27].mxu0  ;;  %v3962_v27 = vpop.f32.mrb[41].mxu1  ;;  %v4475_v61 = vmax.f32 %v4474_v5, %v4231_v57  ;;  %v4723_v4 = vmin.f32 %v4722_v53, %v4231_v57  ;;  %6055 = vmatpush3.bf16.msra.mxu1 %v6540_v40 }
 0x533   : > { %v4232_v63 = vmax.f32 %v3957_v48, 0.0  ;;  %v3656_v45 = vadd.f32 %v3655_v37, %v8247_v17  ;;  %v3964_v59 = vpop.f32.mrb[42].mxu1  ;;  %v4265_v46 = vmax.f32 %v3650_v36, 0.0  ;;  %v4266_v56 = vmax.f32 %v3652_v18, 0.0 }
 0x534   : > { %v4269_v29 = vmax.f32 %v3654_v11, 0.0  ;;  %v4235_v16 = vmax.f32 %v3961_v32, 0.0  ;;  %v3966_v54 = vpop.f32.mrb[43].mxu1  ;;  %v3963_v35 = vadd.f32 %v3962_v27, %v8347_v55  ;;  %v3965_v2 = vadd.f32 %v3964_v59, %v8341_v44 }
 0x535   : > { %v4537_v15 = vmax.f32 %v4536_v6, %v4232_v63  ;;  %v4785_v51 = vmin.f32 %v4784_v22, %v4232_v63  ;;  %v4270_v28 = vmax.f32 %v3656_v45, 0.0  ;;  %v4360_v39 = vmax.f32 %v4359_v52, %v4265_v46 }
 0x536   : > { %v4608_v50 = vmin.f32 %v4607_v42, %v4265_v46  ;;  %v4422_v49 = vmax.f32 %v4421_v9, %v4266_v56  ;;  %v4670_v13 = vmin.f32 %v4669_v3, %v4266_v56  ;;  %v4476_v20 = vmax.f32 %v4475_v61, %v4235_v16 }
 0x537   : > { %v4724_v62 = vmin.f32 %v4723_v4, %v4235_v16  ;;  %v4236_v31 = vmax.f32 %v3963_v35, 0.0  ;;  %v3659_v60 = vpop.f32.mrb[28].mxu0  ;;  %v4361_v43 = vmax.f32 %v4360_v39, %v4269_v29  ;;  %v4239_v14 = vmax.f32 %v3965_v2, 0.0 }
 0x538   : > { %v4609_v0 = vmin.f32 %v4608_v50, %v4269_v29  ;;  %v4423_v26 = vmax.f32 %v4422_v49, %v4270_v28  ;;  %v4671_v41 = vmin.f32 %v4670_v13, %v4270_v28  ;;  %v3661_v10 = vpop.f32.mrb[29].mxu0  ;;  %v3967_v30 = vadd.f32 %v3966_v54, %v8347_v55 }
 0x539   : > { %v4538_v23 = vmax.f32 %v4537_v15, %v4236_v31  ;;  %v4786_v7 = vmin.f32 %v4785_v51, %v4236_v31  ;;  %v3663_v5 = vpop.f32.mrb[30].mxu0  ;;  %v3970_v53 = vpop.f32.mrb[44].mxu1  ;;  %v3660_v25 = vadd.f32 %v3659_v60, %v8241_v21  ;;  %v3662_v38 = vadd.f32 %v3661_v10, %v8247_v17 }
 0x53a   : > { %v3664_v52 = vadd.f32 %v3663_v5, %v8241_v21  ;;  %v3971_v42 = vadd.f32 %v3970_v53, %v8341_v44  ;;  %v3665_v9 = vpop.f32.mrb[31].mxu0  ;;  %v3972_v3 = vpop.f32.mrb[45].mxu1  ;;  %v4477_v33 = vmax.f32 %v4476_v20, %v4239_v14  ;;  %v4725_v6 = vmin.f32 %v4724_v62, %v4239_v14 }
 0x53b   : > { %v4240_v22 = vmax.f32 %v3967_v30, 0.0  ;;  %v3666_v57 = vadd.f32 %v3665_v9, %v8247_v17  ;;  %v3974_v48 = vpop.f32.mrb[46].mxu1  ;;  %v4273_v58 = vmax.f32 %v3660_v25, 0.0  ;;  %v4274_v12 = vmax.f32 %v3662_v38, 0.0 }
 0x53c   : > { %v4277_v36 = vmax.f32 %v3664_v52, 0.0  ;;  %v4243_v18 = vmax.f32 %v3971_v42, 0.0  ;;  %v3976_v11 = vpop.f32.mrb[47].mxu1  ;;  %v3973_v61 = vadd.f32 %v3972_v3, %v8347_v55  ;;  %v3975_v16 = vadd.f32 %v3974_v48, %v8341_v44 }
 0x53d   : > { %v4539_v32 = vmax.f32 %v4538_v23, %v4240_v22  ;;  %v4787_v37 = vmin.f32 %v4786_v7, %v4240_v22  ;;  %v4278_v27 = vmax.f32 %v3666_v57, 0.0  ;;  %v4362_v4 = vmax.f32 %v4361_v43, %v4273_v58 }
 0x53e   : > { %v4610_v63 = vmin.f32 %v4609_v0, %v4273_v58  ;;  %v4424_v45 = vmax.f32 %v4423_v26, %v4274_v12  ;;  %v4672_v59 = vmin.f32 %v4671_v41, %v4274_v12  ;;  %v4478_v46 = vmax.f32 %v4477_v33, %v4243_v18 }
 0x53f   : > { %v4726_v56 = vmin.f32 %v4725_v6, %v4243_v18  ;;  %v4244_v29 = vmax.f32 %v3973_v61, 0.0  ;;  %v3669_v54 = vpop.f32.mrb[32].mxu0  ;;  %v4363_v15 = vmax.f32 %v4362_v4, %v4277_v36  ;;  %v4247_v13 = vmax.f32 %v3975_v16, 0.0 }
 0x540   : > { %v4611_v51 = vmin.f32 %v4610_v63, %v4277_v36  ;;  %v4425_v28 = vmax.f32 %v4424_v45, %v4278_v27  ;;  %v4673_v35 = vmin.f32 %v4672_v59, %v4278_v27  ;;  %v3671_v39 = vpop.f32.mrb[33].mxu0  ;;  %v3977_v20 = vadd.f32 %v3976_v11, %v8347_v55 }
 0x541   : > { %v4540_v50 = vmax.f32 %v4539_v32, %v4244_v29  ;;  %v4788_v49 = vmin.f32 %v4787_v37, %v4244_v29  ;;  %v3673_v62 = vpop.f32.mrb[34].mxu0  ;;  %v3980_v31 = vpop.f32.mrb[48].mxu1  ;;  %v3670_v2 = vadd.f32 %v3669_v54, %v8241_v21  ;;  %v3672_v60 = vadd.f32 %v3671_v39, %v8247_v17 }
 0x542   : > { %v3674_v43 = vadd.f32 %v3673_v62, %v8241_v21  ;;  %v3981_v0 = vadd.f32 %v3980_v31, %v8341_v44  ;;  %v3675_v26 = vpop.f32.mrb[35].mxu0  ;;  %v3982_v41 = vpop.f32.mrb[49].mxu1  ;;  %v4479_v10 = vmax.f32 %v4478_v46, %v4247_v13  ;;  %v4727_v47 = vmin.f32 %v4726_v56, %v4247_v13 }
 0x543   : > { %v4248_v23 = vmax.f32 %v3977_v20, 0.0  ;;  %v3676_v7 = vadd.f32 %v3675_v26, %v8247_v17  ;;  %v3984_v14 = vpop.f32.mrb[50].mxu1  ;;  %v4281_v30 = vmax.f32 %v3670_v2, 0.0  ;;  %v4282_v5 = vmax.f32 %v3672_v60, 0.0 }
 0x544   : > { %v4285_v53 = vmax.f32 %v3674_v43, 0.0  ;;  %v4251_v40 = vmax.f32 %v3981_v0, 0.0  ;;  %v3986_v25 = vpop.f32.mrb[51].mxu1  ;;  %v3983_v9 = vadd.f32 %v3982_v41, %v8347_v55  ;;  %v3985_v12 = vadd.f32 %v3984_v14, %v8341_v44 }
 0x545   : > { %v4541_v38 = vmax.f32 %v4540_v50, %v4248_v23  ;;  %v4789_v52 = vmin.f32 %v4788_v49, %v4248_v23  ;;  %v4286_v42 = vmax.f32 %v3676_v7, 0.0  ;;  %v4364_v3 = vmax.f32 %v4363_v15, %v4281_v30 }
 0x546   : > { %v4612_v33 = vmin.f32 %v4611_v51, %v4281_v30  ;;  %v4426_v6 = vmax.f32 %v4425_v28, %v4282_v5  ;;  %v4674_v22 = vmin.f32 %v4673_v35, %v4282_v5  ;;  %v4480_v57 = vmax.f32 %v4479_v10, %v4251_v40 }
 0x547   : > { %v4728_v48 = vmin.f32 %v4727_v47, %v4251_v40  ;;  %v4252_v58 = vmax.f32 %v3983_v9, 0.0  ;;  %v3679_v36 = vpop.f32.mrb[36].mxu0  ;;  %v4365_v18 = vmax.f32 %v4364_v3, %v4285_v53  ;;  %v4255_v63 = vmax.f32 %v3985_v12, 0.0 }
 0x548   : > { %v4613_v11 = vmin.f32 %v4612_v33, %v4285_v53  ;;  %v4427_v32 = vmax.f32 %v4426_v6, %v4286_v42  ;;  %v4675_v37 = vmin.f32 %v4674_v22, %v4286_v42  ;;  %v3681_v27 = vpop.f32.mrb[37].mxu0  ;;  %v3987_v45 = vadd.f32 %v3986_v25, %v8347_v55 }
 0x549   : > { %v4542_v61 = vmax.f32 %v4541_v38, %v4252_v58  ;;  %v4790_v4 = vmin.f32 %v4789_v52, %v4252_v58  ;;  %v3683_v59 = vpop.f32.mrb[38].mxu0  ;;  %v3990_v46 = vpop.f32.mrb[52].mxu1  ;;  %v3680_v56 = vadd.f32 %v3679_v36, %v8241_v21  ;;  %v3682_v29 = vadd.f32 %v3681_v27, %v8247_v17 }
 0x54a   : > { %v3684_v16 = vadd.f32 %v3683_v59, %v8241_v21  ;;  %v3991_v54 = vadd.f32 %v3990_v46, %v8341_v44  ;;  %v3685_v15 = vpop.f32.mrb[39].mxu0  ;;  %v3992_v51 = vpop.f32.mrb[53].mxu1  ;;  %v4481_v28 = vmax.f32 %v4480_v57, %v4255_v63  ;;  %v4729_v35 = vmin.f32 %v4728_v48, %v4255_v63 }
 0x54b   : > { %v4256_v39 = vmax.f32 %v3987_v45, 0.0  ;;  %v3686_v50 = vadd.f32 %v3685_v15, %v8247_v17  ;;  %v3994_v49 = vpop.f32.mrb[54].mxu1  ;;  %v4289_v13 = vmax.f32 %v3680_v56, 0.0  ;;  %v4290_v20 = vmax.f32 %v3682_v29, 0.0 }
 0x54c   : > { %v4293_v62 = vmax.f32 %v3684_v16, 0.0  ;;  %v4259_v31 = vmax.f32 %v3991_v54, 0.0  ;;  %v3996_v2 = vpop.f32.mrb[55].mxu1  ;;  %v3993_v26 = vadd.f32 %v3992_v51, %v8347_v55  ;;  %v3995_v5 = vadd.f32 %v3994_v49, %v8341_v44 }
 0x54d   : > { %v4543_v60 = vmax.f32 %v4542_v61, %v4256_v39  ;;  %v4791_v43 = vmin.f32 %v4790_v4, %v4256_v39  ;;  %v4294_v0 = vmax.f32 %v3686_v50, 0.0  ;;  %v4366_v41 = vmax.f32 %v4365_v18, %v4289_v13 }
 0x54e   : > { %v4614_v10 = vmin.f32 %v4613_v11, %v4289_v13  ;;  %v4428_v47 = vmax.f32 %v4427_v32, %v4290_v20  ;;  %v4676_v23 = vmin.f32 %v4675_v37, %v4290_v20  ;;  %v4482_v7 = vmax.f32 %v4481_v28, %v4259_v31 }
 0x54f   : > { %v4730_v14 = vmin.f32 %v4729_v35, %v4259_v31  ;;  %v4260_v30 = vmax.f32 %v3993_v26, 0.0  ;;  %v3689_v53 = vpop.f32.mrb[40].mxu0  ;;  %v4367_v40 = vmax.f32 %v4366_v41, %v4293_v62  ;;  %v4263_v33 = vmax.f32 %v3995_v5, 0.0  ;;  %v6562_v26 = vld [vmem:[%s8875_s15 + $0x48] sm:$0xff]  }
 0x550   : > { %v4615_v25 = vmin.f32 %v4614_v10, %v4293_v62  ;;  %v4429_v38 = vmax.f32 %v4428_v47, %v4294_v0  ;;  %v4677_v52 = vmin.f32 %v4676_v23, %v4294_v0  ;;  %v3691_v42 = vpop.f32.mrb[41].mxu0  ;;  %v3997_v6 = vadd.f32 %v3996_v2, %v8347_v55  ;;  %6056 = vmatprep.subr.bf16.mxu1 %v6562_v26 }
 0x551   : > { %v4544_v9 = vmax.f32 %v4543_v60, %v4260_v30  ;;  %v4792_v3 = vmin.f32 %v4791_v43, %v4260_v30  ;;  %v3693_v22 = vpop.f32.mrb[42].mxu0  ;;  %v4000_v57 = vpop.f32.mrb[56].mxu1  ;;  %v3690_v48 = vadd.f32 %v3689_v53, %v8241_v21  ;;  %v3692_v58 = vadd.f32 %v3691_v42, %v8247_v17  ;;  %v6566_v30 = vld [vmem:[%s8875_s15 + $0x8] sm:$0xff]  }
 0x552   : > { %v3694_v12 = vadd.f32 %v3693_v22, %v8241_v21  ;;  %v4001_v36 = vadd.f32 %v4000_v57, %v8341_v44  ;;  %v3695_v18 = vpop.f32.mrb[43].mxu0  ;;  %v4002_v11 = vpop.f32.mrb[57].mxu1  ;;  %v4483_v32 = vmax.f32 %v4482_v7, %v4263_v33  ;;  %v4731_v37 = vmin.f32 %v4730_v14, %v4263_v33  ;;  %6057 = vmatpush3.bf16.msra.mxu1 %v6566_v30 }
 0x553   : > { %v4264_v27 = vmax.f32 %v3997_v6, 0.0  ;;  %v3696_v61 = vadd.f32 %v3695_v18, %v8247_v17  ;;  %v4004_v4 = vpop.f32.mrb[58].mxu1  ;;  %v4297_v63 = vmax.f32 %v3690_v48, 0.0  ;;  %v4298_v45 = vmax.f32 %v3692_v58, 0.0 }
 0x554   : > { %v4301_v59 = vmax.f32 %v3694_v12, 0.0  ;;  %v4267_v46 = vmax.f32 %v4001_v36, 0.0  ;;  %v4006_v56 = vpop.f32.mrb[59].mxu1  ;;  %v4003_v15 = vadd.f32 %v4002_v11, %v8347_v55  ;;  %v4005_v20 = vadd.f32 %v4004_v4, %v8341_v44  ;;  %v6568_v4 = vld [vmem:[%s8875_s15 + $0x10] sm:$0xff]  }
 0x555   : > { %v4545_v29 = vmax.f32 %v4544_v9, %v4264_v27  ;;  %v4793_v16 = vmin.f32 %v4792_v3, %v4264_v27  ;;  %v4302_v54 = vmax.f32 %v3696_v61, 0.0  ;;  %v4368_v51 = vmax.f32 %v4367_v40, %v4297_v63  ;;  %v6567_v61 = vld [vmem:[%s8875_s15 + $0x50] sm:$0xff]  }
 0x556   : > { %v4616_v28 = vmin.f32 %v4615_v25, %v4297_v63  ;;  %v4430_v35 = vmax.f32 %v4429_v38, %v4298_v45  ;;  %v4678_v39 = vmin.f32 %v4677_v52, %v4298_v45  ;;  %v4484_v50 = vmax.f32 %v4483_v32, %v4267_v46  ;;  %v6569_v63 = vld [vmem:[%s8875_s15 + $0x58] sm:$0xff]   ;;  %6058 = vmatprep.subr.bf16.mxu1 %v6567_v61  ;;  %v6574_v61 = vld [vmem:[%s8875_s15 + $0x28] sm:$0xff]  }
 0x557   : > { %v4732_v49 = vmin.f32 %v4731_v37, %v4267_v46  ;;  %v4268_v13 = vmax.f32 %v4003_v15, 0.0  ;;  %v3699_v62 = vpop.f32.mrb[44].mxu0  ;;  %v4369_v31 = vmax.f32 %v4368_v51, %v4301_v59  ;;  %v4271_v47 = vmax.f32 %v4005_v20, 0.0  ;;  %6059 = vmatpush3.bf16.msra.mxu1 %v6568_v4 }
 0x558   : > { %v4617_v2 = vmin.f32 %v4616_v28, %v4301_v59  ;;  %v4431_v60 = vmax.f32 %v4430_v35, %v4302_v54  ;;  %v4679_v43 = vmin.f32 %v4678_v39, %v4302_v54  ;;  %v3701_v0 = vpop.f32.mrb[45].mxu0  ;;  %v4007_v23 = vadd.f32 %v4006_v56, %v8347_v55  ;;  %6060 = vmatprep.subr.bf16.mxu1 %v6569_v63 }
 0x559   : > { %v4546_v41 = vmax.f32 %v4545_v29, %v4268_v13  ;;  %v4794_v10 = vmin.f32 %v4793_v16, %v4268_v13  ;;  %v3703_v7 = vpop.f32.mrb[46].mxu0  ;;  %v4010_v14 = vpop.f32.mrb[60].mxu1  ;;  %v3700_v5 = vadd.f32 %v3699_v62, %v8241_v21  ;;  %v3702_v53 = vadd.f32 %v3701_v0, %v8247_v17  ;;  %v6570_v13 = vld [vmem:[%s8875_s15 + $0x18] sm:$0xff]  }
 0x55a   : > { %v4011_v40 = vadd.f32 %v4010_v14, %v8341_v44  ;;  %v3704_v25 = vpop.f32.mrb[47].mxu0  ;;  %v4012_v38 = vpop.f32.mrb[61].mxu1  ;;  %v4485_v52 = vmax.f32 %v4484_v50, %v4271_v47  ;;  %v4733_v42 = vmin.f32 %v4732_v49, %v4271_v47  ;;  %v4272_v9 = vmax.f32 %v4007_v23, 0.0 }
 0x55b   : > { %v4014_v3 = vpop.f32.mrb[62].mxu1  ;;  %v4305_v33 = vmax.f32 %v3700_v5, 0.0  ;;  %v4306_v6 = vmax.f32 %v3702_v53, 0.0  ;;  %v4013_v57 = vadd.f32 %v4012_v38, %v8347_v55  ;;  %6061 = vmatpush3.bf16.msra.mxu1 %v6570_v13  ;;  %v6572_v38 = vld [vmem:[%s8875_s15 + $0x20] sm:$0xff]  }
 0x55c   : > { %v4275_v22 = vmax.f32 %v4011_v40, 0.0  ;;  %v4016_v48 = vpop.f32.mrb[63].mxu1  ;;  %v4547_v58 = vmax.f32 %v4546_v41, %v4272_v9  ;;  %v4795_v21 = vmin.f32 %v4794_v10, %v4272_v9  ;;  %v4015_v17 = vadd.f32 %v4014_v3, %v8341_v44 }
 0x55d   : > { %v4370_v12 = vmax.f32 %v4369_v31, %v4305_v33  ;;  %v4618_v36 = vmin.f32 %v4617_v2, %v4305_v33  ;;  %v4432_v18 = vmax.f32 %v4431_v60, %v4306_v6  ;;  %v4680_v11 = vmin.f32 %v4679_v43, %v4306_v6  ;;  %v6571_v43 = vld [vmem:[%s8875_s15 + $0x60] sm:$0xff]   ;;  %v6573_v33 = vld [vmem:[%s8875_s15 + $0x68] sm:$0xff]  }
 0x55e   : > { %v4486_v32 = vmax.f32 %v4485_v52, %v4275_v22  ;;  %v4734_v37 = vmin.f32 %v4733_v42, %v4275_v22  ;;  %v4276_v27 = vmax.f32 %v4013_v57, 0.0  ;;  %v4279_v54 = vmax.f32 %v4015_v17, 0.0  ;;  %6062 = vmatprep.subr.bf16.mxu1 %v6571_v43 }
 0x55f   : > { %v4852_v45 = vrot.slane %v4370_v12, 4  ;;  %v4880_v59 = vrot.slane %v4618_v36, 4  ;;  %v4858_v46 = vrot.slane %v4432_v18, 4  ;;  %v4886_v56 = vrot.slane %v4680_v11, 4  ;;  %6063 = vmatpush3.bf16.msra.mxu1 %v6572_v38 }
 0x560   : > { %v4548_v29 = vmax.f32 %v4547_v58, %v4276_v27  ;;  %v4796_v16 = vmin.f32 %v4795_v21, %v4276_v27  ;;  %v4017_v15 = vadd.f32 %v4016_v48, %v8347_v55  ;;  %v4487_v20 = vmax.f32 %v4486_v32, %v4279_v54  ;;  %6064 = vmatprep.subr.bf16.mxu1 %v6573_v33 }
 0x561   : > { %v4020_v51 = vpop.f32.mrb[64].mxu1  ;;  %v4853_v28 = vmax.f32 %v4370_v12, %v4852_v45  ;;  %v4881_v35 = vmin.f32 %v4618_v36, %v4880_v59  ;;  %v4859_v39 = vmax.f32 %v4432_v18, %v4858_v46  ;;  %v4887_v50 = vmin.f32 %v4680_v11, %v4886_v56  ;;  %v6575_v56 = vld [vmem:[%s8875_s15 + $0x70] sm:$0xff]  }
 0x562   : > { %v4022_v49 = vpop.f32.mrb[65].mxu1  ;;  %v4735_v62 = vmin.f32 %v4734_v37, %v4279_v54  ;;  %v4280_v31 = vmax.f32 %v4017_v15, 0.0  ;;  %v4021_v2 = vadd.f32 %v4020_v51, %v8341_v44 }
 0x563   : > { %v4024_v60 = vpop.f32.mrb[66].mxu1  ;;  %v4854_v0 = vrot.slane %v4853_v28, 2  ;;  %v4882_v26 = vrot.slane %v4881_v35, 2  ;;  %v4860_v41 = vrot.slane %v4859_v39, 2  ;;  %v4888_v10 = vrot.slane %v4887_v50, 2  ;;  %6065 = vmatpush3.bf16.msra.mxu1 %v6574_v61 }
 0x564   : > { %v4026_v47 = vpop.f32.mrb[67].mxu1  ;;  %v4549_v23 = vmax.f32 %v4548_v29, %v4280_v31  ;;  %v4797_v7 = vmin.f32 %v4796_v16, %v4280_v31  ;;  %v4283_v14 = vmax.f32 %v4021_v2, 0.0  ;;  %v4023_v30 = vadd.f32 %v4022_v49, %v8347_v55  ;;  %6066 = vmatprep.subr.bf16.mxu1 %v6575_v56 }
 0x565   : > { %v4855_v5 = vmax.f32 %v4853_v28, %v4854_v0  ;;  %v4883_v53 = vmin.f32 %v4881_v35, %v4882_v26  ;;  %v4861_v40 = vmax.f32 %v4859_v39, %v4860_v41  ;;  %v4889_v25 = vmin.f32 %v4887_v50, %v4888_v10 }
 0x566   : > { %v4488_v52 = vmax.f32 %v4487_v20, %v4283_v14  ;;  %v4736_v42 = vmin.f32 %v4735_v62, %v4283_v14  ;;  %v4284_v9 = vmax.f32 %v4023_v30, 0.0  ;;  %v4025_v3 = vadd.f32 %v4024_v60, %v8341_v44  ;;  %v6576_v20 = vld [vmem:[%s8875_s15 + $0x30] sm:$0xff]   ;;  %v6577_v60 = vld [vmem:[%s8875_s15 + $0x78] sm:$0xff]  }
 0x567   : > { %v4856_v6 = vrot.slane %v4855_v5, 1  ;;  %v4884_v22 = vrot.slane %v4883_v53, 1  ;;  %v4862_v57 = vrot.slane %v4861_v40, 1  ;;  %v4890_v48 = vrot.slane %v4889_v25, 1  ;;  %6067 = vmatpush3.bf16.msra.mxu1 %v6576_v20  ;;  %v6578_v30 = vld [vmem:[%s8875_s15 + $0x38] sm:$0xff]  }
 0x568   : > { %v4550_v58 = vmax.f32 %v4549_v23, %v4284_v9  ;;  %v4798_v21 = vmin.f32 %v4797_v7, %v4284_v9  ;;  %v4287_v17 = vmax.f32 %v4025_v3, 0.0  ;;  %v4027_v12 = vadd.f32 %v4026_v47, %v8347_v55  ;;  %6068 = vmatprep.subr.bf16.mxu1 %v6577_v60 }
 0x569   : > { %v4030_v36 = vpop.f32.mrb[68].mxu1  ;;  %v8684_v18 = vmax.f32 %v4855_v5, %v4856_v6  ;;  %v8686_v11 = vmin.f32 %v4883_v53, %v4884_v22  ;;  %v8688_v32 = vmax.f32 %v4861_v40, %v4862_v57  ;;  %v8690_v37 = vmin.f32 %v4889_v25, %v4890_v48 }
 0x56a   : > { %v4032_v27 = vpop.f32.mrb[69].mxu1  ;;  %v4489_v4 = vmax.f32 %v4488_v52, %v4287_v17  ;;  %v4737_v63 = vmin.f32 %v4736_v42, %v4287_v17  ;;  %v4288_v45 = vmax.f32 %v4027_v12, 0.0  ;;  %v4031_v59 = vadd.f32 %v4030_v36, %v8341_v44 }
 0x56b   : > { %v4034_v46 = vpop.f32.mrb[70].mxu1  ;;  %v5009_v29 = vcombine.low %v8684_v18, %v8688_v32  ;;  %v5039_v16 = vcombine.low %v8686_v11, %v8690_v37  ;;  %v4033_v54 = vadd.f32 %v4032_v27, %v8347_v55  ;;  %6069 = vmatpush3.bf16.msra.mxu1 %v6578_v30  ;;  %v4905_v18 = vld [vmem:[%s8872_s12] sm:$0xf] }
 0x56c   : > { %v4035_v15 = vadd.f32 %v4034_v46, %v8341_v44  ;;  %v4036_v51 = vpop.f32.mrb[71].mxu1  ;;  %v4551_v28 = vmax.f32 %v4550_v58, %v4288_v45  ;;  %v4799_v35 = vmin.f32 %v4798_v21, %v4288_v45  ;;  %v4291_v39 = vmax.f32 %v4031_v59, 0.0 }
 0x56d   : > { %v4037_v50 = vadd.f32 %v4036_v51, %v8347_v55  ;;  %v4292_v49 = vmax.f32 %v4033_v54, 0.0 }
 0x56e   : > { %v4295_v13 = vmax.f32 %v4035_v15, 0.0  ;;  %v4490_v62 = vmax.f32 %v4489_v4, %v4291_v39  ;;  %v4738_v31 = vmin.f32 %v4737_v63, %v4291_v39 }
 0x56f   : > { %v4296_v2 = vmax.f32 %v4037_v50, 0.0  ;;  %v4552_v43 = vmax.f32 %v4551_v28, %v4292_v49  ;;  %v4800_v0 = vmin.f32 %v4799_v35, %v4292_v49 }
 0x570   : > { %v4491_v26 = vmax.f32 %v4490_v62, %v4295_v13  ;;  %v4739_v41 = vmin.f32 %v4738_v31, %v4295_v13  ;;  %v6604_v13 = vmov 1966171168  }
 0x571   : > { %v4040_v10 = vpop.f32.mrb[72].mxu1  ;;  %v4553_v47 = vmax.f32 %v4552_v43, %v4296_v2  ;;  %v4801_v23 = vmin.f32 %v4800_v0, %v4296_v2  ;;  %v5012_v20 = vunpack.c.l.s4 %v6604_v13  ;;  %v6541_v13 = vld [vmem:[%s8873_s13 + $0x180] ss:$8 sps:$4 sm:$0xff]  }
 0x572   : > { %v4041_v7 = vadd.f32 %v4040_v10, %v8341_v44  ;;  %v4042_v14 = vpop.f32.mrb[73].mxu1 }
 0x573   : > { %v4043_v5 = vadd.f32 %v4042_v14, %v8347_v55  ;;  %v4044_v53 = vpop.f32.mrb[74].mxu1 }
 0x574   : > { %v4299_v40 = vmax.f32 %v4041_v7, 0.0  ;;  %v4045_v25 = vadd.f32 %v4044_v53, %v8341_v44  ;;  %v4046_v38 = vpop.f32.mrb[75].mxu1 }
 0x575   : > { %v4300_v52 = vmax.f32 %v4043_v5, 0.0  ;;  %v4047_v42 = vadd.f32 %v4046_v38, %v8347_v55 }
 0x576   : > { %v4492_v9 = vmax.f32 %v4491_v26, %v4299_v40  ;;  %v4740_v3 = vmin.f32 %v4739_v41, %v4299_v40  ;;  %v4303_v33 = vmax.f32 %v4045_v25, 0.0  ;;  %v5013_v26 = vunpack.c.0.s8 %v5012_v20  ;;  %v6546_v20 = vld [vmem:[%s8873_s13 + $0x194] ss:$8 sps:$4 sm:$0xff]  }
 0x577   : > { %v4554_v6 = vmax.f32 %v4553_v47, %v4300_v52  ;;  %v4802_v22 = vmin.f32 %v4801_v23, %v4300_v52  ;;  %v4304_v57 = vmax.f32 %v4047_v42, 0.0 }
 0x578   : > { %v4493_v48 = vmax.f32 %v4492_v9, %v4303_v33  ;;  %v4741_v58 = vmin.f32 %v4740_v3, %v4303_v33  ;;  %v5016_v53 = vsub.s32 %v5013_v26, %v7496_v1  ;;  %v6556_v26 = vld [vmem:[%s8873_s13 + $0x1d0] ss:$8 sps:$4 sm:$0xff]  }
 0x579   : > { %v4555_v21 = vmax.f32 %v4554_v6, %v4304_v57  ;;  %v4803_v17 = vmin.f32 %v4802_v22, %v4304_v57  ;;  %v4050_v12 = vpop.f32.mrb[76].mxu1  ;;  %v4904_v57 = vld [vmem:[%s8871_s11] sm:$0xf] }
 0x57a   : > { %v4051_v36 = vadd.f32 %v4050_v12, %v8341_v44  ;;  %v4052_v27 = vpop.f32.mrb[77].mxu1  ;;  %v5017_v42 = vrot.slane %v5009_v29, %v5016_v53  ;;  %v5047_v9 = vrot.slane %v5039_v16, %v5016_v53  ;;  %vm5004_vm2 = vcmp.ge.f32.partialorder %v4904_v57, 0.0 }
 0x57b   : > { %v4053_v61 = vadd.f32 %v4052_v27, %v8347_v55  ;;  %v4054_v4 = vpop.f32.mrb[78].mxu1  ;;  %v6515_v27 = vld [vmem:[%s8873_s13 + $0x100] ss:$8 sps:$4 sm:$0xff]  }
 0x57c   : > { %v4307_v63 = vmax.f32 %v4051_v36, 0.0  ;;  %v4055_v45 = vpop.f32.mrb[79].mxu1 }
 0x57d   : > { %v4308_v59 = vmax.f32 %v4053_v61, 0.0  ;;  %v6520_v61 = vld [vmem:[%s8873_s13 + $0x114] ss:$8 sps:$4 sm:$0xff]   ;;  %v6521_v45 = vld [vmem:[%s8873_s13 + $0x120] ss:$8 sps:$4 sm:$0xff]  }
 0x57e   : > { %v4494_v46 = vmax.f32 %v4493_v48, %v4307_v63  ;;  %v4742_v56 = vmin.f32 %v4741_v58, %v4307_v63  ;;  %v6518_v63 = vld [vmem:[%s8873_s13 + $0x110] ss:$8 sps:$4 sm:$0xff]  }
 0x57f   : > { %v4556_v54 = vmax.f32 %v4555_v21, %v4308_v59  ;;  %v4804_v15 = vmin.f32 %v4803_v17, %v4308_v59  ;;  %v6526_v59 = vld [vmem:[%s8873_s13 + $0x134] ss:$8 sps:$4 sm:$0xff]  }
 0x580   : > { %v4864_v51 = vrot.slane %v4494_v46, 4  ;;  %v4892_v28 = vrot.slane %v4742_v56, 4 }
 0x581   : > { %v4870_v35 = vrot.slane %v4556_v54, 4  ;;  %v4898_v39 = vrot.slane %v4804_v15, 4 }
 0x582   : > { %v4865_v50 = vmax.f32 %v4494_v46, %v4864_v51  ;;  %v4893_v49 = vmin.f32 %v4742_v56, %v4892_v28  ;;  %v6524_v46 = vld [vmem:[%s8873_s13 + $0x130] ss:$8 sps:$4 sm:$0xff]   ;;  %v6529_v56 = vld [vmem:[%s8873_s13 + $0x144] ss:$8 sps:$4 sm:$0xff]  }
 0x583   : > { %v4871_v44 = vmax.f32 %v4556_v54, %v4870_v35  ;;  %v4899_v62 = vmin.f32 %v4804_v15, %v4898_v39  ;;  %v6527_v54 = vld [vmem:[%s8873_s13 + $0x140] ss:$8 sps:$4 sm:$0xff]   ;;  %v6532_v15 = vld [vmem:[%s8873_s13 + $0x154] ss:$8 sps:$4 sm:$0xff]   ;;  %v6530_v51 = vld [vmem:[%s8873_s13 + $0x150] ss:$8 sps:$4 sm:$0xff]  }
 0x584   : > { %v4866_v31 = vrot.slane %v4865_v50, 2  ;;  %v4894_v55 = vrot.slane %v4893_v49, 2  ;;  %v6535_v28 = vld [vmem:[%s8873_s13 + $0x164] ss:$8 sps:$4 sm:$0xff]   ;;  %v6533_v35 = vld [vmem:[%s8873_s13 + $0x160] ss:$8 sps:$4 sm:$0xff]  }
 0x585   : > { %v4872_v2 = vrot.slane %v4871_v44, 2  ;;  %v4900_v60 = vrot.slane %v4899_v62, 2  ;;  %v6539_v39 = vld [vmem:[%s8873_s13 + $0x174] ss:$8 sps:$4 sm:$0xff]  }
 0x586   : > { %v4867_v43 = vmax.f32 %v4865_v50, %v4866_v31  ;;  %v4895_v0 = vmin.f32 %v4893_v49, %v4894_v55  ;;  %v6537_v50 = vld [vmem:[%s8873_s13 + $0x170] ss:$8 sps:$4 sm:$0xff]   ;;  %v6543_v49 = vld [vmem:[%s8873_s13 + $0x184] ss:$8 sps:$4 sm:$0xff]   ;;  %v6547_v31 = vld [vmem:[%s8873_s13 + $0x1a0] ss:$8 sps:$4 sm:$0xff]  }
 0x587   : > { %v4873_v41 = vmax.f32 %v4871_v44, %v4872_v2  ;;  %v4901_v10 = vmin.f32 %v4899_v62, %v4900_v60  ;;  %v6544_v44 = vld [vmem:[%s8873_s13 + $0x190] ss:$8 sps:$4 sm:$0xff]   ;;  %v6549_v62 = vld [vmem:[%s8873_s13 + $0x1a4] ss:$8 sps:$4 sm:$0xff]   ;;  %v6552_v55 = vld [vmem:[%s8873_s13 + $0x1b4] ss:$8 sps:$4 sm:$0xff]  }
 0x588   : > { %v4868_v47 = vrot.slane %v4867_v43, 1  ;;  %v4896_v23 = vrot.slane %v4895_v0, 1  ;;  %v6550_v2 = vld [vmem:[%s8873_s13 + $0x1b0] ss:$8 sps:$4 sm:$0xff]   ;;  %v6555_v60 = vld [vmem:[%s8873_s13 + $0x1c4] ss:$8 sps:$4 sm:$0xff]  }
 0x589   : > { %v4874_v7 = vrot.slane %v4873_v41, 1  ;;  %v4902_v14 = vrot.slane %v4901_v10, 1 }
 0x58a   : > { %v4869_v30 = vmax.f32 %v4867_v43, %v4868_v47  ;;  %v4897_v5 = vmin.f32 %v4895_v0, %v4896_v23  ;;  %v6553_v43 = vld [vmem:[%s8873_s13 + $0x1c0] ss:$8 sps:$4 sm:$0xff]   ;;  %v6558_v0 = vld [vmem:[%s8873_s13 + $0x1d4] ss:$8 sps:$4 sm:$0xff]   ;;  %v6563_v23 = vld [vmem:[%s8873_s13 + $0x1f0] ss:$8 sps:$4 sm:$0xff]  }
 0x58b   : > { %v4875_v40 = vmax.f32 %v4873_v41, %v4874_v7  ;;  %v4903_v25 = vmin.f32 %v4901_v10, %v4902_v14  ;;  %v6561_v41 = vld [vmem:[%s8873_s13 + $0x1e4] ss:$8 sps:$4 sm:$0xff]   ;;  %v6559_v10 = vld [vmem:[%s8873_s13 + $0x1e0] ss:$8 sps:$4 sm:$0xff]   ;;  %v6565_v47 = vld [vmem:[%s8873_s13 + $0x1f4] ss:$8 sps:$4 sm:$0xff]  }
 0x58d   : > { %v5010_v38 = vcombine.low %v4869_v30, %v4875_v40  ;;  %v5040_v52 = vcombine.low %v4897_v5, %v4903_v25  ;;  %v4970_v30 = vld [vmem:[%s8874_s14] sm:$0x3] }
 0x58e   : > { %v5416_v5 = vrot.slane %v4970_v30, %v7503_v8 }
 0x58f   : > { %v5024_v3 = vrot.slane %v5010_v38, %v5016_v53  ;;  %v5054_v33 = vrot.slane %v5040_v52, %v5016_v53 }
 0x591   : > { %v5025_v6 = vcombine.low %v5017_v42, %v5024_v3  ;;  %v5055_v22 = vcombine.low %v5047_v9, %v5054_v33 }
 0x593   : > { %v5032_v48 = vrot.slane %v5025_v6, %v5016_v53  ;;  %v5062_v58 = vrot.slane %v5055_v22, %v5016_v53  ;;  %v5420_v53 = vrot.slane %v4970_v30, %v7509_v19 }
 0x595   : > { %v5034_v32 = vmul.f32 %v5032_v48, %v4904_v57  ;;  %v5064_v29 = vmul.f32 %v5062_v58, %v4904_v57 }
 0x597   : > { %v5065_v21 = vsel %vm5004_vm2, %v5034_v32, %v5064_v29 }
 0x598   : > { %v8734_v11 = vadd.f32 %v5065_v21, %v4905_v18 }
 0x59a   : > { %v5071_v37 = vrot.slane %v8734_v11, %v7503_v8  ;;  %v5075_v16 = vrot.slane %v8734_v11, %v7509_v19  ;;  %v5083_v17 = vrot.slane %v8734_v11, %v3029_v34  ;;  %v6523_v34 = vld [vmem:[%s8873_s13 + $0x124] ss:$8 sps:$4 sm:$0xff]   ;;  %v5079_v7 = vrot.slane %v8734_v11, %v3025_v24  ;;  %v5003_v8 = vld [vmem:[%s8876_s16] sm:$0x1] }
 0x59c   : > { %v5088_v12 = vpack.c.bf16 %v5071_v37, %v5071_v37  ;;  %v5089_v36 = vpack.c.bf16 %v5075_v16, %v5075_v16  ;;  %v5091_v4 = vpack.c.bf16 %v5083_v17, %v5083_v17  ;;  %v5090_v14 = vpack.c.bf16 %v5079_v7, %v5079_v7 }
 0x59e   : > { %5455 = vmatprep.mubr.bf16.mxu0 %v5089_v36 }
 0x59f   : > { %5456 = vmatmul.mubr.bf16.vlgmr.msra.gmra.mrb[48].mxu0 %v5088_v12 }
 0x5a0   : > { %5465 = vmatpush1.bf16.msra.mxu0 %v6515_v27  ;;  %5496 = vmatprep.mubr.bf16.mxu0 %v5091_v4 }
 0x5a1   : > { %5466 = vmatprep.subr.bf16.mxu0 %v6520_v61 }
 0x5a4   : > { %5467 = vmatpush1.bf16.msra.mxu0 %v6518_v63 }
 0x5a5   : > { %5468 = vmatprep.subr.bf16.mxu0 %v6523_v34 }
 0x5a8   : > { %5469 = vmatpush1.bf16.msra.mxu0 %v6521_v45 }
 0x5a9   : > { %5470 = vmatprep.subr.bf16.mxu0 %v6526_v59 }
 0x5ac   : > { %5471 = vmatpush1.bf16.msra.mxu0 %v6524_v46 }
 0x5ad   : > { %5472 = vmatprep.subr.bf16.mxu0 %v6529_v56 }
 0x5b0   : > { %5473 = vmatpush1.bf16.msra.mxu0 %v6527_v54 }
 0x5b1   : > { %5474 = vmatprep.subr.bf16.mxu0 %v6532_v15 }
 0x5b4   : > { %5475 = vmatpush1.bf16.msra.mxu0 %v6530_v51 }
 0x5b5   : > { %5476 = vmatprep.subr.bf16.mxu0 %v6535_v28 }
 0x5b8   : > { %5477 = vmatpush1.bf16.msra.mxu0 %v6533_v35 }
 0x5b9   : > { %5478 = vmatprep.subr.bf16.mxu0 %v6539_v39 }
 0x5bc   : > { %5479 = vmatpush1.bf16.msra.mxu0 %v6537_v50 }
 0x5bd   : > { %5480 = vmatprep.subr.bf16.mxu0 %v6543_v49 }
 0x5c0   : > { %5481 = vmatpush1.bf16.msra.mxu0 %v6541_v13 }
 0x5c1   : > { %5482 = vmatprep.subr.bf16.mxu0 %v6546_v20 }
 0x5c4   : > { %5483 = vmatpush1.bf16.msra.mxu0 %v6544_v44 }
 0x5c5   : > { %5484 = vmatprep.subr.bf16.mxu0 %v6549_v62 }
 0x5c8   : > { %5485 = vmatpush1.bf16.msra.mxu0 %v6547_v31 }
 0x5c9   : > { %5486 = vmatprep.subr.bf16.mxu0 %v6552_v55 }
 0x5cc   : > { %5487 = vmatpush1.bf16.msra.mxu0 %v6550_v2 }
 0x5cd   : > { %5488 = vmatprep.subr.bf16.mxu0 %v6555_v60 }
 0x5d0   : > { %5489 = vmatpush1.bf16.msra.mxu0 %v6553_v43 }
 0x5d1   : > { %5490 = vmatprep.subr.bf16.mxu0 %v6558_v0 }
 0x5d4   : > { %5491 = vmatpush1.bf16.msra.mxu0 %v6556_v26 }
 0x5d5   : > { %5492 = vmatprep.subr.bf16.mxu0 %v6561_v41 }
 0x5d8   : > { %5493 = vmatpush1.bf16.msra.mxu0 %v6559_v10 }
 0x5d9   : > { %5494 = vmatprep.subr.bf16.mxu0 %v6565_v47 }
 0x5dc   : > { %5495 = vmatpush1.bf16.msra.mxu0 %v6563_v23 }
 0x5df   : > { %5497 = vmatmul.mubr.bf16.vlgmr.msra.gmra.mrb[48].mxu0 %v5090_v14 }
 0x6b2   : > { %v5498_v40 = vpop.f32.mrb[48].mxu0 }
 0x6b3   : > { %v6224_v25 = vadd.f32 %v5498_v40, %v5416_v5  ;;  %v5500_v38 = vpop.f32.mrb[49].mxu0 }
 0x6b4   : > { %v6225_v52 = vadd.f32 %v5500_v38, %v5420_v53  ;;  %v5502_v1 = vpop.f32.mrb[50].mxu0 }
 0x6b5   : > { %v5505_v42 = vmax.f32 %v6224_v25, 0.0  ;;  %v5503_v24 = vpop.f32.mrb[51].mxu0 }
 0x6b6   : > { %v5506_v9 = vmax.f32 %v6225_v52, 0.0 }
 0x6b7   : > { %v5507_v33 = vpack.c.bf16 %v5505_v42, %v5505_v42 }
 0x6b8   : > { %v5508_v3 = vpack.c.bf16 %v5506_v9, %v5506_v9 }
 0x6ba   : > { %5637 = vmatprep.mubr.bf16.mxu1 %v5508_v3 }
 0x6bb   : > { %5638 = vmatmul.mubr.bf16.vlgmr.msra.gmra.mrb[80].mxu1 %v5507_v33 }
 0x78e   : > { %v6070_v6 = vpop.f32.mrb[80].mxu1 }
 0x78f   : > { %v6071_v22 = vpop.f32.mrb[81].mxu1 }
 0x790   : > { %v6072_v19 = vadd.f32 %v6071_v22, %v6070_v6  ;;  %v6073_v57 = vpop.f32.mrb[82].mxu1 }
 0x791   : > { %v6074_v48 = vpop.f32.mrb[83].mxu1 }
 0x792   : > { %v5640_v58 = vadd.f32 %v6072_v19, %v5003_v8 }
 0x794   : > { %5645 = vst [vmem:[%s572_s28] sm:$0x1] %v5640_v58 }
 0x795 PF: > { %s27_s26 = sadd.s32 1, %s6601_s26   ;;  %s8882_s24 = smov %s6597_s25 }
 0x796   : > { %p24_p5 = scmp.ge.s32.totalorder %s27_s26, 4   ;;  %s8883_s25 = smov %s8885_s27 }
 0x798   :  { %26 = sbr.rel (!%p24_p5) target bundleno = 3 (0x3), region = 130 }

</bundles_post_ra>
